<compile_context>
chip_gen: v7x
topology: tpu7x:2x2x1
jax: 0.10.0
libtpu: 0.0.40
codegen_flags: <defaults>
</compile_context>

<pallas_src>
import jax
import jax.numpy as jnp
from jax.experimental import pallas as pl
from jax.experimental.pallas import tpu as pltpu

# ---- model hyperparameters (small, consistent with the module) -------------
DIM = 32          # node feature dim
EDGE_DIM = 32     # edge feature dim (defaults to dim)
HEADS = 2
DIM_HEAD = 16
INNER = HEADS * DIM_HEAD
DEPTH = 2
SEQ = 8
BATCH = 2
SCALE = DIM_HEAD ** -0.5
LN_EPS = 1e-5     # torch nn.LayerNorm default eps


# ---- Pallas kernel: full DEPTH-layer forward, all batches in one shot ------
def _fused_kernel(nodes_ref, edges_ref, wnode_ref, bqkv_ref, wedge_ref, be_ref,
                  wout_ref, vec3_ref, out_ref):
    nodes = nodes_ref[...]            # (B*N, DIM)        row = b*N + i
    e_flat = edges_ref[...]           # (B*N*N, EDGE_DIM) row = b*N*N + i*N + j

    # Layer-invariant edge projection for ALL layers at once (one wide MXU pass).
    ekv_all = jnp.dot(e_flat, wedge_ref[...],
                      preferred_element_type=jnp.float32) + be_ref[...]
    e3_all = ekv_all.reshape(BATCH * SEQ, SEQ, DEPTH * INNER)   # ((b,i), j, d)

    # TODO(synk): optional boolean node mask (masked_fill before softmax) not
    #             implemented; the reference forward uses mask=None (default).
    for l in range(DEPTH):            # static unroll; nodes stay resident in VMEM
        # --- PreNorm: LayerNorm statistics only (gamma/beta folded into weights)
        mean = jnp.mean(nodes, axis=-1, keepdims=True)
        var = jnp.mean((nodes - mean) ** 2, axis=-1, keepdims=True)
        xhat = (nodes - mean) * jax.lax.rsqrt(var + LN_EPS)

        # --- fused q/k/v projection; gamma, beta, biases and SCALE pre-folded
        qkv = jnp.dot(xhat, wnode_ref[l],
                      preferred_element_type=jnp.float32) + bqkv_ref[l]  # (B*N, 3*INNER)
        q2 = qkv[:, 0:INNER]                                   # pre-scaled by SCALE
        q3 = q2.reshape(BATCH, SEQ, INNER)
        k3 = qkv[:, INNER:2 * INNER].reshape(BATCH, SEQ, INNER)
        v3 = qkv[:, 2 * INNER:3 * INNER].reshape(BATCH, SEQ, INNER)
        e3 = e3_all[..., l * INNER:(l + 1) * INNER]            # (B*N, N, INNER)

        # --- edge-biased attention: MXU for q@k^T and attn@v, VPU/XLU for the
        #     edge-coupling terms (sim and out split exactly per the reference).
        head_outs = []
        for h in range(HEADS):                                  # static, 2 iters
            sl = slice(h * DIM_HEAD, (h + 1) * DIM_HEAD)
            eh = e3[..., sl]                                    # (B*N, N, DH)
            # MXU: batched q @ k^T over the batch dim
            sim = jnp.einsum('bid,bjd->bij', q3[..., sl], k3[..., sl],
                             preferred_element_type=jnp.float32)        # (B, N, N)
            # VPU: rowwise <q_i, e_ij> on the natural ((b,i), j, d) layout
            sim_e = jnp.sum(q2[:, None, sl] * eh, axis=-1)               # (B*N, N)
            sim = sim + sim_e.reshape(BATCH, SEQ, SEQ)
            # softmax over j (exact division; EUP/VPU)
            sim = sim - jnp.max(sim, axis=-1, keepdims=True)
            p = jnp.exp(sim)
            attn = p / jnp.sum(p, axis=-1, keepdims=True)                # (B, N, N)
            # MXU: attn @ v
            out_v = jnp.einsum('bij,bjd->bid', attn, v3[..., sl],
                               preferred_element_type=jnp.float32)       # (B, N, DH)
            # VPU/XLU: sublane-segmented reduction of attn-weighted edges
            a2 = attn.reshape(BATCH * SEQ, SEQ)
            out_e = jnp.sum(a2[:, :, None] * eh, axis=1)                 # (B*N, DH)
            head_outs.append(out_v.reshape(BATCH * SEQ, DIM_HEAD) + out_e)
        att = jnp.concatenate(head_outs, axis=-1)                        # (B*N, INNER)

        # --- output projection (bias from packed vec3 row 0) ---
        vec3 = vec3_ref[l]                                     # (3, DIM): bo, wgy, wgn
        y = jnp.dot(att, wout_ref[l],
                    preferred_element_type=jnp.float32) + vec3[0:1]      # (B*N, DIM)

        # --- GatedResidual, folded gate weights (algebraically identical) ---
        gate_logit = jnp.sum(y * vec3[1:2] + nodes * vec3[2:3], axis=-1, keepdims=True)
        gate = jax.nn.sigmoid(gate_logit)
        nodes = y * gate + nodes * (1.0 - gate)

    out_ref[...] = nodes


# ---- weight packing (runs ONCE at init, outside the hot path) ---------------
def pack_params(layers):
    wnode_l, bqkv_l, wout_l, vec3_l, we_l, be_l = [], [], [], [], [], []
    for p in layers:
        g, b = p['gamma'], p['beta']
        # fold LayerNorm affine + softmax SCALE into the node projection
        wq = p['wq'] * g[:, None] * SCALE
        bq = (b @ p['wq'] + p['bq']) * SCALE
        wkv = p['wkv'] * g[:, None]
        bkv = b @ p['wkv'] + p['bkv']
        wnode_l.append(jnp.concatenate([wq, wkv], axis=-1))        # (DIM, 3*INNER)
        bqkv_l.append(jnp.concatenate([bq, bkv])[None, :])         # (1, 3*INNER)
        wout_l.append(p['wo'])
        # GatedResidual concat fold: logit = y@(wg1+wg3) + res@(wg2-wg3)
        wg = p['wg'][:, 0]
        wgy = wg[:DIM] + wg[2 * DIM:]
        wgn = wg[DIM:2 * DIM] - wg[2 * DIM:]
        vec3_l.append(jnp.stack([p['bo'], wgy, wgn], axis=0))      # (3, DIM)
        we_l.append(p['we'])
        be_l.append(p['be'])
    wnode = jnp.stack(wnode_l)                  # (DEPTH, DIM, 3*INNER)
    bqkv = jnp.stack(bqkv_l)                    # (DEPTH, 1, 3*INNER)
    wout = jnp.stack(wout_l)                    # (DEPTH, INNER, DIM)
    vec3 = jnp.stack(vec3_l)                    # (DEPTH, 3, DIM)
    wedge = jnp.concatenate(we_l, axis=-1)      # (EDGE_DIM, DEPTH*INNER)
    be = jnp.concatenate(be_l)[None, :]         # (1, DEPTH*INNER)
    return wnode, bqkv, wedge, be, wout, vec3


@jax.jit
def graph_transformer(nodes, edges, packed):
    # with_feedforwards=False, norm_edges=False, no adj_mat, mask=None
    b, n, d = nodes.shape
    wnode, bqkv, wedge, be, wout, vec3 = packed
    nodes_flat = nodes.reshape(b * n, d)                     # free metadata reshape
    edges_flat = edges.reshape(b * n * n, edges.shape[-1])   # free metadata reshape

    out = pl.pallas_call(
        _fused_kernel,
        out_shape=jax.ShapeDtypeStruct((b * n, d), jnp.float32),
        in_specs=[pl.BlockSpec(memory_space=pltpu.MemorySpace.VMEM)] * 8,
        out_specs=pl.BlockSpec(memory_space=pltpu.MemorySpace.VMEM),
    )(nodes_flat, edges_flat, wnode, bqkv, wedge, be, wout, vec3)
    return out.reshape(b, n, d), edges


# ---- deterministic parameter init ------------------------------------------
def init_params(key, depth):
    layers = []
    for l in range(depth):
        ks = jax.random.split(jax.random.fold_in(key, l), 9)

        def w(k, shape, s=0.1):
            return jax.random.normal(k, shape, jnp.float32) * s

        layers.append(dict(
            gamma=jnp.ones((DIM,), jnp.float32),
            beta=jnp.zeros((DIM,), jnp.float32),
            wq=w(ks[0], (DIM, INNER)),
            bq=w(ks[1], (INNER,), 0.05),
            wkv=w(ks[2], (DIM, 2 * INNER)),
            bkv=w(ks[3], (2 * INNER,), 0.05),
            we=w(ks[4], (EDGE_DIM, INNER)),
            be=w(ks[5], (INNER,), 0.05),
            wo=w(ks[6], (INNER, DIM)),
            bo=w(ks[7], (DIM,), 0.05),
            wg=w(ks[8], (3 * DIM, 1)),        # GatedResidual proj, no bias
        ))
    return layers


# ---- pure-JAX reference (mirrors the PyTorch forward exactly) ---------------
def reference(nodes, edges, layers):
    for p in layers:
        mean = nodes.mean(-1, keepdims=True)
        var = ((nodes - mean) ** 2).mean(-1, keepdims=True)
        x = (nodes - mean) / jnp.sqrt(var + LN_EPS) * p['gamma'] + p['beta']
        q = x @ p['wq'] + p['bq']
        kv = x @ p['wkv'] + p['bkv']
        k, v = kv[..., :INNER], kv[..., INNER:]
        ekv = edges @ p['we'] + p['be']

        def split(t):  # '(h d)' -> (..., h, d)
            return t.reshape(t.shape[:-1] + (HEADS, DIM_HEAD))

        qh = jnp.moveaxis(split(q), -2, 1)            # (b, h, n, dh)
        kh = jnp.moveaxis(split(k), -2, 1)
        vh = jnp.moveaxis(split(v), -2, 1)
        eh = jnp.moveaxis(split(ekv), -2, 1)          # (b, h, i, j, dh)
        kk = kh[:, :, None, :, :] + eh
        vv = vh[:, :, None, :, :] + eh
        sim = jnp.einsum('bhid,bhijd->bhij', qh, kk) * SCALE
        attn = jax.nn.softmax(sim, axis=-1)
        out = jnp.einsum('bhij,bhijd->bhid', attn, vv)
        out = jnp.moveaxis(out, 1, -2).reshape(nodes.shape[0], nodes.shape[1], INNER)
        y = out @ p['wo'] + p['bo']
        gate_in = jnp.concatenate([y, nodes, y - nodes], axis=-1)
        gate = jax.nn.sigmoid(gate_in @ p['wg'])
        nodes = y * gate + nodes * (1.0 - gate)
    return nodes, edges


if __name__ == "__main__":
    key = jax.random.PRNGKey(0)
    k_nodes, k_edges, k_params = jax.random.split(key, 3)
    nodes = jax.random.normal(k_nodes, (BATCH, SEQ, DIM), jnp.float32)
    edges = jax.random.normal(k_edges, (BATCH, SEQ, SEQ, EDGE_DIM), jnp.float32)
    layers = init_params(k_params, DEPTH)
    packed = pack_params(layers)          # pack once at init, not per call

    out_nodes, out_edges = graph_transformer(nodes, edges, packed)
    out_nodes = jax.block_until_ready(out_nodes)

    ref_nodes, _ = reference(nodes, edges, layers)
    assert jnp.allclose(out_nodes, ref_nodes, atol=2e-3, rtol=2e-3), "mismatch vs reference"
    assert out_nodes.shape == (BATCH, SEQ, DIM)
    assert out_edges.shape == (BATCH, SEQ, SEQ, EDGE_DIM)
    print("KERNEL_OK")
</pallas_src>

<mosaic_0001>
module attributes {stable_mosaic.version = 11 : i64} {
  func.func @_fused_kernel(%arg0: memref<16x32xf32, #tpu.memory_space<vmem>>, %arg1: memref<128x32xf32, #tpu.memory_space<vmem>>, %arg2: memref<2x32x96xf32, #tpu.memory_space<vmem>>, %arg3: memref<2x1x96xf32, #tpu.memory_space<vmem>>, %arg4: memref<32x64xf32, #tpu.memory_space<vmem>>, %arg5: memref<1x64xf32, #tpu.memory_space<vmem>>, %arg6: memref<2x32x32xf32, #tpu.memory_space<vmem>>, %arg7: memref<2x3x32xf32, #tpu.memory_space<vmem>>, %arg8: memref<16x32xf32, #tpu.memory_space<vmem>>) attributes {dimension_semantics = [], scalar_prefetch = 0 : i64, scratch_operands = 0 : i64, tpu.core_type = #tpu.core_type<tc>} {
    %c0 = arith.constant 0 : index
    %c0_0 = arith.constant 0 : index
    %0 = vector.load %arg0[%c0, %c0_0] : memref<16x32xf32, #tpu.memory_space<vmem>>, vector<16x32xf32>
    %c0_1 = arith.constant 0 : index
    %c0_2 = arith.constant 0 : index
    %1 = vector.load %arg1[%c0_1, %c0_2] : memref<128x32xf32, #tpu.memory_space<vmem>>, vector<128x32xf32>
    %c0_3 = arith.constant 0 : index
    %c0_4 = arith.constant 0 : index
    %2 = vector.load %arg4[%c0_3, %c0_4] : memref<32x64xf32, #tpu.memory_space<vmem>>, vector<32x64xf32>
    %cst = arith.constant dense<0.000000e+00> : vector<128x64xf32>
    %3 = tpu.matmul %1, %2, %cst {dimension_numbers = #tpu.dot_dimension_numbers<[1], [0], [0], [1], [0, 0, 1, 1], [], []>} : vector<128x32xf32>, vector<32x64xf32>, vector<128x64xf32> -> vector<128x64xf32>
    %c0_5 = arith.constant 0 : index
    %c0_6 = arith.constant 0 : index
    %4 = vector.load %arg5[%c0_5, %c0_6] : memref<1x64xf32, #tpu.memory_space<vmem>>, vector<1x64xf32>
    %5 = vector.broadcast %4 : vector<1x64xf32> to vector<128x64xf32>
    %6 = arith.addf %3, %5 : vector<128x64xf32>
    %7 = vector.shape_cast %6 : vector<128x64xf32> to vector<16x8x64xf32>
    %cst_7 = arith.constant dense<0.000000e+00> : vector<16xf32>
    %8 = vector.multi_reduction <add>, %0, %cst_7 [1] : vector<16x32xf32> to vector<16xf32>
    %9 = vector.shape_cast %8 : vector<16xf32> to vector<16x1xf32>
    %cst_8 = arith.constant 3.200000e+01 : f32
    %10 = vector.broadcast %cst_8 : f32 to vector<16x1xf32>
    %11 = arith.divf %9, %10 : vector<16x1xf32>
    %12 = vector.broadcast %11 : vector<16x1xf32> to vector<16x32xf32>
    %13 = arith.subf %0, %12 : vector<16x32xf32>
    %14 = arith.mulf %13, %13 : vector<16x32xf32>
    %cst_9 = arith.constant dense<0.000000e+00> : vector<16xf32>
    %15 = vector.multi_reduction <add>, %14, %cst_9 [1] : vector<16x32xf32> to vector<16xf32>
    %16 = vector.shape_cast %15 : vector<16xf32> to vector<16x1xf32>
    %cst_10 = arith.constant 3.200000e+01 : f32
    %17 = vector.broadcast %cst_10 : f32 to vector<16x1xf32>
    %18 = arith.divf %16, %17 : vector<16x1xf32>
    %19 = vector.broadcast %11 : vector<16x1xf32> to vector<16x32xf32>
    %20 = arith.subf %0, %19 : vector<16x32xf32>
    %cst_11 = arith.constant 9.99999974E-6 : f32
    %21 = vector.broadcast %cst_11 : f32 to vector<16x1xf32>
    %22 = arith.addf %18, %21 : vector<16x1xf32>
    %23 = math.rsqrt %22 : vector<16x1xf32>
    %24 = vector.broadcast %23 : vector<16x1xf32> to vector<16x32xf32>
    %25 = arith.mulf %20, %24 : vector<16x32xf32>
    %c0_12 = arith.constant 0 : index
    %c0_13 = arith.constant 0 : index
    %c0_14 = arith.constant 0 : index
    %26 = vector.load %arg2[%c0_12, %c0_13, %c0_14] : memref<2x32x96xf32, #tpu.memory_space<vmem>>, vector<1x32x96xf32>
    %27 = vector.shape_cast %26 : vector<1x32x96xf32> to vector<32x96xf32>
    %cst_15 = arith.constant dense<0.000000e+00> : vector<16x96xf32>
    %28 = tpu.matmul %25, %27, %cst_15 {dimension_numbers = #tpu.dot_dimension_numbers<[1], [0], [0], [1], [0, 0, 1, 1], [], []>} : vector<16x32xf32>, vector<32x96xf32>, vector<16x96xf32> -> vector<16x96xf32>
    %c0_16 = arith.constant 0 : index
    %c0_17 = arith.constant 0 : index
    %c0_18 = arith.constant 0 : index
    %29 = vector.load %arg3[%c0_16, %c0_17, %c0_18] : memref<2x1x96xf32, #tpu.memory_space<vmem>>, vector<1x1x96xf32>
    %30 = vector.shape_cast %29 : vector<1x1x96xf32> to vector<1x96xf32>
    %31 = vector.broadcast %30 : vector<1x96xf32> to vector<16x96xf32>
    %32 = arith.addf %28, %31 : vector<16x96xf32>
    %33 = vector.extract_strided_slice %32 {offsets = [0, 0], sizes = [16, 32], strides = [1, 1]} : vector<16x96xf32> to vector<16x32xf32>
    %34 = vector.shape_cast %33 : vector<16x32xf32> to vector<2x8x32xf32>
    %35 = vector.extract_strided_slice %32 {offsets = [0, 32], sizes = [16, 32], strides = [1, 1]} : vector<16x96xf32> to vector<16x32xf32>
    %36 = vector.shape_cast %35 : vector<16x32xf32> to vector<2x8x32xf32>
    %37 = vector.extract_strided_slice %32 {offsets = [0, 64], sizes = [16, 32], strides = [1, 1]} : vector<16x96xf32> to vector<16x32xf32>
    %38 = vector.shape_cast %37 : vector<16x32xf32> to vector<2x8x32xf32>
    %39 = vector.extract_strided_slice %7 {offsets = [0, 0, 0], sizes = [16, 8, 32], strides = [1, 1, 1]} : vector<16x8x64xf32> to vector<16x8x32xf32>
    %40 = vector.extract_strided_slice %39 {offsets = [0, 0, 0], sizes = [16, 8, 16], strides = [1, 1, 1]} : vector<16x8x32xf32> to vector<16x8x16xf32>
    %41 = vector.extract_strided_slice %34 {offsets = [0, 0, 0], sizes = [2, 8, 16], strides = [1, 1, 1]} : vector<2x8x32xf32> to vector<2x8x16xf32>
    %42 = vector.extract_strided_slice %36 {offsets = [0, 0, 0], sizes = [2, 8, 16], strides = [1, 1, 1]} : vector<2x8x32xf32> to vector<2x8x16xf32>
    "tpu.trace_start"() <{level = 10 : i32, message = "bid,bjd->bij"}> : () -> ()
    %cst_19 = arith.constant dense<0.000000e+00> : vector<2x8x8xf32>
    %43 = tpu.matmul %41, %42, %cst_19 {dimension_numbers = #tpu.dot_dimension_numbers<[2], [2], [1], [1], [0, 0, 0, 1, 1, 1], [0], [0]>} : vector<2x8x16xf32>, vector<2x8x16xf32>, vector<2x8x8xf32> -> vector<2x8x8xf32>
    "tpu.trace_stop"() : () -> ()
    %44 = vector.extract_strided_slice %33 {offsets = [0, 0], sizes = [16, 16], strides = [1, 1]} : vector<16x32xf32> to vector<16x16xf32>
    %45 = vector.shape_cast %44 : vector<16x16xf32> to vector<16x1x16xf32>
    %46 = vector.broadcast %45 : vector<16x1x16xf32> to vector<16x8x16xf32>
    %47 = arith.mulf %46, %40 : vector<16x8x16xf32>
    %cst_20 = arith.constant dense<0.000000e+00> : vector<16x8xf32>
    %48 = vector.multi_reduction <add>, %47, %cst_20 [2] : vector<16x8x16xf32> to vector<16x8xf32>
    %49 = vector.shape_cast %48 : vector<16x8xf32> to vector<2x8x8xf32>
    %50 = arith.addf %43, %49 : vector<2x8x8xf32>
    %cst_21 = arith.constant dense<0xFF800000> : vector<2x8xf32>
    %51 = vector.multi_reduction <maximumf>, %50, %cst_21 [2] : vector<2x8x8xf32> to vector<2x8xf32>
    %52 = vector.shape_cast %51 : vector<2x8xf32> to vector<2x8x1xf32>
    %53 = vector.broadcast %52 : vector<2x8x1xf32> to vector<2x8x8xf32>
    %54 = arith.subf %50, %53 : vector<2x8x8xf32>
    %55 = math.exp %54 : vector<2x8x8xf32>
    %cst_22 = arith.constant dense<0.000000e+00> : vector<2x8xf32>
    %56 = vector.multi_reduction <add>, %55, %cst_22 [2] : vector<2x8x8xf32> to vector<2x8xf32>
    %57 = vector.shape_cast %56 : vector<2x8xf32> to vector<2x8x1xf32>
    %58 = vector.broadcast %57 : vector<2x8x1xf32> to vector<2x8x8xf32>
    %59 = arith.divf %55, %58 : vector<2x8x8xf32>
    %60 = vector.extract_strided_slice %38 {offsets = [0, 0, 0], sizes = [2, 8, 16], strides = [1, 1, 1]} : vector<2x8x32xf32> to vector<2x8x16xf32>
    "tpu.trace_start"() <{level = 10 : i32, message = "bij,bjd->bid"}> : () -> ()
    %cst_23 = arith.constant dense<0.000000e+00> : vector<2x8x16xf32>
    %61 = tpu.matmul %59, %60, %cst_23 {dimension_numbers = #tpu.dot_dimension_numbers<[2], [1], [1], [2], [0, 0, 0, 1, 1, 2], [0], [0]>} : vector<2x8x8xf32>, vector<2x8x16xf32>, vector<2x8x16xf32> -> vector<2x8x16xf32>
    "tpu.trace_stop"() : () -> ()
    %62 = vector.shape_cast %59 : vector<2x8x8xf32> to vector<16x8xf32>
    %63 = vector.shape_cast %62 : vector<16x8xf32> to vector<16x8x1xf32>
    %64 = vector.broadcast %63 : vector<16x8x1xf32> to vector<16x8x16xf32>
    %65 = arith.mulf %64, %40 : vector<16x8x16xf32>
    %cst_24 = arith.constant dense<0.000000e+00> : vector<16x16xf32>
    %66 = vector.multi_reduction <add>, %65, %cst_24 [1] : vector<16x8x16xf32> to vector<16x16xf32>
    %67 = vector.shape_cast %61 : vector<2x8x16xf32> to vector<16x16xf32>
    %68 = arith.addf %67, %66 : vector<16x16xf32>
    %69 = vector.extract_strided_slice %39 {offsets = [0, 0, 16], sizes = [16, 8, 16], strides = [1, 1, 1]} : vector<16x8x32xf32> to vector<16x8x16xf32>
    %70 = vector.extract_strided_slice %34 {offsets = [0, 0, 16], sizes = [2, 8, 16], strides = [1, 1, 1]} : vector<2x8x32xf32> to vector<2x8x16xf32>
    %71 = vector.extract_strided_slice %36 {offsets = [0, 0, 16], sizes = [2, 8, 16], strides = [1, 1, 1]} : vector<2x8x32xf32> to vector<2x8x16xf32>
    "tpu.trace_start"() <{level = 10 : i32, message = "bid,bjd->bij"}> : () -> ()
    %cst_25 = arith.constant dense<0.000000e+00> : vector<2x8x8xf32>
    %72 = tpu.matmul %70, %71, %cst_25 {dimension_numbers = #tpu.dot_dimension_numbers<[2], [2], [1], [1], [0, 0, 0, 1, 1, 1], [0], [0]>} : vector<2x8x16xf32>, vector<2x8x16xf32>, vector<2x8x8xf32> -> vector<2x8x8xf32>
    "tpu.trace_stop"() : () -> ()
    %73 = vector.extract_strided_slice %33 {offsets = [0, 16], sizes = [16, 16], strides = [1, 1]} : vector<16x32xf32> to vector<16x16xf32>
    %74 = vector.shape_cast %73 : vector<16x16xf32> to vector<16x1x16xf32>
    %75 = vector.broadcast %74 : vector<16x1x16xf32> to vector<16x8x16xf32>
    %76 = arith.mulf %75, %69 : vector<16x8x16xf32>
    %cst_26 = arith.constant dense<0.000000e+00> : vector<16x8xf32>
    %77 = vector.multi_reduction <add>, %76, %cst_26 [2] : vector<16x8x16xf32> to vector<16x8xf32>
    %78 = vector.shape_cast %77 : vector<16x8xf32> to vector<2x8x8xf32>
    %79 = arith.addf %72, %78 : vector<2x8x8xf32>
    %cst_27 = arith.constant dense<0xFF800000> : vector<2x8xf32>
    %80 = vector.multi_reduction <maximumf>, %79, %cst_27 [2] : vector<2x8x8xf32> to vector<2x8xf32>
    %81 = vector.shape_cast %80 : vector<2x8xf32> to vector<2x8x1xf32>
    %82 = vector.broadcast %81 : vector<2x8x1xf32> to vector<2x8x8xf32>
    %83 = arith.subf %79, %82 : vector<2x8x8xf32>
    %84 = math.exp %83 : vector<2x8x8xf32>
    %cst_28 = arith.constant dense<0.000000e+00> : vector<2x8xf32>
    %85 = vector.multi_reduction <add>, %84, %cst_28 [2] : vector<2x8x8xf32> to vector<2x8xf32>
    %86 = vector.shape_cast %85 : vector<2x8xf32> to vector<2x8x1xf32>
    %87 = vector.broadcast %86 : vector<2x8x1xf32> to vector<2x8x8xf32>
    %88 = arith.divf %84, %87 : vector<2x8x8xf32>
    %89 = vector.extract_strided_slice %38 {offsets = [0, 0, 16], sizes = [2, 8, 16], strides = [1, 1, 1]} : vector<2x8x32xf32> to vector<2x8x16xf32>
    "tpu.trace_start"() <{level = 10 : i32, message = "bij,bjd->bid"}> : () -> ()
    %cst_29 = arith.constant dense<0.000000e+00> : vector<2x8x16xf32>
    %90 = tpu.matmul %88, %89, %cst_29 {dimension_numbers = #tpu.dot_dimension_numbers<[2], [1], [1], [2], [0, 0, 0, 1, 1, 2], [0], [0]>} : vector<2x8x8xf32>, vector<2x8x16xf32>, vector<2x8x16xf32> -> vector<2x8x16xf32>
    "tpu.trace_stop"() : () -> ()
    %91 = vector.shape_cast %88 : vector<2x8x8xf32> to vector<16x8xf32>
    %92 = vector.shape_cast %91 : vector<16x8xf32> to vector<16x8x1xf32>
    %93 = vector.broadcast %92 : vector<16x8x1xf32> to vector<16x8x16xf32>
    %94 = arith.mulf %93, %69 : vector<16x8x16xf32>
    %cst_30 = arith.constant dense<0.000000e+00> : vector<16x16xf32>
    %95 = vector.multi_reduction <add>, %94, %cst_30 [1] : vector<16x8x16xf32> to vector<16x16xf32>
    %96 = vector.shape_cast %90 : vector<2x8x16xf32> to vector<16x16xf32>
    %97 = arith.addf %96, %95 : vector<16x16xf32>
    %98 = tpu.concatenate %68, %97 in 1 : vector<16x16xf32>, vector<16x16xf32> -> vector<16x32xf32>
    %c0_31 = arith.constant 0 : index
    %c0_32 = arith.constant 0 : index
    %c0_33 = arith.constant 0 : index
    %99 = vector.load %arg7[%c0_31, %c0_32, %c0_33] : memref<2x3x32xf32, #tpu.memory_space<vmem>>, vector<1x3x32xf32>
    %100 = vector.shape_cast %99 : vector<1x3x32xf32> to vector<3x32xf32>
    %c0_34 = arith.constant 0 : index
    %c0_35 = arith.constant 0 : index
    %c0_36 = arith.constant 0 : index
    %101 = vector.load %arg6[%c0_34, %c0_35, %c0_36] : memref<2x32x32xf32, #tpu.memory_space<vmem>>, vector<1x32x32xf32>
    %102 = vector.shape_cast %101 : vector<1x32x32xf32> to vector<32x32xf32>
    %cst_37 = arith.constant dense<0.000000e+00> : vector<16x32xf32>
    %103 = tpu.matmul %98, %102, %cst_37 {dimension_numbers = #tpu.dot_dimension_numbers<[1], [0], [0], [1], [0, 0, 1, 1], [], []>} : vector<16x32xf32>, vector<32x32xf32>, vector<16x32xf32> -> vector<16x32xf32>
    %104 = vector.extract_strided_slice %100 {offsets = [0, 0], sizes = [1, 32], strides = [1, 1]} : vector<3x32xf32> to vector<1x32xf32>
    %105 = vector.broadcast %104 : vector<1x32xf32> to vector<16x32xf32>
    %106 = arith.addf %103, %105 : vector<16x32xf32>
    %107 = vector.extract_strided_slice %100 {offsets = [1, 0], sizes = [1, 32], strides = [1, 1]} : vector<3x32xf32> to vector<1x32xf32>
    %108 = vector.broadcast %107 : vector<1x32xf32> to vector<16x32xf32>
    %109 = arith.mulf %106, %108 : vector<16x32xf32>
    %110 = vector.extract_strided_slice %100 {offsets = [2, 0], sizes = [1, 32], strides = [1, 1]} : vector<3x32xf32> to vector<1x32xf32>
    %111 = vector.broadcast %110 : vector<1x32xf32> to vector<16x32xf32>
    %112 = arith.mulf %0, %111 : vector<16x32xf32>
    %113 = arith.addf %109, %112 : vector<16x32xf32>
    %cst_38 = arith.constant dense<0.000000e+00> : vector<16xf32>
    %114 = vector.multi_reduction <add>, %113, %cst_38 [1] : vector<16x32xf32> to vector<16xf32>
    %115 = vector.shape_cast %114 : vector<16xf32> to vector<16x1xf32>
    %116 = arith.negf %115 : vector<16x1xf32>
    %117 = math.exp %116 : vector<16x1xf32>
    %cst_39 = arith.constant 1.000000e+00 : f32
    %118 = vector.broadcast %cst_39 : f32 to vector<16x1xf32>
    %119 = arith.addf %118, %117 : vector<16x1xf32>
    %120 = arith.divf %118, %119 : vector<16x1xf32>
    %121 = vector.broadcast %120 : vector<16x1xf32> to vector<16x32xf32>
    %122 = arith.mulf %106, %121 : vector<16x32xf32>
    %cst_40 = arith.constant 1.000000e+00 : f32
    %123 = vector.broadcast %cst_40 : f32 to vector<16x1xf32>
    %124 = arith.subf %123, %120 : vector<16x1xf32>
    %125 = vector.broadcast %124 : vector<16x1xf32> to vector<16x32xf32>
    %126 = arith.mulf %0, %125 : vector<16x32xf32>
    %127 = arith.addf %122, %126 : vector<16x32xf32>
    %cst_41 = arith.constant dense<0.000000e+00> : vector<16xf32>
    %128 = vector.multi_reduction <add>, %127, %cst_41 [1] : vector<16x32xf32> to vector<16xf32>
    %129 = vector.shape_cast %128 : vector<16xf32> to vector<16x1xf32>
    %cst_42 = arith.constant 3.200000e+01 : f32
    %130 = vector.broadcast %cst_42 : f32 to vector<16x1xf32>
    %131 = arith.divf %129, %130 : vector<16x1xf32>
    %132 = vector.broadcast %131 : vector<16x1xf32> to vector<16x32xf32>
    %133 = arith.subf %127, %132 : vector<16x32xf32>
    %134 = arith.mulf %133, %133 : vector<16x32xf32>
    %cst_43 = arith.constant dense<0.000000e+00> : vector<16xf32>
    %135 = vector.multi_reduction <add>, %134, %cst_43 [1] : vector<16x32xf32> to vector<16xf32>
    %136 = vector.shape_cast %135 : vector<16xf32> to vector<16x1xf32>
    %cst_44 = arith.constant 3.200000e+01 : f32
    %137 = vector.broadcast %cst_44 : f32 to vector<16x1xf32>
    %138 = arith.divf %136, %137 : vector<16x1xf32>
    %139 = vector.broadcast %131 : vector<16x1xf32> to vector<16x32xf32>
    %140 = arith.subf %127, %139 : vector<16x32xf32>
    %cst_45 = arith.constant 9.99999974E-6 : f32
    %141 = vector.broadcast %cst_45 : f32 to vector<16x1xf32>
    %142 = arith.addf %138, %141 : vector<16x1xf32>
    %143 = math.rsqrt %142 : vector<16x1xf32>
    %144 = vector.broadcast %143 : vector<16x1xf32> to vector<16x32xf32>
    %145 = arith.mulf %140, %144 : vector<16x32xf32>
    %c1 = arith.constant 1 : index
    %c0_46 = arith.constant 0 : index
    %c0_47 = arith.constant 0 : index
    %146 = vector.load %arg2[%c1, %c0_46, %c0_47] : memref<2x32x96xf32, #tpu.memory_space<vmem>>, vector<1x32x96xf32>
    %147 = vector.shape_cast %146 : vector<1x32x96xf32> to vector<32x96xf32>
    %cst_48 = arith.constant dense<0.000000e+00> : vector<16x96xf32>
    %148 = tpu.matmul %145, %147, %cst_48 {dimension_numbers = #tpu.dot_dimension_numbers<[1], [0], [0], [1], [0, 0, 1, 1], [], []>} : vector<16x32xf32>, vector<32x96xf32>, vector<16x96xf32> -> vector<16x96xf32>
    %c1_49 = arith.constant 1 : index
    %c0_50 = arith.constant 0 : index
    %c0_51 = arith.constant 0 : index
    %149 = vector.load %arg3[%c1_49, %c0_50, %c0_51] : memref<2x1x96xf32, #tpu.memory_space<vmem>>, vector<1x1x96xf32>
    %150 = vector.shape_cast %149 : vector<1x1x96xf32> to vector<1x96xf32>
    %151 = vector.broadcast %150 : vector<1x96xf32> to vector<16x96xf32>
    %152 = arith.addf %148, %151 : vector<16x96xf32>
    %153 = vector.extract_strided_slice %152 {offsets = [0, 0], sizes = [16, 32], strides = [1, 1]} : vector<16x96xf32> to vector<16x32xf32>
    %154 = vector.shape_cast %153 : vector<16x32xf32> to vector<2x8x32xf32>
    %155 = vector.extract_strided_slice %152 {offsets = [0, 32], sizes = [16, 32], strides = [1, 1]} : vector<16x96xf32> to vector<16x32xf32>
    %156 = vector.shape_cast %155 : vector<16x32xf32> to vector<2x8x32xf32>
    %157 = vector.extract_strided_slice %152 {offsets = [0, 64], sizes = [16, 32], strides = [1, 1]} : vector<16x96xf32> to vector<16x32xf32>
    %158 = vector.shape_cast %157 : vector<16x32xf32> to vector<2x8x32xf32>
    %159 = vector.extract_strided_slice %7 {offsets = [0, 0, 32], sizes = [16, 8, 32], strides = [1, 1, 1]} : vector<16x8x64xf32> to vector<16x8x32xf32>
    %160 = vector.extract_strided_slice %159 {offsets = [0, 0, 0], sizes = [16, 8, 16], strides = [1, 1, 1]} : vector<16x8x32xf32> to vector<16x8x16xf32>
    %161 = vector.extract_strided_slice %154 {offsets = [0, 0, 0], sizes = [2, 8, 16], strides = [1, 1, 1]} : vector<2x8x32xf32> to vector<2x8x16xf32>
    %162 = vector.extract_strided_slice %156 {offsets = [0, 0, 0], sizes = [2, 8, 16], strides = [1, 1, 1]} : vector<2x8x32xf32> to vector<2x8x16xf32>
    "tpu.trace_start"() <{level = 10 : i32, message = "bid,bjd->bij"}> : () -> ()
    %cst_52 = arith.constant dense<0.000000e+00> : vector<2x8x8xf32>
    %163 = tpu.matmul %161, %162, %cst_52 {dimension_numbers = #tpu.dot_dimension_numbers<[2], [2], [1], [1], [0, 0, 0, 1, 1, 1], [0], [0]>} : vector<2x8x16xf32>, vector<2x8x16xf32>, vector<2x8x8xf32> -> vector<2x8x8xf32>
    "tpu.trace_stop"() : () -> ()
    %164 = vector.extract_strided_slice %153 {offsets = [0, 0], sizes = [16, 16], strides = [1, 1]} : vector<16x32xf32> to vector<16x16xf32>
    %165 = vector.shape_cast %164 : vector<16x16xf32> to vector<16x1x16xf32>
    %166 = vector.broadcast %165 : vector<16x1x16xf32> to vector<16x8x16xf32>
    %167 = arith.mulf %166, %160 : vector<16x8x16xf32>
    %cst_53 = arith.constant dense<0.000000e+00> : vector<16x8xf32>
    %168 = vector.multi_reduction <add>, %167, %cst_53 [2] : vector<16x8x16xf32> to vector<16x8xf32>
    %169 = vector.shape_cast %168 : vector<16x8xf32> to vector<2x8x8xf32>
    %170 = arith.addf %163, %169 : vector<2x8x8xf32>
    %cst_54 = arith.constant dense<0xFF800000> : vector<2x8xf32>
    %171 = vector.multi_reduction <maximumf>, %170, %cst_54 [2] : vector<2x8x8xf32> to vector<2x8xf32>
    %172 = vector.shape_cast %171 : vector<2x8xf32> to vector<2x8x1xf32>
    %173 = vector.broadcast %172 : vector<2x8x1xf32> to vector<2x8x8xf32>
    %174 = arith.subf %170, %173 : vector<2x8x8xf32>
    %175 = math.exp %174 : vector<2x8x8xf32>
    %cst_55 = arith.constant dense<0.000000e+00> : vector<2x8xf32>
    %176 = vector.multi_reduction <add>, %175, %cst_55 [2] : vector<2x8x8xf32> to vector<2x8xf32>
    %177 = vector.shape_cast %176 : vector<2x8xf32> to vector<2x8x1xf32>
    %178 = vector.broadcast %177 : vector<2x8x1xf32> to vector<2x8x8xf32>
    %179 = arith.divf %175, %178 : vector<2x8x8xf32>
    %180 = vector.extract_strided_slice %158 {offsets = [0, 0, 0], sizes = [2, 8, 16], strides = [1, 1, 1]} : vector<2x8x32xf32> to vector<2x8x16xf32>
    "tpu.trace_start"() <{level = 10 : i32, message = "bij,bjd->bid"}> : () -> ()
    %cst_56 = arith.constant dense<0.000000e+00> : vector<2x8x16xf32>
    %181 = tpu.matmul %179, %180, %cst_56 {dimension_numbers = #tpu.dot_dimension_numbers<[2], [1], [1], [2], [0, 0, 0, 1, 1, 2], [0], [0]>} : vector<2x8x8xf32>, vector<2x8x16xf32>, vector<2x8x16xf32> -> vector<2x8x16xf32>
    "tpu.trace_stop"() : () -> ()
    %182 = vector.shape_cast %179 : vector<2x8x8xf32> to vector<16x8xf32>
    %183 = vector.shape_cast %182 : vector<16x8xf32> to vector<16x8x1xf32>
    %184 = vector.broadcast %183 : vector<16x8x1xf32> to vector<16x8x16xf32>
    %185 = arith.mulf %184, %160 : vector<16x8x16xf32>
    %cst_57 = arith.constant dense<0.000000e+00> : vector<16x16xf32>
    %186 = vector.multi_reduction <add>, %185, %cst_57 [1] : vector<16x8x16xf32> to vector<16x16xf32>
    %187 = vector.shape_cast %181 : vector<2x8x16xf32> to vector<16x16xf32>
    %188 = arith.addf %187, %186 : vector<16x16xf32>
    %189 = vector.extract_strided_slice %159 {offsets = [0, 0, 16], sizes = [16, 8, 16], strides = [1, 1, 1]} : vector<16x8x32xf32> to vector<16x8x16xf32>
    %190 = vector.extract_strided_slice %154 {offsets = [0, 0, 16], sizes = [2, 8, 16], strides = [1, 1, 1]} : vector<2x8x32xf32> to vector<2x8x16xf32>
    %191 = vector.extract_strided_slice %156 {offsets = [0, 0, 16], sizes = [2, 8, 16], strides = [1, 1, 1]} : vector<2x8x32xf32> to vector<2x8x16xf32>
    "tpu.trace_start"() <{level = 10 : i32, message = "bid,bjd->bij"}> : () -> ()
    %cst_58 = arith.constant dense<0.000000e+00> : vector<2x8x8xf32>
    %192 = tpu.matmul %190, %191, %cst_58 {dimension_numbers = #tpu.dot_dimension_numbers<[2], [2], [1], [1], [0, 0, 0, 1, 1, 1], [0], [0]>} : vector<2x8x16xf32>, vector<2x8x16xf32>, vector<2x8x8xf32> -> vector<2x8x8xf32>
    "tpu.trace_stop"() : () -> ()
    %193 = vector.extract_strided_slice %153 {offsets = [0, 16], sizes = [16, 16], strides = [1, 1]} : vector<16x32xf32> to vector<16x16xf32>
    %194 = vector.shape_cast %193 : vector<16x16xf32> to vector<16x1x16xf32>
    %195 = vector.broadcast %194 : vector<16x1x16xf32> to vector<16x8x16xf32>
    %196 = arith.mulf %195, %189 : vector<16x8x16xf32>
    %cst_59 = arith.constant dense<0.000000e+00> : vector<16x8xf32>
    %197 = vector.multi_reduction <add>, %196, %cst_59 [2] : vector<16x8x16xf32> to vector<16x8xf32>
    %198 = vector.shape_cast %197 : vector<16x8xf32> to vector<2x8x8xf32>
    %199 = arith.addf %192, %198 : vector<2x8x8xf32>
    %cst_60 = arith.constant dense<0xFF800000> : vector<2x8xf32>
    %200 = vector.multi_reduction <maximumf>, %199, %cst_60 [2] : vector<2x8x8xf32> to vector<2x8xf32>
    %201 = vector.shape_cast %200 : vector<2x8xf32> to vector<2x8x1xf32>
    %202 = vector.broadcast %201 : vector<2x8x1xf32> to vector<2x8x8xf32>
    %203 = arith.subf %199, %202 : vector<2x8x8xf32>
    %204 = math.exp %203 : vector<2x8x8xf32>
    %cst_61 = arith.constant dense<0.000000e+00> : vector<2x8xf32>
    %205 = vector.multi_reduction <add>, %204, %cst_61 [2] : vector<2x8x8xf32> to vector<2x8xf32>
    %206 = vector.shape_cast %205 : vector<2x8xf32> to vector<2x8x1xf32>
    %207 = vector.broadcast %206 : vector<2x8x1xf32> to vector<2x8x8xf32>
    %208 = arith.divf %204, %207 : vector<2x8x8xf32>
    %209 = vector.extract_strided_slice %158 {offsets = [0, 0, 16], sizes = [2, 8, 16], strides = [1, 1, 1]} : vector<2x8x32xf32> to vector<2x8x16xf32>
    "tpu.trace_start"() <{level = 10 : i32, message = "bij,bjd->bid"}> : () -> ()
    %cst_62 = arith.constant dense<0.000000e+00> : vector<2x8x16xf32>
    %210 = tpu.matmul %208, %209, %cst_62 {dimension_numbers = #tpu.dot_dimension_numbers<[2], [1], [1], [2], [0, 0, 0, 1, 1, 2], [0], [0]>} : vector<2x8x8xf32>, vector<2x8x16xf32>, vector<2x8x16xf32> -> vector<2x8x16xf32>
    "tpu.trace_stop"() : () -> ()
    %211 = vector.shape_cast %208 : vector<2x8x8xf32> to vector<16x8xf32>
    %212 = vector.shape_cast %211 : vector<16x8xf32> to vector<16x8x1xf32>
    %213 = vector.broadcast %212 : vector<16x8x1xf32> to vector<16x8x16xf32>
    %214 = arith.mulf %213, %189 : vector<16x8x16xf32>
    %cst_63 = arith.constant dense<0.000000e+00> : vector<16x16xf32>
    %215 = vector.multi_reduction <add>, %214, %cst_63 [1] : vector<16x8x16xf32> to vector<16x16xf32>
    %216 = vector.shape_cast %210 : vector<2x8x16xf32> to vector<16x16xf32>
    %217 = arith.addf %216, %215 : vector<16x16xf32>
    %218 = tpu.concatenate %188, %217 in 1 : vector<16x16xf32>, vector<16x16xf32> -> vector<16x32xf32>
    %c1_64 = arith.constant 1 : index
    %c0_65 = arith.constant 0 : index
    %c0_66 = arith.constant 0 : index
    %219 = vector.load %arg7[%c1_64, %c0_65, %c0_66] : memref<2x3x32xf32, #tpu.memory_space<vmem>>, vector<1x3x32xf32>
    %220 = vector.shape_cast %219 : vector<1x3x32xf32> to vector<3x32xf32>
    %c1_67 = arith.constant 1 : index
    %c0_68 = arith.constant 0 : index
    %c0_69 = arith.constant 0 : index
    %221 = vector.load %arg6[%c1_67, %c0_68, %c0_69] : memref<2x32x32xf32, #tpu.memory_space<vmem>>, vector<1x32x32xf32>
    %222 = vector.shape_cast %221 : vector<1x32x32xf32> to vector<32x32xf32>
    %cst_70 = arith.constant dense<0.000000e+00> : vector<16x32xf32>
    %223 = tpu.matmul %218, %222, %cst_70 {dimension_numbers = #tpu.dot_dimension_numbers<[1], [0], [0], [1], [0, 0, 1, 1], [], []>} : vector<16x32xf32>, vector<32x32xf32>, vector<16x32xf32> -> vector<16x32xf32>
    %224 = vector.extract_strided_slice %220 {offsets = [0, 0], sizes = [1, 32], strides = [1, 1]} : vector<3x32xf32> to vector<1x32xf32>
    %225 = vector.broadcast %224 : vector<1x32xf32> to vector<16x32xf32>
    %226 = arith.addf %223, %225 : vector<16x32xf32>
    %227 = vector.extract_strided_slice %220 {offsets = [1, 0], sizes = [1, 32], strides = [1, 1]} : vector<3x32xf32> to vector<1x32xf32>
    %228 = vector.broadcast %227 : vector<1x32xf32> to vector<16x32xf32>
    %229 = arith.mulf %226, %228 : vector<16x32xf32>
    %230 = vector.extract_strided_slice %220 {offsets = [2, 0], sizes = [1, 32], strides = [1, 1]} : vector<3x32xf32> to vector<1x32xf32>
    %231 = vector.broadcast %230 : vector<1x32xf32> to vector<16x32xf32>
    %232 = arith.mulf %127, %231 : vector<16x32xf32>
    %233 = arith.addf %229, %232 : vector<16x32xf32>
    %cst_71 = arith.constant dense<0.000000e+00> : vector<16xf32>
    %234 = vector.multi_reduction <add>, %233, %cst_71 [1] : vector<16x32xf32> to vector<16xf32>
    %235 = vector.shape_cast %234 : vector<16xf32> to vector<16x1xf32>
    %236 = arith.negf %235 : vector<16x1xf32>
    %237 = math.exp %236 : vector<16x1xf32>
    %cst_72 = arith.constant 1.000000e+00 : f32
    %238 = vector.broadcast %cst_72 : f32 to vector<16x1xf32>
    %239 = arith.addf %238, %237 : vector<16x1xf32>
    %240 = arith.divf %238, %239 : vector<16x1xf32>
    %241 = vector.broadcast %240 : vector<16x1xf32> to vector<16x32xf32>
    %242 = arith.mulf %226, %241 : vector<16x32xf32>
    %cst_73 = arith.constant 1.000000e+00 : f32
    %243 = vector.broadcast %cst_73 : f32 to vector<16x1xf32>
    %244 = arith.subf %243, %240 : vector<16x1xf32>
    %245 = vector.broadcast %244 : vector<16x1xf32> to vector<16x32xf32>
    %246 = arith.mulf %127, %245 : vector<16x32xf32>
    %247 = arith.addf %242, %246 : vector<16x32xf32>
    %c0_74 = arith.constant 0 : index
    %c0_75 = arith.constant 0 : index
    %248 = vector.load %arg8[%c0_74, %c0_75] : memref<16x32xf32, #tpu.memory_space<vmem>>, vector<16x32xf32>
    tpu.vector_store %arg8[%c0_74, %c0_75], %247 {strides = array<i32>} : memref<16x32xf32, #tpu.memory_space<vmem>>, vector<16x32xf32>,
    return
  }
}

</mosaic_0001>

<bundles_post_ra>
// kernel: graph_transformer.1
= control target key start
LH: loop header
LB: loop body
LE: loop exit
PB: predicated region body
PF: predicated region fallthrough
CT: control target
= control target key end

     0   :  { %13 = vsyncpa [#allocation3], 0  ;;  %s6306_s0 = inlined_call_operand.hbm [shape: f32[16,32], index: 0, kind: input, shape index: {}]   ;;  %s6307_s1 = inlined_call_operand.hbm [shape: f32[128,32], index: 1, kind: input, shape index: {}]   ;;  %s6308_s2 = inlined_call_operand.hbm [shape: f32[2,32,96], index: 2, kind: input, shape index: {}]   ;;  %s6309_s3 = inlined_call_operand.hbm [shape: f32[2,1,96], index: 3, kind: input, shape index: {}]   ;;  %s6310_s4 = inlined_call_operand.vmem [shape: f32[32,64], index: 4, kind: input, shape index: {}]   ;;  %s6311_s5 = inlined_call_operand.vmem [shape: f32[1,64], index: 5, kind: input, shape index: {}]   ;;  %s6312_s6 = inlined_call_operand.hbm [shape: f32[2,32,32], index: 6, kind: input, shape index: {}]   ;;  %s6313_s7 = inlined_call_operand.vmem [shape: f32[2,3,32], index: 7, kind: input, shape index: {}]   ;;  %s6314_s8 = inlined_call_operand.hbm [shape: f32[16,32], index: 8, kind: output, shape index: {}]  }
   0x1   :  { %14 = vsyncpa [#allocation6], 0 }
   0x2   :  { %15 = vsyncpa [#allocation9], 0 }
   0x3   :  { %16 = vsyncpa [#allocation4], 0  ;;  %s5001_s27 = smov [#allocation5]   ;;  %s5002_s29 = smov [#allocation8]  }
   0x4   :  { %s34_s28 = sshll.u32 %s5001_s27, 4  ;;  %s58_s30 = sshll.u32 %s5002_s29, 4  ;;  %s35_s28 = int_to_ptr.vmem [resolvable:$true] %s34_s28  ;;  %s5064_s30 = int_to_ptr.vmem [resolvable:$true] %s58_s30 }
   0x5   :  { %s4861_s11 = scalar_lea.hbm %s6307_s1, 2048 }
   0x6   :  { %p4862_p0 = scmp.ne.s32.totalorder %s6307_s1, %s4861_s11  ;;  %p4865_p1 = scmp.lt.u32.totalorder %s4861_s11, %s6307_s1 }
   0x8   :  { %p4867_p2 = pnand %p4865_p1, %p4862_p0 }
   0xa   :  { %4870 = shalt.err (!%p4867_p2)
}
   0xb   :  { %s4871_s16 = scalar_lea.vmem %s35_s28, 2048  ;;  %p4876_p4 = scmp.lt.s32.totalorder %s35_s28, %s35_s28 }
   0xc   :  { %p4872_p3 = scmp.ne.s32.totalorder %s35_s28, %s4871_s16  ;;  %p4877_p5 = scmp.lt.s32.totalorder %s4871_s16, %s4871_s16 }
   0xe   :  { %p4878_p6 = por %p4877_p5, %p4876_p4 }
  0x10   :  { %p4879_p7 = pnand %p4878_p6, %p4872_p3 }
  0x12   :  { %4882 = shalt.err (!%p4879_p7)
}
  0x13   :  { %s5003_s17 = smov 128   ;;  %s5004_s18 = smov 8  }
  0x14   :  { %40 = dma.hbm_to_vmem [thread:$0]  %s6307_s1, 2048, %s35_s28, [#allocation6], %s5003_s17, %s5003_s17, %s5004_s18  }
  0x15   :  { %s4883_s23 = scalar_lea.hbm %s6309_s3, 32 }
  0x16   :  { %p4884_p8 = scmp.ne.s32.totalorder %s6309_s3, %s4883_s23  ;;  %p4887_p9 = scmp.lt.u32.totalorder %s4883_s23, %s6309_s3 }
  0x18   :  { %p4889_p10 = pnand %p4887_p9, %p4884_p8 }
  0x1a   :  { %4892 = shalt.err (!%p4889_p10)
}
  0x1b   :  { %s4893_s29 = scalar_lea.vmem %s5064_s30, 32  ;;  %p4898_p12 = scmp.lt.s32.totalorder %s5064_s30, %s5064_s30 }
  0x1c   :  { %p4894_p11 = scmp.ne.s32.totalorder %s5064_s30, %s4893_s29  ;;  %p4899_p13 = scmp.lt.s32.totalorder %s4893_s29, %s4893_s29 }
  0x1e   :  { %p4900_p0 = por %p4899_p13, %p4898_p12 }
  0x20   :  { %p4901_p1 = pnand %p4900_p0, %p4894_p11 }
  0x22   :  { %4904 = shalt.err (!%p4901_p1)
}
  0x23   :  { %s5005_s1 = smov 16   ;;  %s5006_s28 = smov 1  }
  0x24   :  { %64 = dma.hbm_to_vmem [thread:$0]  %s6309_s3, 32, %s5064_s30, [#allocation9], %s5005_s1, %s5005_s1, %s5006_s28  }
  0x25   :  { %s5007_s11 = smov [#allocation2]   ;;  %s5008_s13 = smov [#allocation7]  }
  0x26   :  { %s22_s12 = sshll.u32 %s5007_s11, 4  ;;  %s46_s14 = sshll.u32 %s5008_s13, 4  ;;  %s23_s12 = int_to_ptr.vmem [resolvable:$true] %s22_s12  ;;  %s5100_s14 = int_to_ptr.vmem [resolvable:$true] %s46_s14 }
  0x27   :  { %s4905_s19 = scalar_lea.hbm %s6306_s0, 256 }
  0x28   :  { %p4906_p2 = scmp.ne.s32.totalorder %s6306_s0, %s4905_s19  ;;  %p4909_p3 = scmp.lt.u32.totalorder %s4905_s19, %s6306_s0 }
  0x2a   :  { %p4911_p4 = pnand %p4909_p3, %p4906_p2 }
  0x2c   :  { %4914 = shalt.err (!%p4911_p4)
}
  0x2d   :  { %s4915_s3 = scalar_lea.vmem %s23_s12, 256  ;;  %p4920_p6 = scmp.lt.s32.totalorder %s23_s12, %s23_s12 }
  0x2e   :  { %p4916_p5 = scmp.ne.s32.totalorder %s23_s12, %s4915_s3  ;;  %p4921_p7 = scmp.lt.s32.totalorder %s4915_s3, %s4915_s3 }
  0x30   :  { %p4922_p8 = por %p4921_p7, %p4920_p6 }
  0x32   :  { %p4923_p9 = pnand %p4922_p8, %p4916_p5 }
  0x34   :  { %4926 = shalt.err (!%p4923_p9)
}
  0x35   :  { %28 = dma.hbm_to_vmem [thread:$0]  %s6306_s0, 256, %s23_s12, [#allocation3], %s5003_s17, %s5003_s17, %s5004_s18  }
  0x36   :  { %s4927_s27 = scalar_lea.hbm %s6308_s2, 1024 }
  0x37   :  { %p4928_p10 = scmp.ne.s32.totalorder %s6308_s2, %s4927_s27  ;;  %p4931_p11 = scmp.lt.u32.totalorder %s4927_s27, %s6308_s2 }
  0x39   :  { %p4933_p12 = pnand %p4931_p11, %p4928_p10 }
  0x3b   :  { %4936 = shalt.err (!%p4933_p12)
}
  0x3c   :  { %s4937_s11 = scalar_lea.vmem %s5100_s14, 1024  ;;  %p4942_p0 = scmp.lt.s32.totalorder %s5100_s14, %s5100_s14 }
  0x3d   :  { %p4938_p13 = scmp.ne.s32.totalorder %s5100_s14, %s4937_s11  ;;  %p4943_p1 = scmp.lt.s32.totalorder %s4937_s11, %s4937_s11 }
  0x3f   :  { %p4944_p2 = por %p4943_p1, %p4942_p0 }
  0x41   :  { %p4945_p3 = pnand %p4944_p2, %p4938_p13 }
  0x43   :  { %4948 = shalt.err (!%p4945_p3)
}
  0x44   :  { %52 = dma.hbm_to_vmem [thread:$0]  %s6308_s2, 1024, %s5100_s14, [#allocation6], %s5003_s17, %s5003_s17, %s5004_s18  }
  0x45   :  { %s5009_s13 = smov [#allocation10]   ;;  %s4949_s20 = scalar_lea.hbm %s6312_s6, 1024 }
  0x46   :  { %s74_s15 = sshll.u32 %s5009_s13, 4  ;;  %p4950_p4 = scmp.ne.s32.totalorder %s6312_s6, %s4949_s20  ;;  %s75_s15 = int_to_ptr.vmem [resolvable:$true] %s74_s15 }
  0x47   :  { %p4953_p5 = scmp.lt.u32.totalorder %s4949_s20, %s6312_s6 }
  0x49   :  { %p4955_p6 = pnand %p4953_p5, %p4950_p4 }
  0x4b   :  { %4958 = shalt.err (!%p4955_p6)
}
  0x4c   :  { %s4959_s30 = scalar_lea.vmem %s75_s15, 1024  ;;  %p4964_p8 = scmp.lt.s32.totalorder %s75_s15, %s75_s15 }
  0x4d   :  { %p4960_p7 = scmp.ne.s32.totalorder %s75_s15, %s4959_s30  ;;  %p4965_p9 = scmp.lt.s32.totalorder %s4959_s30, %s4959_s30 }
  0x4f   :  { %p4966_p10 = por %p4965_p9, %p4964_p8 }
  0x51   :  { %p4967_p11 = pnand %p4966_p10, %p4960_p7 }
  0x53   :  { %4970 = shalt.err (!%p4967_p11)
}
  0x54   :  { %80 = dma.hbm_to_vmem [thread:$0]  %s6312_s6, 1024, %s75_s15, [#allocation9], %s5003_s17, %s5003_s17, %s5004_s18  }
  0x55   :  { %4993 = dma.done.wait [#allocation3], 256  }
  0x56   :  { %4994 = vsyncadd [#allocation3], 4294967040 }
  0x57   :  { %4995 = dma.done.wait [#allocation6], 3072  }
  0x58   :  { %4996 = vsyncadd [#allocation6], 4294964224 }
  0x59   :  { %4997 = dma.done.wait [#allocation9], 1056  }
  0x5a   :  { %4998 = vsyncadd [#allocation9], 4294966240  ;;  %vm127_vm0 = vcmask 261120   ;;  %v98_v0 = vld [vmem:[#allocation2] sm:$0xff]  ;;  %v99_v1 = vld [vmem:[#allocation2 + $0x8] sm:$0xff]  ;;  %vm5011_vm1 = vmmov 0  }
  0x5b   :  { %v321_v2 = vsel %vm127_vm0, %v98_v0, 0.0  ;;  %v324_v3 = vsel %vm127_vm0, %v99_v1, 0.0  ;;  %v116_v4 = vld [vmem:[%s6310_s4] sm:$0xff]  ;;  %v117_v5 = vld [vmem:[%s6310_s4 + $0x8] sm:$0xff]  ;;  %v118_v6 = vld [vmem:[%s6310_s4 + $0x10] sm:$0xff]  ;;  %vm636_vm2 = vcmask 130048  }
  0x5c   :  { %322 = vadd.xlane.f32.xlu0 %v321_v2  ;;  %v4745_v7 = vpack.c.bf16 %v117_v5, %v116_v4  ;;  %v119_v8 = vld [vmem:[%s6310_s4 + $0x18] sm:$0xff]  ;;  %v100_v20 = vld [vmem:[#allocation5] sm:$0xff]  ;;  %v102_v22 = vld [vmem:[#allocation5 + $0x10] sm:$0xff]  ;;  %v6315_v4 = vmov 0.0   ;;  %s5012_s4 = smov 96   ;;  %vm729_vm3 = vcmask 1041409  }
  0x5d   :  { %v4749_v9 = vpack.c.bf16 %v119_v8, %v118_v6  ;;  %4597 = vmatprep.mubr.msk.f32.mxu0 %vm127_vm0, %v100_v20  ;;  %v101_v21 = vld [vmem:[#allocation5 + $0x8] sm:$0xff]  ;;  %v103_v23 = vld [vmem:[#allocation5 + $0x18] sm:$0xff]  ;;  %v104_v24 = vld [vmem:[#allocation5 + $0x20] sm:$0xff]  ;;  %vm731_vm4 = vcmask 1042434   ;;  %vm733_vm5 = vcmask 1043459   ;;  %vm735_vm6 = vcmask 1044484  }
  0x5e   :  { %4746 = vmatprep.subr.bf16.mxu0 %v4745_v7  ;;  %v105_v25 = vld [vmem:[#allocation5 + $0x28] sm:$0xff]  ;;  %v106_v26 = vld [vmem:[#allocation5 + $0x30] sm:$0xff]  ;;  %v348_v27 = vld [vmem:[#allocation7] sm:$0xff]  ;;  %vm737_vm7 = vcmask 1045509   ;;  %vm739_vm8 = vcmask 1046534   ;;  %vm741_vm9 = vcmask 1047559  }
  0x5f   :  { %4748 = vmatpush3.bf16.msra.mxu0 %v4745_v7  ;;  %v349_v28 = vld [vmem:[#allocation7 + $0x8] sm:$0xff]  ;;  %v350_v30 = vld [vmem:[#allocation7 + $0x10] sm:$0xff]  ;;  %v351_v31 = vld [vmem:[#allocation7 + $0x18] sm:$0xff]  ;;  %vm942_vm10 = vcmask 64512   ;;  %s5015_s0 = smov 80   ;;  %s5016_s12 = smov 112  }
  0x60   :  { %325 = vadd.xlane.f32.xlu0 %v324_v3  ;;  %4750 = vmatprep.subr.bf16.mxu0 %v4749_v9  ;;  %v4753_v29 = vpack.c.bf16 %v349_v28, %v348_v27  ;;  %v107_v32 = vld [vmem:[#allocation5 + $0x38] sm:$0xff]  ;;  %v4757_v33 = vpack.c.bf16 %v351_v31, %v350_v30  ;;  %v108_v34 = vld [vmem:[#allocation5 + $0x40] sm:$0xff]  ;;  %v109_v35 = vld [vmem:[#allocation5 + $0x48] sm:$0xff]  ;;  %s5017_s13 = smov 48   ;;  %vm2057_vm11 = vcmask 261248   ;;  %vm4143_vm12 = vcmask 523648  }
  0x61   :  { %v110_v36 = vld [vmem:[#allocation5 + $0x50] sm:$0xff]  ;;  %v111_v37 = vld [vmem:[#allocation5 + $0x58] sm:$0xff]  ;;  %v112_v38 = vld [vmem:[#allocation5 + $0x60] sm:$0xff]  ;;  %vm3326_vm13 = vcmask 392448  }
  0x62   :  { %4754 = vmatprep.subr.bf16.mxu1 %v4753_v29  ;;  %v113_v39 = vld [vmem:[#allocation5 + $0x68] sm:$0xff]  ;;  %v114_v40 = vld [vmem:[#allocation5 + $0x70] sm:$0xff]  ;;  %v115_v41 = vld [vmem:[#allocation5 + $0x78] sm:$0xff] }
  0x63   :  { %4752 = vmatpush3.bf16.msra.mxu0 %v4749_v9  ;;  %4756 = vmatpush3.bf16.msra.mxu1 %v4753_v29  ;;  %v4474_v5 = vld [vmem:[#allocation8] ss:$0 sm:$0xff] }
  0x64   :  { %4758 = vmatprep.subr.bf16.mxu1 %v4757_v33  ;;  %4667 = vmatprep.subr.mxu0 %v6315_v4 }
  0x66   :  { %4598 = vmatmul.mubr.msk.f32.vlgmr.msra.gmra.mrb[0].mxu0 %vm127_vm0, %v101_v21 }
  0x67   :  { %4600 = vmatprep.mubr.msk.f32.mxu0 %vm127_vm0, %v102_v22  ;;  %4760 = vmatpush3.bf16.msra.mxu1 %v4757_v33 }
  0x68   :  { %4632 = vmatprep.subr.mxu1 %v6315_v4 }
  0x6a   :  { %4601 = vmatmul.mubr.msk.f32.gmra.mrb[2].mxu0 %vm127_vm0, %v103_v23 }
  0x6b   :  { %4603 = vmatprep.mubr.msk.f32.mxu0 %vm127_vm0, %v104_v24 }
  0x6e   :  { %4604 = vmatmul.mubr.msk.f32.gmra.mrb[4].mxu0 %vm127_vm0, %v105_v25 }
  0x6f   :  { %4606 = vmatprep.mubr.msk.f32.mxu0 %vm127_vm0, %v106_v26 }
  0x72   :  { %4607 = vmatmul.mubr.msk.f32.gmra.mrb[6].mxu0 %vm127_vm0, %v107_v32 }
  0x73   :  { %4609 = vmatprep.mubr.msk.f32.mxu0 %vm127_vm0, %v108_v34 }
  0x76   :  { %4610 = vmatmul.mubr.msk.f32.gmra.mrb[8].mxu0 %vm127_vm0, %v109_v35 }
  0x77   :  { %4612 = vmatprep.mubr.msk.f32.mxu0 %vm127_vm0, %v110_v36 }
  0x7a   :  { %4613 = vmatmul.mubr.msk.f32.gmra.mrb[10].mxu0 %vm127_vm0, %v111_v37 }
  0x7b   :  { %4615 = vmatprep.mubr.msk.f32.mxu0 %vm127_vm0, %v112_v38 }
  0x7e   :  { %4616 = vmatmul.mubr.msk.f32.gmra.mrb[12].mxu0 %vm127_vm0, %v113_v39 }
  0x7f   :  { %4618 = vmatprep.mubr.msk.f32.mxu0 %vm127_vm0, %v114_v40 }
  0x82   :  { %4619 = vmatmul.mubr.msk.f32.gmra.mrb[14].mxu0 %vm127_vm0, %v115_v41 }
  0x83   :  { %4669 = vmatprep.mubr.msk.f32.mxu0 %vm5011_vm1, %v6315_v4 }
  0xe9   :  { %v323_v10 = vpop.xlane.xlu0 %322 }
  0xea   :  { %v328_v11 = vmul.f32 0.03125, %v323_v10  ;;  %v5013_v10 = vmov 1966171168  }
  0xec   :  { %v330_v12 = vsub.f32 %v98_v0, %v328_v11  ;;  %v444_v11 = vunpack.c.l.s4 %v5013_v10 }
  0xed   :  { %v326_v13 = vpop.xlane.xlu0 %325 }
  0xee   :  { %v329_v14 = vmul.f32 0.03125, %v326_v13  ;;  %v332_v15 = vmul.f32 %v330_v12, %v330_v12  ;;  %v445_v13 = vunpack.c.0.s8 %v444_v11 }
  0xf0   :  { %v331_v16 = vsub.f32 %v99_v1, %v329_v14  ;;  %v334_v17 = vsel %vm127_vm0, %v332_v15, 0.0 }
  0xf1   :  { %335 = vadd.xlane.f32.xlu1 %v334_v17  ;;  %v5231_v17 = vld [vmem:[%s6311_s5] ss:$0 sm:$0xff]  ;;  %s5014_s5 = smov 64  }
  0xf2   :  { %v333_v18 = vmul.f32 %v331_v16, %v331_v16 }
  0xf4   :  { %v337_v19 = vsel %vm127_vm0, %v333_v18, 0.0 }
  0xf5   :  { %338 = vadd.xlane.f32.xlu1 %v337_v19 }
 0x139   :  { %v4599_v52 = vpop.f32.mrb[0].mxu0 }
 0x13a   :  { %v242_v53 = vpop.f32.mrb[1].mxu0  ;;  %v5260_v35 = vadd.f32 %v4599_v52, %v5231_v17 }
 0x13b   :  { %v5247_v28 = vadd.f32 %v5231_v17, %v242_v53 }
 0x13d   :  { %v5186_v54 = vpop.f32.mrb[2].mxu0 }
 0x13e   :  { %v5188_v55 = vpop.f32.mrb[3].mxu0 }
 0x141   :  { %v5190_v56 = vpop.f32.mrb[4].mxu0 }
 0x142   :  { %v5192_v57 = vpop.f32.mrb[5].mxu0 }
 0x145   :  { %v5194_v58 = vpop.f32.mrb[6].mxu0 }
 0x146   :  { %v5196_v59 = vpop.f32.mrb[7].mxu0 }
 0x149   :  { %v4611_v60 = vpop.f32.mrb[8].mxu0 }
 0x14a   :  { %v282_v61 = vpop.f32.mrb[9].mxu0  ;;  %v5264_v37 = vadd.f32 %v4611_v60, %v5231_v17 }
 0x14b   :  { %v5240_v21 = vadd.f32 %v5231_v17, %v282_v61 }
 0x14d   :  { %v4614_v62 = vpop.f32.mrb[10].mxu0 }
 0x14e   :  { %v292_v63 = vpop.f32.mrb[11].mxu0 }
 0x14f   :  { %v5250_v29 = vadd.f32 %v5231_v17, %v292_v63  ;;  %v5304_v63 = vadd.f32 %v5231_v17, %v5192_v57 }
 0x151   :  { %v5198_v0 = vpop.f32.mrb[12].mxu0 }
 0x152   :  { %v5200_v1 = vpop.f32.mrb[13].mxu0 }
 0x155   :  { %v5202_v2 = vpop.f32.mrb[14].mxu0 }
 0x156   :  { %v5204_v3 = vpop.f32.mrb[15].mxu0 }
 0x17e   :  { %v336_v42 = vpop.xlane.xlu1 %335 }
 0x17f   :  { %v340_v43 = vmul.f32 0.03125, %v336_v42 }
 0x181   :  { %v342_v44 = vadd.f32 1e-05, %v340_v43 }
 0x182   :  { %v339_v45 = vpop.xlane.xlu1 %338 }
 0x183   :  { %4803 = vrsqrt.f32 %v342_v44  ;;  %v341_v46 = vmul.f32 0.03125, %v339_v45  ;;  %v5278_v45 = vadd.f32 %v5231_v17, %v5188_v55 }
 0x185   :  { %v343_v47 = vadd.f32 1e-05, %v341_v46  ;;  %v5281_v46 = vadd.f32 %v4614_v62, %v5231_v17  ;;  %v5300_v62 = vadd.f32 %v5186_v54, %v5231_v17 }
 0x187   :  { %4805 = vrsqrt.f32 %v343_v47 }
 0x18d   :  { %v4804_v48 = vpop.eup %4803 }
 0x18e   :  { %v346_v49 = vmul.f32 %v4804_v48, %v330_v12  ;;  %v446_v12 = vlaneseq }
 0x190   :  { %4629 = vmatprep.mubr.msk.f32.mxu1 %vm127_vm0, %v346_v49  ;;  %v5221_v14 = vshrl.u32 %v446_v12, 7 }
 0x191   :  { %v4806_v50 = vpop.eup %4805 }
 0x192   :  { %v347_v51 = vmul.f32 %v4806_v50, %v331_v16  ;;  %v5224_v15 = vsub.s32 %v445_v13, %v5221_v14  ;;  %v5235_v19 = vsub.s32 0, %v5221_v14 }
 0x194   :  { %4630 = vmatmul.mubr.msk.f32.vlgmr.msra.gmra.mrb[0].mxu1 %vm127_vm0, %v347_v51  ;;  %6341 = vst [vmem:[#allocation16_spill] sm:$0xff] %v5224_v15 }
 0x195   :  { %4634 = vmatprep.mubr.msk.f32.mxu1 %vm5011_vm1, %v6315_v4 }
 0x267   :  { %v4631_v6 = vpop.f32.mrb[0].mxu1 }
 0x268   :  { %v5212_v7 = vadd.f32 %v4631_v6, %v4474_v5  ;;  %v431_v8 = vpop.f32.mrb[1].mxu1 }
 0x269   :  { %v5214_v9 = vadd.f32 %v4474_v5, %v431_v8 }
 0x26a   :  { %818 = vrot.lane.b32.xlu1 %v5212_v7, %s5012_s4  ;;  %v498_v16 = vrot.slane %v5212_v7, %v5224_v15  ;;  %v491_v48 = vcombine.high %v5212_v7, %v5212_v7 }
 0x26b   :  { %685 = vrot.lane.b32.xlu0 %v5214_v9, %s5012_s4  ;;  %v449_v20 = vrot.slane %v5214_v9, %v5224_v15  ;;  %v442_v27 = vcombine.high %v5214_v9, %v5214_v9 }
 0x26c   :  { %v514_v18 = vrot.slane %v498_v16, %v5224_v15  ;;  %v506_v22 = vcombine.high %v498_v16, %v498_v16  ;;  %v505_v5 = vrot.slane %v491_v48, %v5224_v15 }
 0x26d   :  { %v465_v25 = vrot.slane %v449_v20, %v5224_v15  ;;  %v457_v26 = vcombine.high %v449_v20, %v449_v20  ;;  %v456_v36 = vrot.slane %v442_v27, %v5224_v15  ;;  %v5326_v20 = vadd.f32 %v5231_v17, %v5196_v59 }
 0x26e   :  { %v575_v23 = vrot.slane %v514_v18, %v5235_v19  ;;  %v536_v24 = vcombine.high %v514_v18, %v514_v18  ;;  %v528_v30 = vrot.slane %v506_v22, %v5224_v15  ;;  %v5322_v18 = vadd.f32 %v5190_v56, %v5231_v17 }
 0x26f   :  { %v543_v33 = vrot.slane %v465_v25, %v5235_v19  ;;  %v479_v34 = vrot.slane %v457_v26, %v5224_v15  ;;  %v487_v40 = vcombine.high %v465_v25, %v465_v25  ;;  %v472_v47 = vrot.slane %v456_v36, %v5224_v15 }
 0x270   :  { %v5254_v31 = vmul.f32 %v575_v23, %v5240_v21  ;;  %v583_v32 = vrot.slane %v536_v24, %v5235_v19  ;;  %v579_v38 = vrot.slane %v528_v30, %v5235_v19  ;;  %v538_v39 = vcombine.high %v528_v30, %v528_v30 }
 0x271   :  { %v5273_v43 = vmul.f32 %v543_v33, %v5247_v28  ;;  %v547_v44 = vrot.slane %v479_v34, %v5235_v19  ;;  %v551_v51 = vrot.slane %v487_v40, %v5235_v19  ;;  %v489_v52 = vcombine.high %v479_v34, %v479_v34 }
 0x272   :  { %v661_v41 = vsel %vm636_vm2, %v5254_v31, 0.0  ;;  %v5270_v42 = vmul.f32 %v583_v32, %v5250_v29  ;;  %v5287_v49 = vmul.f32 %v579_v38, %v5264_v37  ;;  %v587_v50 = vrot.slane %v538_v39, %v5235_v19 }
 0x273   :  { %v637_v55 = vsel %vm636_vm2, %v5273_v43, 0.0  ;;  %v5296_v60 = vmul.f32 %v547_v44, %v5260_v35  ;;  %v458_v61 = vcombine.high %v456_v36, %v456_v36  ;;  %v5311_v8 = vmul.f32 %v551_v51, %v5278_v45 }
 0x274   :  { %v667_v53 = vsel %vm636_vm2, %v5270_v42, 0.0  ;;  %v5308_v6 = vmul.f32 %v587_v50, %v5281_v46  ;;  %v555_v10 = vrot.slane %v489_v52, %v5235_v19  ;;  %v488_v11 = vcombine.high %v472_v47, %v472_v47 }
 0x275   :  { %v664_v13 = vsel %vm636_vm2, %v5287_v49, 0.0  ;;  %v640_v54 = vsel %vm636_vm2, %v5296_v60, 0.0  ;;  %v559_v57 = vrot.slane %v472_v47, %v5235_v19  ;;  %v486_v16 = vrot.slane %v458_v61, %v5224_v15 }
 0x276   :  { %v521_v22 = vrot.slane %v505_v5, %v5224_v15  ;;  %v670_v23 = vsel %vm636_vm2, %v5308_v6, 0.0  ;;  %v643_v24 = vsel %vm636_vm2, %v5311_v8, 0.0  ;;  %v5334_v25 = vmul.f32 %v555_v10, %v5300_v62 }
 0x277   :  { %v567_v26 = vrot.slane %v488_v11, %v5235_v19  ;;  %v5338_v56 = vmul.f32 %v559_v57, %v5304_v63  ;;  %v563_v27 = vrot.slane %v486_v16, %v5235_v19  ;;  %v490_v59 = vcombine.high %v486_v16, %v486_v16 }
 0x278   :  { %v507_v30 = vcombine.high %v505_v5, %v505_v5  ;;  %v5343_v32 = vadd.f32 %v5194_v58, %v5231_v17  ;;  %v5347_v33 = vadd.f32 %v5231_v17, %v5200_v1  ;;  %v646_v34 = vsel %vm636_vm2, %v5334_v25, 0.0 }
 0x279   :  { %v5352_v36 = vmul.f32 %v567_v26, %v5326_v20  ;;  %v591_v38 = vrot.slane %v521_v22, %v5235_v19  ;;  %v537_v39 = vcombine.high %v521_v22, %v521_v22  ;;  %v649_v40 = vsel %vm636_vm2, %v5338_v56, 0.0 }
 0x27a   :  { %6342 = vst [vmem:[#allocation17_spill] sm:$0xff] %v5343_v32  ;;  %v571_v58 = vrot.slane %v490_v59, %v5235_v19  ;;  %v535_v1 = vrot.slane %v507_v30, %v5224_v15  ;;  %v5364_v44 = vadd.f32 %v5198_v0, %v5231_v17  ;;  %v5368_v47 = vadd.f32 %v5231_v17, %v5204_v3 }
 0x27b   :  { %v655_v48 = vsel %vm636_vm2, %v5352_v36, 0.0  ;;  %v5373_v50 = vmul.f32 %v591_v38, %v5347_v33  ;;  %v599_v51 = vrot.slane %v537_v39, %v5235_v19  ;;  %v5384_v3 = vadd.f32 %v5202_v2, %v5231_v17 }
 0x27c   :  { %6343 = vst [vmem:[#allocation18_spill] sm:$0xff] %v5364_v44  ;;  %6344 = vst [vmem:[#allocation19_spill] sm:$0xff] %v5368_v47  ;;  %v595_v0 = vrot.slane %v535_v1, %v5235_v19 }
 0x27d   :  { %6345 = vst [vmem:[#allocation20_spill] sm:$0xff] %v5384_v3  ;;  %v673_v61 = vsel %vm636_vm2, %v5373_v50, 0.0  ;;  %v5391_v10 = vmul.f32 %v599_v51, %v5368_v47 }
 0x27e   :  { %v5394_v11 = vmul.f32 %v595_v0, %v5364_v44 }
 0x27f   :  { %v679_v2 = vsel %vm636_vm2, %v5391_v10, 0.0 }
 0x280   :  { %v676_v17 = vsel %vm636_vm2, %v5394_v11, 0.0 }
 0x28a   :  { %662 = vadd.xlane.f32.xlu0 %v661_v41  ;;  %v5358_v41 = vmul.f32 %v563_v27, %v5322_v18 }
 0x28c   :  { %v652_v52 = vsel %vm636_vm2, %v5358_v41, 0.0 }
 0x28e   :  { %668 = vadd.xlane.f32.xlu0 %v667_v53  ;;  %638 = vadd.xlane.f32.xlu1 %v637_v55  ;;  %v5379_v53 = vmul.f32 %v571_v58, %v5343_v32  ;;  %v539_v55 = vcombine.high %v535_v1, %v535_v1  ;;  %v696_v58 = vand.u32 127, %v446_v12 }
 0x290   :  { %v658_v5 = vsel %vm636_vm2, %v5379_v53, 0.0  ;;  %v5420_v1 = vsub.s32 %v696_v58, %v5221_v14 }
 0x292   :  { %665 = vadd.xlane.f32.xlu1 %v664_v13  ;;  %641 = vadd.xlane.f32.xlu0 %v640_v54  ;;  %v603_v13 = vrot.slane %v539_v55, %v5235_v19  ;;  %6346 = vst [vmem:[#allocation21_spill] sm:$0xff] %v5420_v1 }
 0x294   :  { %v5402_v54 = vmul.f32 %v603_v13, %v5384_v3 }
 0x296   :  { %671 = vadd.xlane.f32.xlu1 %v670_v23  ;;  %644 = vadd.xlane.f32.xlu0 %v643_v24  ;;  %v682_v57 = vsel %vm636_vm2, %v5402_v54, 0.0 }
 0x29a   :  { %647 = vadd.xlane.f32.xlu1 %v646_v34  ;;  %650 = vadd.xlane.f32.xlu0 %v649_v40 }
 0x29e   :  { %656 = vadd.xlane.f32.xlu0 %v655_v48  ;;  %653 = vadd.xlane.f32.xlu1 %v652_v52 }
 0x2a2   :  { %674 = vadd.xlane.f32.xlu0 %v673_v61  ;;  %659 = vadd.xlane.f32.xlu1 %v658_v5 }
 0x2a6   :  { %680 = vadd.xlane.f32.xlu0 %v679_v2  ;;  %677 = vadd.xlane.f32.xlu1 %v676_v17 }
 0x2aa   :  { %683 = vadd.xlane.f32.xlu1 %v682_v57 }
 0x2dc   :  { %v819_v22 = vpop.permute.xlu1 %818 }
 0x2dd   :  { %v686_v16 = vpop.permute.xlu0 %685 }
 0x2de   :  { %4633 = vmatpush3.xpose.msk.msra.mxu1 %vm636_vm2, %v686_v16 }
 0x2df   :  { %4637 = vmatprep.subr.mxu1 %v6315_v4 }
 0x2e1   :  { %4635 = vmatmul.mubr.msk.f32.vlgmr.msra.gmra.mrb[2].mxu1 %vm636_vm2, %v5214_v9 }
 0x2e2   :  { %4638 = vmatpush3.xpose.msk.msra.mxu1 %vm636_vm2, %v819_v22  ;;  %4639 = vmatprep.mubr.msk.f32.mxu1 %vm5011_vm1, %v6315_v4 }
 0x2e3   :  { %4642 = vmatprep.subr.mxu1 %v6315_v4 }
 0x2e5   :  { %4640 = vmatmul.mubr.msk.f32.vlgmr.msra.gmra.mrb[4].mxu1 %vm636_vm2, %v5212_v7 }
 0x2e6   :  { %4644 = vmatprep.mubr.msk.f32.mxu1 %vm5011_vm1, %v6315_v4 }
 0x317   :  { %v663_v23 = vpop.xlane.xlu0 %662 }
 0x318   :  { %v831_v16 = vrot.slane %v663_v23, %v5420_v1 }
 0x31b   :  { %v639_v24 = vpop.xlane.xlu1 %638  ;;  %v669_v26 = vpop.xlane.xlu0 %668 }
 0x31c   :  { %v700_v55 = vrot.slane %v639_v24, %v5420_v1 }
 0x31f   :  { %v666_v27 = vpop.xlane.xlu1 %665  ;;  %v642_v59 = vpop.xlane.xlu0 %641 }
 0x320   :  { %v704_v52 = vrot.slane %v642_v59, %v5420_v1  ;;  %v835_v5 = vrot.slane %v666_v27, %v5420_v1 }
 0x322   :  { %v730_v13 = vsel %vm729_vm3, %v704_v52, %v700_v55  ;;  %v860_v27 = vsel %vm729_vm3, %v835_v5, %v831_v16 }
 0x323   :  { %v672_v30 = vpop.xlane.xlu1 %671  ;;  %v645_v34 = vpop.xlane.xlu0 %644 }
 0x324   :  { %v708_v0 = vrot.slane %v645_v34, %v5420_v1  ;;  %v843_v59 = vrot.slane %v672_v30, %v5420_v1  ;;  %v839_v34 = vrot.slane %v669_v26, %v5420_v1 }
 0x326   :  { %v732_v2 = vsel %vm731_vm4, %v708_v0, %v730_v13  ;;  %v861_v55 = vsel %vm731_vm4, %v839_v34, %v860_v27 }
 0x327   :  { %v648_v38 = vpop.xlane.xlu1 %647  ;;  %v651_v39 = vpop.xlane.xlu0 %650  ;;  %v862_v26 = vsel %vm733_vm5, %v843_v59, %v861_v55 }
 0x328   :  { %v712_v61 = vrot.slane %v648_v38, %v5420_v1  ;;  %v716_v17 = vrot.slane %v651_v39, %v5420_v1 }
 0x32a   :  { %v734_v22 = vsel %vm733_vm5, %v712_v61, %v732_v2 }
 0x32b   :  { %v654_v40 = vpop.xlane.xlu1 %653  ;;  %v657_v48 = vpop.xlane.xlu0 %656  ;;  %v736_v38 = vsel %vm735_vm6, %v716_v17, %v734_v22 }
 0x32c   :  { %v720_v24 = vrot.slane %v654_v40, %v5420_v1  ;;  %v724_v58 = vrot.slane %v657_v48, %v5420_v1 }
 0x32e   :  { %v738_v40 = vsel %vm737_vm7, %v720_v24, %v736_v38 }
 0x32f   :  { %v660_v51 = vpop.xlane.xlu1 %659  ;;  %v675_v12 = vpop.xlane.xlu0 %674  ;;  %v740_v5 = vsel %vm739_vm8, %v724_v58, %v738_v40 }
 0x330   :  { %v847_v39 = vrot.slane %v675_v12, %v5420_v1  ;;  %v728_v23 = vrot.slane %v660_v51, %v5420_v1 }
 0x332   :  { %v863_v30 = vsel %vm735_vm6, %v847_v39, %v862_v26  ;;  %v742_v13 = vsel %vm741_vm9, %v728_v23, %v740_v5 }
 0x333   :  { %v678_v57 = vpop.xlane.xlu1 %677  ;;  %v681_v52 = vpop.xlane.xlu0 %680 }
 0x334   :  { %v851_v0 = vrot.slane %v678_v57, %v5420_v1  ;;  %v855_v48 = vrot.slane %v681_v52, %v5420_v1 }
 0x336   :  { %v864_v2 = vsel %vm737_vm7, %v851_v0, %v863_v30 }
 0x337   :  { %v684_v61 = vpop.xlane.xlu1 %683  ;;  %v865_v16 = vsel %vm739_vm8, %v855_v48, %v864_v2 }
 0x338   :  { %v859_v51 = vrot.slane %v684_v61, %v5420_v1 }
 0x33a   :  { %v866_v24 = vsel %vm741_vm9, %v859_v51, %v865_v16 }
 0x3b4   :  { %v814_v12 = vpop.f32.mrb[2].mxu1 }
 0x3b5   :  { %v815_v17 = vadd.f32 %v814_v12, %v742_v13  ;;  %v4636_v57 = vpop.f32.mrb[3].mxu1 }
 0x3b7   :  { %v943_v22 = vsel %vm942_vm10, %v815_v17, -inf }
 0x3b8   :  { %v938_v27 = vpop.f32.mrb[4].mxu1  ;;  %944 = vmax.xlane.f32.xlu0 %v943_v22 }
 0x3b9   :  { %v939_v59 = vadd.f32 %v938_v27, %v866_v24  ;;  %v4641_v34 = vpop.f32.mrb[5].mxu1 }
 0x3bb   :  { %v946_v38 = vsel %vm942_vm10, %v939_v59, -inf }
 0x3bc   :  { %947 = vmax.xlane.f32.xlu1 %v946_v38 }
 0x3cd   :  { %1041 = vrot.lane.b32.xlu1 %v5212_v7, %s5014_s5 }
 0x3d1   :  { %1505 = vrot.lane.b32.xlu1 %v5214_v9, %s5015_s0 }
 0x3d5   :  { %1503 = vrot.lane.b32.xlu1 %v5214_v9, %s5016_s12 }
 0x445   :  { %v945_v58 = vpop.xlane.xlu0 %944 }
 0x446   :  { %v949_v39 = vsub.f32 %v815_v17, %v945_v58 }
 0x448   :  { %v951_v23 = vmul.f32 1.442695, %v949_v39 }
 0x449   :  { %v948_v52 = vpop.xlane.xlu1 %947 }
 0x44a   :  { %4807 = vpow2.f32 %v951_v23  ;;  %v950_v0 = vsub.f32 %v939_v59, %v948_v52 }
 0x44c   :  { %v953_v40 = vmul.f32 1.442695, %v950_v0 }
 0x44e   :  { %4809 = vpow2.f32 %v953_v40 }
 0x454   :  { %v4808_v55 = vpop.eup %4807 }
 0x455   :  { %v955_v61 = vsel %vm942_vm10, %v4808_v55, 0.0 }
 0x456   :  { %956 = vadd.xlane.f32.xlu0 %v955_v61 }
 0x458   :  { %v4810_v26 = vpop.eup %4809 }
 0x459   :  { %v958_v30 = vsel %vm942_vm10, %v4810_v26, 0.0 }
 0x45a   :  { %959 = vadd.xlane.f32.xlu1 %v958_v30 }
 0x46b   :  { %1629 = vrot.lane.b32.xlu1 %v5212_v7, %s5016_s12 }
 0x46c   :  { %965 = vrot.lane.b32.xlu0 %v5214_v9, %s5014_s5 }
 0x46f   :  { %1409 = vrot.lane.b32.xlu1 %v5296_v60, %s5016_s12 }
 0x470   :  { %1631 = vrot.lane.b32.xlu0 %v5212_v7, %s5015_s0 }
 0x473   :  { %1423 = vrot.lane.b32.xlu1 %v5254_v31, %s5016_s12  ;;  %v1042_v31 = vpop.permute.xlu1 %1041 }
 0x474   :  { %1407 = vrot.lane.b32.xlu0 %v5273_v43, %s5016_s12 }
 0x477   :  { %1413 = vrot.lane.b32.xlu1 %v5334_v25, %s5016_s12 }
 0x478   :  { %1411 = vrot.lane.b32.xlu0 %v5311_v8, %s5016_s12 }
 0x47b   :  { %1415 = vrot.lane.b32.xlu1 %v5338_v56, %s5016_s12 }
 0x47c   :  { %1425 = vrot.lane.b32.xlu0 %v5287_v49, %s5016_s12 }
 0x47f   :  { %1417 = vrot.lane.b32.xlu1 %v5358_v41, %s5016_s12 }
 0x480   :  { %1427 = vrot.lane.b32.xlu0 %v5270_v42, %s5016_s12  ;;  %v1506_v42 = vpop.permute.xlu1 %1505 }
 0x483   :  { %1419 = vrot.lane.b32.xlu1 %v5352_v36, %s5016_s12 }
 0x484   :  { %1429 = vrot.lane.b32.xlu0 %v5308_v6, %s5016_s12  ;;  %v1504_v43 = vpop.permute.xlu1 %1503 }
 0x487   :  { %1421 = vrot.lane.b32.xlu1 %v5379_v53, %s5016_s12 }
 0x488   :  { %1431 = vrot.lane.b32.xlu0 %v5373_v50, %s5016_s12 }
 0x48b   :  { %1437 = vrot.lane.b32.xlu1 %v5402_v54, %s5016_s12 }
 0x48c   :  { %1433 = vrot.lane.b32.xlu0 %v5394_v11, %s5016_s12 }
 0x490   :  { %1435 = vrot.lane.b32.xlu0 %v5391_v10, %s5016_s12 }
 0x4e3   :  { %v957_v49 = vpop.xlane.xlu0 %956 }
 0x4e4   :  { %4811 = vrcp.f32 %v957_v49 }
 0x4e7   :  { %v966_v60 = vpop.permute.xlu0 %965  ;;  %v960_v6 = vpop.xlane.xlu1 %959 }
 0x4e8   :  { %4813 = vrcp.f32 %v960_v6  ;;  %4643 = vmatpush3.msra.mxu1 %v966_v60 }
 0x4e9   :  { %4647 = vmatprep.subr.mxu1 %v6315_v4 }
 0x4eb   :  { %v1632_v8 = vpop.permute.xlu0 %1631  ;;  %v1630_v25 = vpop.permute.xlu1 %1629 }
 0x4ee   :  { %v4812_v56 = vpop.eup %4811 }
 0x4ef   :  { %v5501_v36 = vmul.f32 %v4812_v56, %v4808_v55  ;;  %v1408_v41 = vpop.permute.xlu0 %1407  ;;  %v1410_v50 = vpop.permute.xlu1 %1409 }
 0x4f0   :  { %v1455_v53 = vsel %vm636_vm2, %v1408_v41, 0.0  ;;  %v1458_v10 = vsel %vm636_vm2, %v1410_v50, 0.0 }
 0x4f1   :  { %4645 = vmatmul.mubr.msk.f32.vlgmr.msra.gmra.mrb[6].mxu1 %vm942_vm10, %v5501_v36  ;;  %1456 = vadd.xlane.f32.xlu0 %v1455_v53 }
 0x4f2   :  { %v4814_v11 = vpop.eup %4813  ;;  %4648 = vmatpush3.msra.mxu1 %v1042_v31  ;;  %1459 = vadd.xlane.f32.xlu1 %v1458_v10 }
 0x4f3   :  { %v5507_v54 = vmul.f32 %v4814_v11, %v4810_v26  ;;  %v1412_v48 = vpop.permute.xlu0 %1411  ;;  %v1424_v5 = vpop.permute.xlu1 %1423  ;;  %4649 = vmatprep.mubr.msk.f32.mxu1 %vm5011_vm1, %v6315_v4  ;;  %4652 = vmatprep.subr.mxu1 %v6315_v4 }
 0x4f4   :  { %v1461_v51 = vsel %vm636_vm2, %v1412_v48, 0.0  ;;  %v1479_v2 = vsel %vm636_vm2, %v1424_v5, 0.0 }
 0x4f5   :  { %1462 = vadd.xlane.f32.xlu0 %v1461_v51  ;;  %4650 = vmatmul.mubr.msk.f32.vlgmr.msra.gmra.mrb[8].mxu1 %vm942_vm10, %v5507_v54 }
 0x4f6   :  { %4654 = vmatprep.mubr.msk.f32.mxu1 %vm5011_vm1, %v6315_v4 }
 0x4f7   :  { %v1426_v13 = vpop.permute.xlu0 %1425  ;;  %v1414_v12 = vpop.permute.xlu1 %1413 }
 0x4f8   :  { %v1464_v17 = vsel %vm636_vm2, %v1414_v12, 0.0  ;;  %v1482_v22 = vsel %vm636_vm2, %v1426_v13, 0.0 }
 0x4f9   :  { %4653 = vmatpush3.xpose.msk.msra.mxu1 %vm636_vm2, %v1506_v42  ;;  %1480 = vadd.xlane.f32.xlu0 %v1479_v2 }
 0x4fa   :  { %1465 = vadd.xlane.f32.xlu1 %v1464_v17  ;;  %4657 = vmatprep.subr.mxu1 %v6315_v4 }
 0x4fb   :  { %v1428_v57 = vpop.permute.xlu0 %1427  ;;  %v1416_v16 = vpop.permute.xlu1 %1415 }
 0x4fc   :  { %4655 = vmatmul.mubr.msk.f32.vlgmr.msra.gmra.mrb[10].mxu1 %vm636_vm2, %v1504_v43  ;;  %v1467_v24 = vsel %vm636_vm2, %v1416_v16, 0.0  ;;  %v1485_v34 = vsel %vm636_vm2, %v1428_v57, 0.0 }
 0x4fd   :  { %4658 = vmatpush3.xpose.msk.msra.mxu1 %vm636_vm2, %v1632_v8  ;;  %1483 = vadd.xlane.f32.xlu0 %v1482_v22 }
 0x4fe   :  { %1468 = vadd.xlane.f32.xlu1 %v1467_v24  ;;  %4659 = vmatprep.mubr.msk.f32.mxu1 %vm5011_vm1, %v6315_v4 }
 0x4ff   :  { %v1430_v27 = vpop.permute.xlu0 %1429  ;;  %v1418_v59 = vpop.permute.xlu1 %1417  ;;  %4662 = vmatprep.subr.mxu1 %v6315_v4 }
 0x500   :  { %4660 = vmatmul.mubr.msk.f32.vlgmr.msra.gmra.mrb[12].mxu1 %vm636_vm2, %v1630_v25  ;;  %v1470_v38 = vsel %vm636_vm2, %v1418_v59, 0.0  ;;  %v1488_v23 = vsel %vm636_vm2, %v1430_v27, 0.0 }
 0x501   :  { %1486 = vadd.xlane.f32.xlu0 %v1485_v34  ;;  %4664 = vmatprep.mubr.msk.f32.mxu1 %vm5011_vm1, %v6315_v4 }
 0x502   :  { %1471 = vadd.xlane.f32.xlu1 %v1470_v38 }
 0x503   :  { %v1432_v58 = vpop.permute.xlu0 %1431  ;;  %v1420_v39 = vpop.permute.xlu1 %1419 }
 0x504   :  { %v1473_v52 = vsel %vm636_vm2, %v1420_v39, 0.0  ;;  %v1491_v55 = vsel %vm636_vm2, %v1432_v58, 0.0 }
 0x505   :  { %1489 = vadd.xlane.f32.xlu0 %v1488_v23 }
 0x506   :  { %1474 = vadd.xlane.f32.xlu1 %v1473_v52 }
 0x507   :  { %v1434_v0 = vpop.permute.xlu0 %1433  ;;  %v1422_v40 = vpop.permute.xlu1 %1421 }
 0x508   :  { %v1476_v61 = vsel %vm636_vm2, %v1422_v40, 0.0  ;;  %v1494_v30 = vsel %vm636_vm2, %v1434_v0, 0.0 }
 0x509   :  { %1492 = vadd.xlane.f32.xlu0 %v1491_v55 }
 0x50a   :  { %1477 = vadd.xlane.f32.xlu1 %v1476_v61 }
 0x50b   :  { %v1438_v26 = vpop.permute.xlu1 %1437  ;;  %v1436_v42 = vpop.permute.xlu0 %1435 }
 0x50c   :  { %v1500_v31 = vsel %vm636_vm2, %v1438_v26, 0.0  ;;  %v1497_v43 = vsel %vm636_vm2, %v1436_v42, 0.0 }
 0x50d   :  { %1495 = vadd.xlane.f32.xlu0 %v1494_v30 }
 0x50e   :  { %1501 = vadd.xlane.f32.xlu1 %v1500_v31 }
 0x511   :  { %1498 = vadd.xlane.f32.xlu0 %v1497_v43 }
 0x57e   :  { %v1457_v49 = vpop.xlane.xlu0 %1456 }
 0x57f   :  { %v1460_v25 = vpop.xlane.xlu1 %1459  ;;  %v1518_v13 = vrot.slane %v1457_v49, %v5420_v1 }
 0x580   :  { %v1522_v12 = vrot.slane %v1460_v25, %v5420_v1 }
 0x582   :  { %v1463_v60 = vpop.xlane.xlu0 %1462  ;;  %v1547_v34 = vsel %vm729_vm3, %v1522_v12, %v1518_v13 }
 0x583   :  { %v1526_v17 = vrot.slane %v1463_v60, %v5420_v1 }
 0x585   :  { %v1548_v0 = vsel %vm731_vm4, %v1526_v17, %v1547_v34 }
 0x586   :  { %v1481_v6 = vpop.xlane.xlu0 %1480 }
 0x587   :  { %v1466_v56 = vpop.xlane.xlu1 %1465  ;;  %v1644_v38 = vrot.slane %v1481_v6, %v5420_v1 }
 0x588   :  { %v1530_v57 = vrot.slane %v1466_v56, %v5420_v1 }
 0x58a   :  { %v1484_v8 = vpop.xlane.xlu0 %1483  ;;  %v1549_v61 = vsel %vm733_vm5, %v1530_v57, %v1548_v0 }
 0x58b   :  { %v1469_v50 = vpop.xlane.xlu1 %1468  ;;  %v1648_v16 = vrot.slane %v1484_v8, %v5420_v1 }
 0x58c   :  { %v1534_v22 = vrot.slane %v1469_v50, %v5420_v1 }
 0x58d   :  { %v1673_v26 = vsel %vm729_vm3, %v1648_v16, %v1644_v38 }
 0x58e   :  { %v1487_v41 = vpop.xlane.xlu0 %1486  ;;  %v1550_v42 = vsel %vm735_vm6, %v1534_v22, %v1549_v61 }
 0x58f   :  { %v1472_v10 = vpop.xlane.xlu1 %1471  ;;  %v1652_v24 = vrot.slane %v1487_v41, %v5420_v1 }
 0x590   :  { %v1538_v58 = vrot.slane %v1472_v10, %v5420_v1 }
 0x591   :  { %v1674_v43 = vsel %vm731_vm4, %v1652_v24, %v1673_v26 }
 0x592   :  { %v1490_v53 = vpop.xlane.xlu0 %1489  ;;  %v1551_v6 = vsel %vm737_vm7, %v1538_v58, %v1550_v42  ;;  %v5583_v42 = vsub.s32 2, %v5221_v14 }
 0x593   :  { %v1475_v48 = vpop.xlane.xlu1 %1474  ;;  %v1656_v39 = vrot.slane %v1490_v53, %v5420_v1 }
 0x594   :  { %v1542_v40 = vrot.slane %v1475_v48, %v5420_v1 }
 0x595   :  { %v1675_v60 = vsel %vm733_vm5, %v1656_v39, %v1674_v43 }
 0x596   :  { %v1493_v11 = vpop.xlane.xlu0 %1492  ;;  %v1552_v56 = vsel %vm739_vm8, %v1542_v40, %v1551_v6 }
 0x597   :  { %v1478_v27 = vpop.xlane.xlu1 %1477  ;;  %v1660_v55 = vrot.slane %v1493_v11, %v5420_v1 }
 0x598   :  { %v1546_v30 = vrot.slane %v1478_v27, %v5420_v1 }
 0x599   :  { %v1676_v8 = vsel %vm735_vm6, %v1660_v55, %v1675_v60  ;;  %v5589_v60 = vsub.s32 1, %v5221_v14 }
 0x59a   :  { %v1496_v5 = vpop.xlane.xlu0 %1495  ;;  %v1553_v41 = vsel %vm741_vm9, %v1546_v30, %v1552_v56 }
 0x59b   :  { %v1664_v31 = vrot.slane %v1496_v5, %v5420_v1  ;;  %v1502_v25 = vpop.xlane.xlu1 %1501 }
 0x59c   :  { %v1672_v5 = vrot.slane %v1502_v25, %v5420_v1  ;;  %v5595_v25 = vsub.s32 3, %v5221_v14 }
 0x59d   :  { %v1677_v53 = vsel %vm737_vm7, %v1664_v31, %v1676_v8 }
 0x59e   :  { %v1499_v23 = vpop.xlane.xlu0 %1498  ;;  %6349 = vst [vmem:[#allocation24_spill] sm:$0xff] %v5595_v25 }
 0x59f   :  { %v1668_v49 = vrot.slane %v1499_v23, %v5420_v1 }
 0x5a1   :  { %v1678_v48 = vsel %vm739_vm8, %v1668_v49, %v1677_v53 }
 0x5a2   :  { %v1679_v12 = vsel %vm741_vm9, %v1672_v5, %v1678_v48 }
 0x5c4   :  { %v5540_v51 = vpop.f32.mrb[6].mxu1 }
 0x5c5   :  { %6347 = vst [vmem:[#allocation22_spill] sm:$0xff] %v5540_v51  ;;  %v4646_v2 = vpop.f32.mrb[7].mxu1 }
 0x5c8   :  { %v5549_v59 = vpop.f32.mrb[8].mxu1 }
 0x5c9   :  { %6348 = vst [vmem:[#allocation23_spill] sm:$0xff] %v5549_v59  ;;  %v4651_v52 = vpop.f32.mrb[9].mxu1 }
 0x5cf   :  { %v1625_v50 = vpop.f32.mrb[10].mxu1 }
 0x5d0   :  { %v1626_v10 = vadd.f32 %v1625_v50, %v1553_v41  ;;  %v4656_v11 = vpop.f32.mrb[11].mxu1  ;;  %v5600_v50 = vsub.s32 4, %v5221_v14 }
 0x5d1   :  { %v5605_v11 = vsub.s32 5, %v5221_v14 }
 0x5d2   :  { %v1755_v13 = vsel %vm942_vm10, %v1626_v10, -inf  ;;  %6350 = vst [vmem:[#allocation25_spill] sm:$0xff] %v5600_v50 }
 0x5d3   :  { %v1751_v2 = vpop.f32.mrb[12].mxu1  ;;  %1756 = vmax.xlane.f32.xlu0 %v1755_v13  ;;  %6351 = vst [vmem:[#allocation26_spill] sm:$0xff] %v5605_v11  ;;  %v5610_v13 = vsub.s32 6, %v5221_v14 }
 0x5d4   :  { %v1752_v17 = vadd.f32 %v1751_v2, %v1679_v12  ;;  %v4661_v57 = vpop.f32.mrb[13].mxu1 }
 0x5d5   :  { %6352 = vst [vmem:[#allocation27_spill] sm:$0xff] %v5610_v13 }
 0x5d6   :  { %v1758_v16 = vsel %vm942_vm10, %v1752_v17, -inf }
 0x5d7   :  { %1759 = vmax.xlane.f32.xlu1 %v1758_v16  ;;  %v5617_v16 = vsub.s32 7, %v5221_v14 }
 0x5d9   :  { %6353 = vst [vmem:[#allocation28_spill] sm:$0xff] %v5617_v16 }
 0x660   :  { %v1757_v22 = vpop.xlane.xlu0 %1756 }
 0x661   :  { %v1761_v24 = vsub.f32 %v1626_v10, %v1757_v22 }
 0x663   :  { %v1763_v27 = vmul.f32 1.442695, %v1761_v24 }
 0x664   :  { %v1760_v34 = vpop.xlane.xlu1 %1759 }
 0x665   :  { %4815 = vpow2.f32 %v1763_v27  ;;  %v1762_v38 = vsub.f32 %v1752_v17, %v1760_v34 }
 0x667   :  { %v1765_v58 = vmul.f32 1.442695, %v1762_v38 }
 0x669   :  { %4817 = vpow2.f32 %v1765_v58 }
 0x66f   :  { %v4816_v39 = vpop.eup %4815 }
 0x670   :  { %v1767_v23 = vsel %vm942_vm10, %v4816_v39, 0.0 }
 0x671   :  { %1768 = vadd.xlane.f32.xlu0 %v1767_v23 }
 0x673   :  { %v4818_v52 = vpop.eup %4817 }
 0x674   :  { %v1770_v0 = vsel %vm942_vm10, %v4818_v52, 0.0 }
 0x675   :  { %1771 = vadd.xlane.f32.xlu1 %v1770_v0 }
 0x686   :  { %1853 = vrot.lane.b32.xlu1 %v5212_v7, %s5017_s13 }
 0x687   :  { %1777 = vrot.lane.b32.xlu0 %v5214_v9, %s5017_s13 }
 0x6fe   :  { %v1769_v40 = vpop.xlane.xlu0 %1768 }
 0x6ff   :  { %4819 = vrcp.f32 %v1769_v40 }
 0x702   :  { %v1778_v55 = vpop.permute.xlu0 %1777  ;;  %v1772_v61 = vpop.xlane.xlu1 %1771 }
 0x703   :  { %4821 = vrcp.f32 %v1772_v61  ;;  %4663 = vmatpush3.msra.mxu1 %v1778_v55 }
 0x706   :  { %v1854_v26 = vpop.permute.xlu1 %1853 }
 0x707   :  { %4668 = vmatpush3.msra.mxu0 %v1854_v26 }
 0x709   :  { %v4820_v30 = vpop.eup %4819 }
 0x70a   :  { %v1774_v31 = vmul.f32 %v4820_v30, %v4816_v39 }
 0x70c   :  { %4665 = vmatmul.mubr.msk.f32.vlgmr.msra.gmra.mrb[14].mxu1 %vm942_vm10, %v1774_v31  ;;  %v1946_v7 = vrot.slane %v1774_v31, %v5583_v42  ;;  %v1932_v43 = vrot.slane %v1774_v31, %v5235_v19  ;;  %v1939_v6 = vrot.slane %v1774_v31, %v5589_v60  ;;  %v1953_v56 = vrot.slane %v1774_v31, %v5595_v25 }
 0x70d   :  { %v4822_v9 = vpop.eup %4821  ;;  %v1960_v53 = vrot.slane %v1774_v31, %v5600_v50  ;;  %v1967_v48 = vrot.slane %v1774_v31, %v5605_v11  ;;  %v1974_v12 = vrot.slane %v1774_v31, %v5610_v13  ;;  %v1981_v22 = vrot.slane %v1774_v31, %v5617_v16 }
 0x70e   :  { %v1776_v49 = vmul.f32 %v4822_v9, %v4818_v52  ;;  %1948 = vbcast.lane.b32.xlu0 %v1946_v7, 256  ;;  %1934 = vbcast.lane.b32.xlu1 %v1932_v43, 256 }
 0x710   :  { %4670 = vmatmul.mubr.msk.f32.vlgmr.msra.gmra.mrb[16].mxu0 %vm942_vm10, %v1776_v49  ;;  %v1995_v8 = vrot.slane %v1776_v49, %v5589_v60  ;;  %v2002_v41 = vrot.slane %v1776_v49, %v5583_v42  ;;  %v2009_v10 = vrot.slane %v1776_v49, %v5595_v25  ;;  %v2016_v5 = vrot.slane %v1776_v49, %v5600_v50 }
 0x711   :  { %v2023_v2 = vrot.slane %v1776_v49, %v5605_v11  ;;  %v2030_v17 = vrot.slane %v1776_v49, %v5610_v13  ;;  %v1988_v57 = vrot.slane %v1776_v49, %v5235_v19  ;;  %v2037_v24 = vrot.slane %v1776_v49, %v5617_v16 }
 0x712   :  { %1941 = vbcast.lane.b32.xlu1 %v1939_v6, 256  ;;  %1997 = vbcast.lane.b32.xlu0 %v1995_v8, 256 }
 0x716   :  { %1955 = vbcast.lane.b32.xlu1 %v1953_v56, 256  ;;  %2004 = vbcast.lane.b32.xlu0 %v2002_v41, 256 }
 0x71a   :  { %1962 = vbcast.lane.b32.xlu1 %v1960_v53, 256  ;;  %2011 = vbcast.lane.b32.xlu0 %v2009_v10, 256 }
 0x71e   :  { %1969 = vbcast.lane.b32.xlu1 %v1967_v48, 256  ;;  %2018 = vbcast.lane.b32.xlu0 %v2016_v5, 256 }
 0x722   :  { %1976 = vbcast.lane.b32.xlu1 %v1974_v12, 256  ;;  %2025 = vbcast.lane.b32.xlu0 %v2023_v2, 256 }
 0x726   :  { %2032 = vbcast.lane.b32.xlu0 %v2030_v17, 256  ;;  %1990 = vbcast.lane.b32.xlu1 %v1988_v57, 256 }
 0x72a   :  { %1983 = vbcast.lane.b32.xlu1 %v1981_v22, 256 }
 0x72e   :  { %2039 = vbcast.lane.b32.xlu1 %v2037_v24, 256 }
 0x780   :  { %v1949_v27 = vpop.permute.xlu0 %1948  ;;  %v1935_v34 = vpop.permute.xlu1 %1934 }
 0x781   :  { %v2043_v38 = vmul.f32 %v1949_v27, %v5278_v45  ;;  %v2041_v58 = vmul.f32 %v1935_v34, %v5247_v28 }
 0x783   :  { %v2072_v39 = vsel %vm2057_vm11, %v2043_v38, 0.0  ;;  %v2058_v23 = vsel %vm2057_vm11, %v2041_v58, 0.0 }
 0x784   :  { %v2073_v52 = vrot.slane %v2072_v39, 4  ;;  %v2059_v14 = vrot.slane %v2058_v23, 4  ;;  %v1998_v0 = vpop.permute.xlu0 %1997  ;;  %v1942_v40 = vpop.permute.xlu1 %1941 }
 0x785   :  { %v2050_v55 = vmul.f32 %v1998_v0, %v5264_v37  ;;  %v2042_v61 = vmul.f32 %v1942_v40, %v5260_v35 }
 0x786   :  { %v2074_v26 = vadd.f32 %v2073_v52, %v2072_v39  ;;  %v2060_v30 = vadd.f32 %v2059_v14, %v2058_v23 }
 0x787   :  { %v2121_v31 = vsel %vm2057_vm11, %v2050_v55, 0.0  ;;  %v2065_v7 = vsel %vm2057_vm11, %v2042_v61, 0.0 }
 0x788   :  { %v2122_v43 = vrot.slane %v2121_v31, 4  ;;  %v2066_v9 = vrot.slane %v2065_v7, 4  ;;  %v2005_v49 = vpop.permute.xlu0 %2004  ;;  %v1956_v6 = vpop.permute.xlu1 %1955  ;;  %v2075_v41 = vrot.slane %v2074_v26, 2  ;;  %v2061_v10 = vrot.slane %v2060_v30, 2 }
 0x789   :  { %v2051_v8 = vmul.f32 %v2005_v49, %v5250_v29  ;;  %v2044_v56 = vmul.f32 %v1956_v6, %v5300_v62 }
 0x78a   :  { %v2123_v53 = vadd.f32 %v2122_v43, %v2121_v31  ;;  %v2067_v5 = vadd.f32 %v2066_v9, %v2065_v7  ;;  %v2076_v27 = vadd.f32 %v2075_v41, %v2074_v26  ;;  %v2062_v38 = vadd.f32 %v2061_v10, %v2060_v30 }
 0x78b   :  { %v2128_v48 = vsel %vm2057_vm11, %v2051_v8, 0.0  ;;  %v2079_v57 = vsel %vm2057_vm11, %v2044_v56, 0.0 }
 0x78c   :  { %v2012_v12 = vpop.permute.xlu0 %2011  ;;  %v1963_v2 = vpop.permute.xlu1 %1962  ;;  %v2124_v17 = vrot.slane %v2123_v53, 2  ;;  %v2129_v34 = vrot.slane %v2128_v48, 4  ;;  %v2068_v23 = vrot.slane %v2067_v5, 2  ;;  %v2080_v52 = vrot.slane %v2079_v57, 4 }
 0x78d   :  { %v2052_v22 = vmul.f32 %v2012_v12, %v5281_v46  ;;  %v2045_v24 = vmul.f32 %v1963_v2, %v5304_v63  ;;  %v2077_v7 = vrot.slane %v2076_v27, 1  ;;  %v2063_v26 = vrot.slane %v2062_v38, 1 }
 0x78e   :  { %v2125_v55 = vadd.f32 %v2124_v17, %v2123_v53  ;;  %v2130_v43 = vadd.f32 %v2129_v34, %v2128_v48  ;;  %v2069_v6 = vadd.f32 %v2068_v23, %v2067_v5  ;;  %v2081_v8 = vadd.f32 %v2080_v52, %v2079_v57 }
 0x78f   :  { %v2135_v58 = vsel %vm2057_vm11, %v2052_v22, 0.0  ;;  %v2086_v39 = vsel %vm2057_vm11, %v2045_v24, 0.0  ;;  %v5642_v22 = vadd.f32 %v2077_v7, %v2076_v27 }
 0x790   :  { %v2087_v14 = vrot.slane %v2086_v39, 4  ;;  %v2019_v0 = vpop.permute.xlu0 %2018  ;;  %v1970_v40 = vpop.permute.xlu1 %1969  ;;  %v2136_v9 = vrot.slane %v2135_v58, 4  ;;  %v2126_v2 = vrot.slane %v2125_v55, 1  ;;  %v2131_v24 = vrot.slane %v2130_v43, 2 }
 0x791   :  { %v2053_v61 = vmul.f32 %v2019_v0, %v5347_v33  ;;  %v2046_v31 = vmul.f32 %v1970_v40, %v5322_v18  ;;  %v2064_v0 = vadd.f32 %v2063_v26, %v2062_v38  ;;  %v2070_v57 = vrot.slane %v2069_v6, 1 }
 0x792   :  { %v2088_v56 = vadd.f32 %v2087_v14, %v2086_v39  ;;  %v2137_v48 = vadd.f32 %v2136_v9, %v2135_v58  ;;  %v2082_v39 = vrot.slane %v2081_v8, 2  ;;  %v5646_v4 = vadd.f32 %v2126_v2, %v2125_v55 }
 0x793   :  { %v2142_v30 = vsel %vm2057_vm11, %v2053_v61, 0.0  ;;  %v2093_v49 = vsel %vm2057_vm11, %v2046_v31, 0.0  ;;  %v2132_v9 = vadd.f32 %v2131_v24, %v2130_v43 }
 0x794   :  { %v2143_v41 = vrot.slane %v2142_v30, 4  ;;  %v2026_v10 = vpop.permute.xlu0 %2025  ;;  %v1977_v12 = vpop.permute.xlu1 %1976  ;;  %v2094_v53 = vrot.slane %v2093_v49, 4  ;;  %v2089_v23 = vrot.slane %v2088_v56, 2  ;;  %v2138_v38 = vrot.slane %v2137_v48, 2 }
 0x795   :  { %v2054_v17 = vmul.f32 %v2026_v10, %v5364_v44  ;;  %v2047_v34 = vmul.f32 %v1977_v12, %v5326_v20  ;;  %v2133_v43 = vrot.slane %v2132_v9, 1 }
 0x796   :  { %v2144_v40 = vadd.f32 %v2143_v41, %v2142_v30  ;;  %v2095_v61 = vadd.f32 %v2094_v53, %v2093_v49  ;;  %v2083_v53 = vadd.f32 %v2082_v39, %v2081_v8 }
 0x797   :  { %v2149_v5 = vsel %vm2057_vm11, %v2054_v17, 0.0  ;;  %v2100_v27 = vsel %vm2057_vm11, %v2047_v34, 0.0  ;;  %v2090_v17 = vadd.f32 %v2089_v23, %v2088_v56  ;;  %v2071_v34 = vadd.f32 %v2070_v57, %v2069_v6 }
 0x798   :  { %v2150_v52 = vrot.slane %v2149_v5, 4  ;;  %v2033_v14 = vpop.permute.xlu0 %2032  ;;  %v1991_v31 = vpop.permute.xlu1 %1990  ;;  %v2096_v26 = vrot.slane %v2095_v61, 2  ;;  %v2145_v49 = vrot.slane %v2144_v40, 2  ;;  %v2101_v41 = vrot.slane %v2100_v27, 4 }
 0x799   :  { %v2055_v7 = vmul.f32 %v2033_v14, %v5368_v47  ;;  %v2049_v58 = vmul.f32 %v1991_v31, %v5240_v21  ;;  %v2091_v8 = vrot.slane %v2090_v17, 1 }
 0x79a   :  { %v2151_v30 = vadd.f32 %v2150_v52, %v2149_v5  ;;  %v2102_v14 = vadd.f32 %v2101_v41, %v2100_v27  ;;  %v2097_v24 = vadd.f32 %v2096_v26, %v2095_v61  ;;  %v2139_v52 = vadd.f32 %v2138_v38, %v2137_v48 }
 0x79b   :  { %v2156_v10 = vsel %vm2057_vm11, %v2055_v7, 0.0  ;;  %v2114_v12 = vsel %vm2057_vm11, %v2049_v58, 0.0  ;;  %v2146_v51 = vadd.f32 %v2145_v49, %v2144_v40  ;;  %v2084_v58 = vrot.slane %v2083_v53, 1 }
 0x79c   :  { %v2157_v55 = vrot.slane %v2156_v10, 4  ;;  %v2115_v2 = vrot.slane %v2114_v12, 4  ;;  %v1984_v1 = vpop.permute.xlu1 %1983  ;;  %v2152_v15 = vrot.slane %v2151_v30, 2  ;;  %v2103_v47 = vrot.slane %v2102_v14, 2 }
 0x79d   :  { %v2048_v31 = vmul.f32 %v1984_v1, %v5343_v32  ;;  %v2186_v1 = vsel %vm729_vm3, %v2071_v34, %v2064_v0  ;;  %v2098_v61 = vrot.slane %v2097_v24, 1  ;;  %v2140_v48 = vrot.slane %v2139_v52, 1 }
 0x79e   :  { %v2158_v59 = vadd.f32 %v2157_v55, %v2156_v10  ;;  %v2116_v5 = vadd.f32 %v2115_v2, %v2114_v12  ;;  %v2153_v44 = vadd.f32 %v2152_v15, %v2151_v30  ;;  %v2104_v6 = vadd.f32 %v2103_v47, %v2102_v14 }
 0x79f   :  { %v2107_v7 = vsel %vm2057_vm11, %v2048_v31, 0.0  ;;  %v2147_v40 = vrot.slane %v2146_v51, 1  ;;  %v2085_v10 = vadd.f32 %v2084_v58, %v2083_v53  ;;  %v2134_v31 = vadd.f32 %v2133_v43, %v2132_v9 }
 0x7a0   :  { %v2117_v56 = vrot.slane %v2116_v5, 2  ;;  %v2108_v39 = vrot.slane %v2107_v7, 4  ;;  %v2040_v23 = vpop.permute.xlu1 %2039  ;;  %v2159_v57 = vrot.slane %v2158_v59, 2  ;;  %v2105_v38 = vrot.slane %v2104_v6, 1 }
 0x7a1   :  { %v2056_v27 = vmul.f32 %v2040_v23, %v5384_v3  ;;  %v2092_v15 = vadd.f32 %v2091_v8, %v2090_v17  ;;  %v2154_v47 = vrot.slane %v2153_v44, 1  ;;  %v2099_v14 = vadd.f32 %v2098_v61, %v2097_v24 }
 0x7a2   :  { %v2118_v26 = vadd.f32 %v2117_v56, %v2116_v5  ;;  %v2109_v41 = vadd.f32 %v2108_v39, %v2107_v7  ;;  %v2160_v30 = vadd.f32 %v2159_v57, %v2158_v59  ;;  %v2141_v34 = vadd.f32 %v2140_v48, %v2139_v52 }
 0x7a3   :  { %v2163_v49 = vsel %vm2057_vm11, %v2056_v27, 0.0  ;;  %v2148_v5 = vadd.f32 %v2147_v40, %v2146_v51  ;;  %v2106_v7 = vadd.f32 %v2105_v38, %v2104_v6  ;;  %v2187_v56 = vsel %vm731_vm4, %v5642_v22, %v2186_v1 }
 0x7a4   :  { %v2119_v12 = vrot.slane %v2118_v26, 1  ;;  %v2110_v55 = vrot.slane %v2109_v41, 2  ;;  %v2164_v2 = vrot.slane %v2163_v49, 4  ;;  %v2188_v9 = vsel %vm733_vm5, %v2085_v10, %v2187_v56 }
 0x7a5   :  { %v2155_v17 = vadd.f32 %v2154_v47, %v2153_v44  ;;  %v2161_v43 = vrot.slane %v2160_v30, 1  ;;  %v2189_v59 = vsel %vm735_vm6, %v2092_v15, %v2188_v9  ;;  %v1134_v48 = vrot.slane %v5501_v36, %v5583_v42  ;;  %v2221_v9 = vld [vmem:[#allocation10 + $0x10] sm:$0xff] }
 0x7a6   :  { %v2120_v23 = vadd.f32 %v2119_v12, %v2118_v26  ;;  %v2111_v3 = vadd.f32 %v2110_v55, %v2109_v41  ;;  %v2165_v0 = vadd.f32 %v2164_v2, %v2163_v49  ;;  %v2190_v51 = vsel %vm737_vm7, %v2099_v14, %v2189_v59 }
 0x7a7   :  { %v2191_v22 = vsel %vm739_vm8, %v2106_v7, %v2190_v51  ;;  %v2162_v1 = vadd.f32 %v2161_v43, %v2160_v30  ;;  %v1127_v40 = vrot.slane %v5501_v36, %v5589_v60  ;;  %v1183_v38 = vrot.slane %v5507_v54, %v5589_v60 }
 0x7a8   :  { %v2193_v53 = vsel %vm729_vm3, %v5646_v4, %v2120_v23  ;;  %v2166_v58 = vrot.slane %v2165_v0, 2  ;;  %v2112_v39 = vrot.slane %v2111_v3, 1  ;;  %v1176_v49 = vrot.slane %v5507_v54, %v5235_v19 }
 0x7a9   :  { %v2194_v24 = vsel %vm731_vm4, %v2134_v31, %v2193_v53  ;;  %v1190_v10 = vrot.slane %v5507_v54, %v5583_v42  ;;  %v1141_v12 = vrot.slane %v5501_v36, %v5595_v25  ;;  %v1197_v55 = vrot.slane %v5507_v54, %v5595_v25 }
 0x7aa   :  { %v2167_v8 = vadd.f32 %v2166_v58, %v2165_v0  ;;  %v2113_v52 = vadd.f32 %v2112_v39, %v2111_v3  ;;  %v2195_v6 = vsel %vm733_vm5, %v2141_v34, %v2194_v24  ;;  %v1120_v3 = vrot.slane %v5501_v36, %v5235_v19  ;;  %v2219_v34 = vld [vmem:[#allocation10] sm:$0xff] }
 0x7ab   :  { %v2196_v4 = vsel %vm735_vm6, %v2148_v5, %v2195_v6  ;;  %v1148_v2 = vrot.slane %v5501_v36, %v5600_v50  ;;  %v1204_v31 = vrot.slane %v5507_v54, %v5600_v50  ;;  %v1155_v15 = vrot.slane %v5501_v36, %v5605_v11  ;;  %v2220_v5 = vld [vmem:[#allocation10 + $0x8] sm:$0xff] }
 0x7ac   :  { %v2192_v57 = vsel %vm741_vm9, %v2113_v52, %v2191_v22  ;;  %v2168_v27 = vrot.slane %v2167_v8, 1  ;;  %v2197_v44 = vsel %vm737_vm7, %v2155_v17, %v2196_v4  ;;  %v1211_v47 = vrot.slane %v5507_v54, %v5605_v11  ;;  %v2222_v17 = vld [vmem:[#allocation10 + $0x18] sm:$0xff] }
 0x7ad   :  { %2200 = vrot.lane.b32.xlu0 %v2192_v57, %s5016_s12  ;;  %v2198_v26 = vsel %vm739_vm8, %v2162_v1, %v2197_v44  ;;  %v1162_v30 = vrot.slane %v5501_v36, %v5610_v13  ;;  %v1218_v14 = vrot.slane %v5507_v54, %v5610_v13  ;;  %v1169_v23 = vrot.slane %v5501_v36, %v5617_v16 }
 0x7ae   :  { %v2169_v61 = vadd.f32 %v2168_v27, %v2167_v8  ;;  %v1225_v0 = vrot.slane %v5507_v54, %v5617_v16  ;;  %v4761_v7 = vpack.c.bf16 %v2220_v5, %v2219_v34  ;;  %v4765_v43 = vpack.c.bf16 %v2222_v17, %v2221_v9 }
 0x7af   :  { %v6354_v36 = vmov 0.0  }
 0x7b0   :  { %v2199_v41 = vsel %vm741_vm9, %v2169_v61, %v2198_v26  ;;  %4762 = vmatprep.subr.bf16.mxu1 %v4761_v7 }
 0x7b1   :  { %1122 = vbcast.lane.b32.xlu0 %v1120_v3, 256  ;;  %2202 = vrot.lane.b32.xlu1 %v2199_v41, %s5016_s12 }
 0x7b2   :  { %4764 = vmatpush3.bf16.msra.mxu1 %v4761_v7 }
 0x7b3   :  { %4766 = vmatprep.subr.bf16.mxu1 %v4765_v43 }
 0x7b5   :  { %1136 = vbcast.lane.b32.xlu0 %v1134_v48, 256  ;;  %1129 = vbcast.lane.b32.xlu1 %v1127_v40, 256 }
 0x7b6   :  { %4768 = vmatpush3.bf16.msra.mxu1 %v4765_v43 }
 0x7b7   :  { %4694 = vmatprep.subr.mxu1 %v6354_v36 }
 0x7b9   :  { %1185 = vbcast.lane.b32.xlu0 %v1183_v38, 256  ;;  %1178 = vbcast.lane.b32.xlu1 %v1176_v49, 256 }
 0x7bd   :  { %1192 = vbcast.lane.b32.xlu0 %v1190_v10, 256  ;;  %1143 = vbcast.lane.b32.xlu1 %v1141_v12, 256 }
 0x7c1   :  { %1199 = vbcast.lane.b32.xlu0 %v1197_v55, 256  ;;  %1150 = vbcast.lane.b32.xlu1 %v1148_v2, 256 }
 0x7c5   :  { %1206 = vbcast.lane.b32.xlu0 %v1204_v31, 256  ;;  %1157 = vbcast.lane.b32.xlu1 %v1155_v15, 256 }
 0x7c9   :  { %1213 = vbcast.lane.b32.xlu0 %v1211_v47, 256  ;;  %1164 = vbcast.lane.b32.xlu1 %v1162_v30, 256 }
 0x7cd   :  { %1220 = vbcast.lane.b32.xlu0 %v1218_v14, 256  ;;  %1171 = vbcast.lane.b32.xlu1 %v1169_v23, 256 }
 0x7d1   :  { %1227 = vbcast.lane.b32.xlu1 %v1225_v0, 256 }
 0x7df   :  { %v1849_v56 = vpop.f32.mrb[14].mxu1 }
 0x7e0   :  { %v4666_v53 = vpop.f32.mrb[15].mxu1 }
 0x7e3   :  { %v1925_v58 = vpop.f32.mrb[16].mxu0 }
 0x7e4   :  { %v4671_v39 = vpop.f32.mrb[17].mxu0 }
 0x81f   :  { %v2201_v59 = vpop.permute.xlu0 %2200 }
 0x820   :  { %v2206_v24 = vadd.f32 %v2201_v59, %v1849_v56 }
 0x822   :  { %2210 = vrot.lane.b32.xlu0 %v2206_v24, %s5005_s1 }
 0x823   :  { %v2203_v54 = vpop.permute.xlu1 %2202  ;;  %v1123_v52 = vpop.permute.xlu0 %1122 }
 0x824   :  { %v2207_v8 = vadd.f32 %v2203_v54, %v1925_v58  ;;  %v1229_v3 = vmul.f32 %v1123_v52, %v5247_v28 }
 0x826   :  { %2212 = vrot.lane.b32.xlu1 %v2207_v8, %s5005_s1  ;;  %v1245_v41 = vsel %vm636_vm2, %v1229_v3, 0.0 }
 0x827   :  { %v1130_v51 = vpop.permute.xlu1 %1129  ;;  %v1137_v6 = vpop.permute.xlu0 %1136  ;;  %v1246_v49 = vrot.slane %v1245_v41, 4 }
 0x828   :  { %v1231_v40 = vmul.f32 %v1137_v6, %v5278_v45  ;;  %v1230_v38 = vmul.f32 %v1130_v51, %v5260_v35  ;;  %v6355_v6 = vld [vmem:[#allocation18_spill] sm:$0xff] }
 0x829   :  { %v1247_v31 = vadd.f32 %v1246_v49, %v1245_v41  ;;  %v6357_v41 = vld [vmem:[#allocation20_spill] sm:$0xff] }
 0x82a   :  { %v1259_v10 = vsel %vm636_vm2, %v1231_v40, 0.0  ;;  %v1252_v12 = vsel %vm636_vm2, %v1230_v38, 0.0 }
 0x82b   :  { %v1179_v22 = vpop.permute.xlu1 %1178  ;;  %v1186_v4 = vpop.permute.xlu0 %1185  ;;  %v1260_v47 = vrot.slane %v1259_v10, 4  ;;  %v1253_v30 = vrot.slane %v1252_v12, 4  ;;  %v1248_v56 = vrot.slane %v1247_v31, 2 }
 0x82c   :  { %v1238_v23 = vmul.f32 %v1186_v4, %v5264_v37  ;;  %v1237_v0 = vmul.f32 %v1179_v22, %v5240_v21 }
 0x82d   :  { %v1261_v17 = vadd.f32 %v1260_v47, %v1259_v10  ;;  %v1254_v43 = vadd.f32 %v1253_v30, %v1252_v12  ;;  %v1249_v25 = vadd.f32 %v1248_v56, %v1247_v31 }
 0x82e   :  { %v1308_v8 = vsel %vm636_vm2, %v1238_v23, 0.0  ;;  %v1301_v52 = vsel %vm636_vm2, %v1237_v0, 0.0 }
 0x82f   :  { %v1144_v57 = vpop.permute.xlu1 %1143  ;;  %v1193_v27 = vpop.permute.xlu0 %1192  ;;  %v1309_v40 = vrot.slane %v1308_v8, 4  ;;  %v1302_v38 = vrot.slane %v1301_v52, 4  ;;  %v1255_v12 = vrot.slane %v1254_v43, 2  ;;  %v1262_v0 = vrot.slane %v1261_v17, 2 }
 0x830   :  { %v1232_v15 = vmul.f32 %v1144_v57, %v5300_v62  ;;  %v1239_v5 = vmul.f32 %v1193_v27, %v5250_v29 }
 0x832   :  { %v1266_v53 = vsel %vm636_vm2, %v1232_v15, 0.0  ;;  %v1315_v4 = vsel %vm636_vm2, %v1239_v5, 0.0 }
 0x833   :  { %v1151_v44 = vpop.permute.xlu1 %1150  ;;  %v1200_v1 = vpop.permute.xlu0 %1199  ;;  %v1267_v57 = vrot.slane %v1266_v53, 4 }
 0x834   :  { %v1233_v14 = vmul.f32 %v1151_v44, %v5304_v63  ;;  %v1240_v58 = vmul.f32 %v1200_v1, %v5281_v46  ;;  %v6356_v44 = vld [vmem:[#allocation19_spill] sm:$0xff] }
 0x835   :  { %v1268_v47 = vadd.f32 %v1267_v57, %v1266_v53 }
 0x836   :  { %v1273_v59 = vsel %vm636_vm2, %v1233_v14, 0.0 }
 0x837   :  { %v1158_v61 = vpop.permute.xlu1 %1157  ;;  %v1207_v26 = vpop.permute.xlu0 %1206  ;;  %v1274_v3 = vrot.slane %v1273_v59, 4 }
 0x838   :  { %v1234_v34 = vmul.f32 %v1158_v61, %v5322_v18  ;;  %v1241_v24 = vmul.f32 %v1207_v26, %v5347_v33  ;;  %v1322_v61 = vsel %vm636_vm2, %v1240_v58, 0.0  ;;  %v1310_v58 = vadd.f32 %v1309_v40, %v1308_v8 }
 0x839   :  { %v1323_v30 = vrot.slane %v1322_v61, 4 }
 0x83a   :  { %v1280_v51 = vsel %vm636_vm2, %v1234_v34, 0.0  ;;  %v1329_v49 = vsel %vm636_vm2, %v1241_v24, 0.0  ;;  %v1275_v34 = vadd.f32 %v1274_v3, %v1273_v59  ;;  %v1311_v59 = vrot.slane %v1310_v58, 2 }
 0x83b   :  { %v1165_v48 = vpop.permute.xlu1 %1164  ;;  %v1214_v55 = vpop.permute.xlu0 %1213  ;;  %v1281_v10 = vrot.slane %v1280_v51, 4  ;;  %v1330_v5 = vrot.slane %v1329_v49, 4  ;;  %v1324_v50 = vadd.f32 %v1323_v30, %v1322_v61 }
 0x83c   :  { %v1235_v7 = vmul.f32 %v1165_v48, %v5326_v20  ;;  %v1242_v22 = vmul.f32 %v1214_v55, %v6355_v6  ;;  %v1316_v55 = vrot.slane %v1315_v4, 4  ;;  %v1312_v31 = vadd.f32 %v1311_v59, %v1310_v58 }
 0x83e   :  { %v1287_v27 = vsel %vm636_vm2, %v1235_v7, 0.0  ;;  %v1317_v16 = vadd.f32 %v1316_v55, %v1315_v4  ;;  %v1325_v4 = vrot.slane %v1324_v50, 2 }
 0x83f   :  { %v1172_v2 = vpop.permute.xlu1 %1171  ;;  %v1221_v39 = vpop.permute.xlu0 %1220  ;;  %v1288_v15 = vrot.slane %v1287_v27, 4 }
 0x840   :  { %v1236_v9 = vmul.f32 %v1172_v2, %v5343_v32  ;;  %v1243_v1 = vmul.f32 %v1221_v39, %v6356_v44  ;;  %v1336_v2 = vsel %vm636_vm2, %v1242_v22, 0.0  ;;  %v1303_v39 = vadd.f32 %v1302_v38, %v1301_v52 }
 0x841   :  { %v1337_v24 = vrot.slane %v1336_v2, 4  ;;  %v1289_v13 = vadd.f32 %v1288_v15, %v1287_v27  ;;  %v1269_v22 = vrot.slane %v1268_v47, 2  ;;  %v1331_v32 = vadd.f32 %v1330_v5, %v1329_v49 }
 0x842   :  { %v1294_v26 = vsel %vm636_vm2, %v1236_v9, 0.0  ;;  %v1343_v14 = vsel %vm636_vm2, %v1243_v1, 0.0  ;;  %v1282_v9 = vadd.f32 %v1281_v10, %v1280_v51  ;;  %v1263_v1 = vadd.f32 %v1262_v0, %v1261_v17 }
 0x843   :  { %v1228_v54 = vpop.permute.xlu1 %1227  ;;  %v1295_v23 = vrot.slane %v1294_v26, 4  ;;  %v1344_v11 = vrot.slane %v1343_v14, 4  ;;  %v1304_v3 = vrot.slane %v1303_v39, 2  ;;  %v1318_v52 = vrot.slane %v1317_v16, 2 }
 0x844   :  { %v1244_v48 = vmul.f32 %v1228_v54, %v6357_v41  ;;  %v1256_v54 = vadd.f32 %v1255_v12, %v1254_v43  ;;  %v1276_v41 = vrot.slane %v1275_v34, 2  ;;  %v1283_v44 = vrot.slane %v1282_v9, 2 }
 0x845   :  { %v1296_v53 = vadd.f32 %v1295_v23, %v1294_v26  ;;  %v1290_v51 = vrot.slane %v1289_v13, 2  ;;  %v1345_v40 = vadd.f32 %v1344_v11, %v1343_v14  ;;  %v1270_v43 = vadd.f32 %v1269_v22, %v1268_v47 }
 0x846   :  { %v1350_v7 = vsel %vm636_vm2, %v1244_v48, 0.0  ;;  %v1338_v48 = vadd.f32 %v1337_v24, %v1336_v2  ;;  %v1257_v8 = vrot.slane %v1256_v54, 1  ;;  %v1250_v10 = vrot.slane %v1249_v25, 1 }
 0x847   :  { %v1351_v57 = vrot.slane %v1350_v7, 4  ;;  %v1297_v27 = vrot.slane %v1296_v53, 2  ;;  %v1264_v61 = vrot.slane %v1263_v1, 1  ;;  %v1277_v26 = vadd.f32 %v1276_v41, %v1275_v34 }
 0x848   :  { %v1332_v12 = vrot.slane %v1331_v32, 2  ;;  %v1305_v56 = vadd.f32 %v1304_v3, %v1303_v39  ;;  %v1284_v17 = vadd.f32 %v1283_v44, %v1282_v9  ;;  %v1339_v49 = vrot.slane %v1338_v48, 2 }
 0x849   :  { %v1352_v38 = vadd.f32 %v1351_v57, %v1350_v7  ;;  %v1258_v55 = vadd.f32 %v1257_v8, %v1256_v54  ;;  %v1319_v15 = vadd.f32 %v1318_v52, %v1317_v16  ;;  %v1291_v30 = vadd.f32 %v1290_v51, %v1289_v13 }
 0x84a   :  { %v1346_v2 = vrot.slane %v1345_v40, 2  ;;  %v1271_v23 = vrot.slane %v1270_v43, 1  ;;  %v1326_v0 = vadd.f32 %v1325_v4, %v1324_v50  ;;  %v1298_v5 = vadd.f32 %v1297_v27, %v1296_v53 }
 0x84b   :  { %v1353_v11 = vrot.slane %v1352_v38, 2  ;;  %v1251_v47 = vadd.f32 %v1250_v10, %v1249_v25  ;;  %v1265_v14 = vadd.f32 %v1264_v61, %v1263_v1  ;;  %v1278_v24 = vrot.slane %v1277_v26, 1 }
 0x84c   :  { %v1333_v7 = vadd.f32 %v1332_v12, %v1331_v32  ;;  %v1313_v22 = vrot.slane %v1312_v31, 1  ;;  %v1306_v57 = vrot.slane %v1305_v56, 1  ;;  %v1285_v41 = vrot.slane %v1284_v17, 1 }
 0x84d   :  { %v1340_v34 = vadd.f32 %v1339_v49, %v1338_v48  ;;  %v1373_v58 = vsel %vm729_vm3, %v1258_v55, %v1251_v47  ;;  %v1320_v44 = vrot.slane %v1319_v15, 1  ;;  %v1292_v39 = vrot.slane %v1291_v30, 1 }
 0x84e   :  { %v1347_v9 = vadd.f32 %v1346_v2, %v1345_v40  ;;  %v1272_v16 = vadd.f32 %v1271_v23, %v1270_v43  ;;  %v1327_v13 = vrot.slane %v1326_v0, 1  ;;  %v1299_v54 = vrot.slane %v1298_v5, 1  ;;  %v6358_v23 = vld [vmem:[#allocation22_spill] sm:$0xff] }
 0x84f   :  { %v1354_v59 = vadd.f32 %v1353_v11, %v1352_v38  ;;  %v1279_v50 = vadd.f32 %v1278_v24, %v1277_v26  ;;  %v1334_v53 = vrot.slane %v1333_v7, 1  ;;  %v1314_v3 = vadd.f32 %v1313_v22, %v1312_v31  ;;  %v6359_v24 = vld [vmem:[#allocation23_spill] sm:$0xff] }
 0x850   :  { %v1307_v25 = vadd.f32 %v1306_v57, %v1305_v56  ;;  %v1286_v1 = vadd.f32 %v1285_v41, %v1284_v17  ;;  %v1341_v8 = vrot.slane %v1340_v34, 1  ;;  %v1321_v32 = vadd.f32 %v1320_v44, %v1319_v15  ;;  %v2218_v41 = vld [vmem:[%s6313_s7] sm:$0x7] }
 0x851   :  { %v1374_v52 = vsel %vm731_vm4, %v1265_v14, %v1373_v58  ;;  %v1293_v51 = vadd.f32 %v1292_v39, %v1291_v30  ;;  %v1348_v48 = vrot.slane %v1347_v9, 1  ;;  %v1328_v27 = vadd.f32 %v1327_v13, %v1326_v0  ;;  %v4859_v13 = vld [vmem:[#allocation2 + $0x8] sm:$0xff] }
 0x852   :  { %v1375_v4 = vsel %vm733_vm5, %v1272_v16, %v1374_v52  ;;  %v1300_v10 = vadd.f32 %v1299_v54, %v1298_v5  ;;  %v1355_v40 = vrot.slane %v1354_v59, 1  ;;  %v1335_v61 = vadd.f32 %v1334_v53, %v1333_v7 }
 0x853   :  { %v1376_v43 = vsel %vm735_vm6, %v1279_v50, %v1375_v4  ;;  %v1380_v38 = vsel %vm729_vm3, %v1314_v3, %v1307_v25  ;;  %v1342_v26 = vadd.f32 %v1341_v8, %v1340_v34  ;;  %v1349_v56 = vadd.f32 %v1348_v48, %v1347_v9  ;;  %v4860_v50 = vld [vmem:[#allocation2] sm:$0xff] }
 0x854   :  { %v1377_v12 = vsel %vm737_vm7, %v1286_v1, %v1376_v43  ;;  %v1381_v31 = vsel %vm731_vm4, %v1321_v32, %v1380_v38  ;;  %v1356_v55 = vadd.f32 %v1355_v40, %v1354_v59  ;;  %v2226_v34 = vrot.slane %v2218_v41, %v5235_v19 }
 0x855   :  { %v1378_v17 = vsel %vm739_vm8, %v1293_v51, %v1377_v12  ;;  %v1382_v49 = vsel %vm733_vm5, %v1328_v27, %v1381_v31  ;;  %v2317_v58 = vrot.slane %v2218_v41, %v5583_v42  ;;  %v2311_v44 = vrot.slane %v2218_v41, %v5589_v60 }
 0x856   :  { %v1379_v15 = vsel %vm741_vm9, %v1300_v10, %v1378_v17  ;;  %v1383_v30 = vsel %vm735_vm6, %v1335_v61, %v1382_v49 }
 0x857   :  { %v1384_v2 = vsel %vm737_vm7, %v1342_v26, %v1383_v30  ;;  %v1389_v0 = vadd.f32 %v1379_v15, %v6358_v23  ;;  %v2319_v54 = vmul.f32 %v4859_v13, %v2317_v58  ;;  %v2318_v53 = vmul.f32 %v4860_v50, %v2317_v58  ;;  %v2376_v58 = vld [vmem:[#allocation7 + $0x28] sm:$0xff] }
 0x858   :  { %v1385_v5 = vsel %vm739_vm8, %v1349_v56, %v1384_v2 }
 0x859   :  { %v1386_v47 = vsel %vm741_vm9, %v1356_v55, %v1385_v5 }
 0x85a   :  { %v1390_v7 = vadd.f32 %v1386_v47, %v6359_v24 }
 0x894   :  { %v2211_v11 = vpop.permute.xlu0 %2210 }
 0x895   :  { %v2216_v14 = vsel %vm636_vm2, %v1389_v0, %v2211_v11 }
 0x896   :  { %4680 = vmatprep.mubr.msk.f32.mxu1 %vm127_vm0, %v2216_v14 }
 0x898   :  { %v2213_v22 = vpop.permute.xlu1 %2212 }
 0x899   :  { %v2217_v57 = vsel %vm636_vm2, %v1390_v7, %v2213_v22 }
 0x89a   :  { %4681 = vmatmul.mubr.msk.f32.vlgmr.msra.gmra.mrb[16].mxu1 %vm127_vm0, %v2217_v57 }
 0x89b   :  { %4696 = vmatprep.mubr.msk.f32.mxu1 %vm5011_vm1, %v6354_v36 }
 0x96d   :  { %v4682_v39 = vpop.f32.mrb[16].mxu1 }
 0x96e   :  { %v2305_v9 = vadd.f32 %v4682_v39, %v2226_v34  ;;  %v2299_v16 = vpop.f32.mrb[17].mxu1 }
 0x96f   :  { %v2300_v59 = vadd.f32 %v2299_v16, %v2226_v34  ;;  %v2375_v34 = vld [vmem:[#allocation7 + $0x20] sm:$0xff] }
 0x970   :  { %v2313_v3 = vmul.f32 %v2311_v44, %v2305_v9  ;;  %v4769_v39 = vpack.c.bf16 %v2376_v58, %v2375_v34 }
 0x971   :  { %v2312_v25 = vmul.f32 %v2311_v44, %v2300_v59  ;;  %v2377_v44 = vld [vmem:[#allocation7 + $0x30] sm:$0xff] }
 0x972   :  { %v2321_v1 = vadd.f32 %v2319_v54, %v2313_v3  ;;  %4770 = vmatprep.subr.bf16.mxu0 %v4769_v39 }
 0x973   :  { %v2320_v8 = vadd.f32 %v2318_v53, %v2312_v25  ;;  %4772 = vmatpush3.bf16.msra.mxu0 %v4769_v39 }
 0x974   :  { %v2325_v32 = vsel %vm127_vm0, %v2321_v1, 0.0 }
 0x975   :  { %2326 = vadd.xlane.f32.xlu1 %v2325_v32  ;;  %v2322_v52 = vsel %vm127_vm0, %v2320_v8, 0.0 }
 0x976   :  { %2323 = vadd.xlane.f32.xlu0 %v2322_v52  ;;  %v4493_v52 = vld [vmem:[#allocation8 + $0x1] ss:$0 sm:$0xff] }
 0xa02   :  { %v2327_v51 = vpop.xlane.xlu1 %2326 }
 0xa03   :  { %v4492_v48 = vmul.f32 -1.442695, %v2327_v51  ;;  %v2324_v4 = vpop.xlane.xlu0 %2323 }
 0xa04   :  { %v4491_v27 = vmul.f32 -1.442695, %v2324_v4 }
 0xa05   :  { %4823 = vpow2.f32 %v4492_v48 }
 0xa06   :  { %4825 = vpow2.f32 %v4491_v27 }
 0xa0f   :  { %v4824_v10 = vpop.eup %4823 }
 0xa10   :  { %v4826_v40 = vpop.eup %4825  ;;  %v2335_v43 = vadd.f32 1.0, %v4824_v10  ;;  %v6361_v10 = vld [vmem:[#allocation19_spill] sm:$0xff] }
 0xa11   :  { %v2334_v61 = vadd.f32 1.0, %v4826_v40  ;;  %v6362_v40 = vld [vmem:[#allocation17_spill] sm:$0xff] }
 0xa12   :  { %4827 = vrcp.f32 %v2335_v43  ;;  %v6363_v43 = vld [vmem:[#allocation20_spill] sm:$0xff] }
 0xa13   :  { %4829 = vrcp.f32 %v2334_v61  ;;  %v6364_v61 = vld [vmem:[#allocation16_spill] sm:$0xff] }
 0xa1c   :  { %v4828_v38 = vpop.eup %4827 }
 0xa1d   :  { %v4830_v26 = vpop.eup %4829  ;;  %v2343_v12 = vsub.f32 1.0, %v4828_v38  ;;  %v2341_v15 = vmul.f32 %v4828_v38, %v2305_v9  ;;  %v2378_v9 = vld [vmem:[#allocation7 + $0x38] sm:$0xff] }
 0xa1e   :  { %v2342_v31 = vsub.f32 1.0, %v4830_v26  ;;  %v2340_v56 = vmul.f32 %v4830_v26, %v2300_v59  ;;  %v4773_v16 = vpack.c.bf16 %v2378_v9, %v2377_v44 }
 0xa1f   :  { %v2345_v49 = vmul.f32 %v4859_v13, %v2343_v12 }
 0xa20   :  { %v2344_v17 = vmul.f32 %v4860_v50, %v2342_v31  ;;  %4774 = vmatprep.subr.bf16.mxu0 %v4773_v16 }
 0xa21   :  { %v5776_v2 = vadd.f32 %v2345_v49, %v2341_v15  ;;  %4776 = vmatpush3.bf16.msra.mxu0 %v4773_v16 }
 0xa22   :  { %v5772_v55 = vadd.f32 %v2344_v17, %v2340_v56  ;;  %4699 = vmatprep.subr.mxu0 %v6354_v36 }
 0xa23   :  { %v2351_v23 = vsel %vm127_vm0, %v5776_v2, 0.0 }
 0xa24   :  { %6360 = vst [vmem:[#allocation18_spill] sm:$0xff] %v5772_v55  ;;  %v2348_v30 = vsel %vm127_vm0, %v5772_v55, 0.0 }
 0xa25   :  { %2349 = vadd.xlane.f32.xlu0 %v2348_v30 }
 0xa29   :  { %2352 = vadd.xlane.f32.xlu0 %v2351_v23 }
 0xab2   :  { %v2350_v0 = vpop.xlane.xlu0 %2349 }
 0xab3   :  { %v2354_v5 = vmul.f32 0.03125, %v2350_v0 }
 0xab5   :  { %v2356_v11 = vsub.f32 %v5772_v55, %v2354_v5 }
 0xab6   :  { %v2353_v47 = vpop.xlane.xlu0 %2352 }
 0xab7   :  { %v2355_v14 = vmul.f32 0.03125, %v2353_v47  ;;  %v2358_v24 = vmul.f32 %v2356_v11, %v2356_v11 }
 0xab9   :  { %v2357_v7 = vsub.f32 %v5776_v2, %v2355_v14  ;;  %v2360_v22 = vsel %vm127_vm0, %v2358_v24, 0.0 }
 0xaba   :  { %2361 = vadd.xlane.f32.xlu0 %v2360_v22 }
 0xabb   :  { %v2359_v57 = vmul.f32 %v2357_v7, %v2357_v7 }
 0xabd   :  { %v2363_v41 = vsel %vm127_vm0, %v2359_v57, 0.0 }
 0xabe   :  { %2364 = vadd.xlane.f32.xlu1 %v2363_v41 }
 0xb47   :  { %v2362_v13 = vpop.xlane.xlu0 %2361 }
 0xb48   :  { %v2366_v54 = vmul.f32 0.03125, %v2362_v13 }
 0xb4a   :  { %v2368_v59 = vadd.f32 1e-05, %v2366_v54 }
 0xb4b   :  { %v2365_v50 = vpop.xlane.xlu1 %2364 }
 0xb4c   :  { %4831 = vrsqrt.f32 %v2368_v59  ;;  %v2367_v53 = vmul.f32 0.03125, %v2365_v50 }
 0xb4e   :  { %v2369_v3 = vadd.f32 1e-05, %v2367_v53 }
 0xb50   :  { %4833 = vrsqrt.f32 %v2369_v3 }
 0xb56   :  { %v4832_v25 = vpop.eup %4831 }
 0xb57   :  { %v2372_v1 = vmul.f32 %v4832_v25, %v2356_v11 }
 0xb59   :  { %4691 = vmatprep.mubr.msk.f32.mxu0 %vm127_vm0, %v2372_v1 }
 0xb5a   :  { %v4834_v8 = vpop.eup %4833 }
 0xb5b   :  { %v2373_v32 = vmul.f32 %v4834_v8, %v2357_v7 }
 0xb5d   :  { %4692 = vmatmul.mubr.msk.f32.vlgmr.msra.gmra.mrb[18].mxu0 %vm127_vm0, %v2373_v32 }
 0xb5e   :  { %4701 = vmatprep.mubr.msk.f32.mxu0 %vm5011_vm1, %v6354_v36 }
 0xc30   :  { %v4693_v51 = vpop.f32.mrb[18].mxu0 }
 0xc31   :  { %v5789_v48 = vadd.f32 %v4693_v51, %v4493_v52  ;;  %v2459_v4 = vpop.f32.mrb[19].mxu0 }
 0xc32   :  { %v5791_v27 = vadd.f32 %v4493_v52, %v2459_v4 }
 0xc33   :  { %2900 = vrot.lane.b32.xlu1 %v5789_v48, %s5012_s4  ;;  %v2526_v17 = vrot.slane %v5789_v48, %v6364_v61  ;;  %v2519_v34 = vcombine.high %v5789_v48, %v5789_v48 }
 0xc34   :  { %2776 = vrot.lane.b32.xlu0 %v5791_v27, %s5012_s4  ;;  %v2477_v38 = vrot.slane %v5791_v27, %v6364_v61  ;;  %v2470_v0 = vcombine.high %v5791_v27, %v5791_v27 }
 0xc35   :  { %v2542_v23 = vrot.slane %v2526_v17, %v6364_v61  ;;  %v2534_v14 = vcombine.high %v2526_v17, %v2526_v17  ;;  %v2533_v50 = vrot.slane %v2519_v34, %v6364_v61 }
 0xc36   :  { %v2485_v26 = vcombine.high %v2477_v38, %v2477_v38  ;;  %v2493_v11 = vrot.slane %v2477_v38, %v6364_v61  ;;  %v2484_v57 = vrot.slane %v2470_v0, %v6364_v61 }
 0xc37   :  { %2664 = vrot.lane.b32.xlu1 %v5247_v28, %s5012_s4  ;;  %v2603_v7 = vrot.slane %v2542_v23, %v5235_v19  ;;  %v2556_v44 = vrot.slane %v2534_v14, %v6364_v61  ;;  %v2564_v3 = vcombine.high %v2542_v23, %v2542_v23  ;;  %v2549_v38 = vrot.slane %v2533_v50, %v6364_v61 }
 0xc38   :  { %2668 = vrot.lane.b32.xlu0 %v5278_v45, %s5012_s4  ;;  %v2507_v56 = vrot.slane %v2485_v26, %v6364_v61  ;;  %v2571_v58 = vrot.slane %v2493_v11, %v5235_v19  ;;  %v2500_v54 = vrot.slane %v2484_v57, %v6364_v61  ;;  %v2486_v1 = vcombine.high %v2484_v57, %v2484_v57 }
 0xc39   :  { %v2607_v53 = vrot.slane %v2556_v44, %v5235_v19  ;;  %v2611_v26 = vrot.slane %v2564_v3, %v5235_v19  ;;  %v2515_v0 = vcombine.high %v2493_v11, %v2493_v11 }
 0xc3a   :  { %v2575_v30 = vrot.slane %v2507_v56, %v5235_v19  ;;  %v2517_v25 = vcombine.high %v2507_v56, %v2507_v56  ;;  %v2587_v52 = vrot.slane %v2500_v54, %v5235_v19  ;;  %v2514_v56 = vrot.slane %v2486_v1, %v6364_v61 }
 0xc3b   :  { %2666 = vrot.lane.b32.xlu1 %v5260_v35, %s5012_s4  ;;  %v2516_v57 = vcombine.high %v2500_v54, %v2500_v54 }
 0xc3c   :  { %2682 = vrot.lane.b32.xlu0 %v5264_v37, %s5012_s4 }
 0xc3d   :  { %v2595_v54 = vrot.slane %v2516_v57, %v5235_v19 }
 0xc3f   :  { %2680 = vrot.lane.b32.xlu1 %v5240_v21, %s5012_s4 }
 0xc40   :  { %2684 = vrot.lane.b32.xlu0 %v5250_v29, %s5012_s4 }
 0xc43   :  { %2670 = vrot.lane.b32.xlu1 %v5300_v62, %s5012_s4 }
 0xc44   :  { %2686 = vrot.lane.b32.xlu0 %v5281_v46, %s5012_s4 }
 0xc47   :  { %2672 = vrot.lane.b32.xlu1 %v5304_v63, %s5012_s4 }
 0xc48   :  { %2688 = vrot.lane.b32.xlu0 %v5347_v33, %s5012_s4 }
 0xc4b   :  { %2674 = vrot.lane.b32.xlu1 %v5322_v18, %s5012_s4 }
 0xc4c   :  { %2690 = vrot.lane.b32.xlu0 %v6355_v6, %s5012_s4 }
 0xc4f   :  { %2676 = vrot.lane.b32.xlu1 %v5326_v20, %s5012_s4 }
 0xc50   :  { %2692 = vrot.lane.b32.xlu0 %v6361_v10, %s5012_s4 }
 0xc53   :  { %2678 = vrot.lane.b32.xlu1 %v6362_v40, %s5012_s4 }
 0xc57   :  { %2694 = vrot.lane.b32.xlu1 %v6363_v43, %s5012_s4 }
 0xca5   :  { %v2901_v12 = vpop.permute.xlu1 %2900 }
 0xca6   :  { %4700 = vmatpush3.xpose.msk.msra.mxu0 %vm636_vm2, %v2901_v12  ;;  %v2777_v31 = vpop.permute.xlu0 %2776  ;;  %v2583_v12 = vrot.slane %v2517_v25, %v5235_v19 }
 0xca7   :  { %4695 = vmatpush3.xpose.msk.msra.mxu1 %vm636_vm2, %v2777_v31  ;;  %4709 = vmatprep.subr.mxu0 %v6354_v36 }
 0xca8   :  { %4704 = vmatprep.subr.mxu1 %v6354_v36 }
 0xca9   :  { %4702 = vmatmul.mubr.msk.f32.vlgmr.msra.gmra.mrb[20].mxu0 %vm636_vm2, %v5789_v48  ;;  %v2665_v49 = vpop.permute.xlu1 %2664 }
 0xcaa   :  { %4697 = vmatmul.mubr.msk.f32.vlgmr.msra.gmra.mrb[18].mxu1 %vm636_vm2, %v5791_v27  ;;  %v5842_v15 = vpop.permute.xlu0 %2668  ;;  %4711 = vmatprep.mubr.msk.f32.mxu0 %vm5011_vm1, %v6354_v36  ;;  %v5865_v16 = vmul.f32 %v2665_v49, %v2571_v58 }
 0xcab   :  { %4706 = vmatprep.mubr.msk.f32.mxu1 %vm5011_vm1, %v6354_v36 }
 0xcac   :  { %v2728_v51 = vsel %vm636_vm2, %v5865_v16, 0.0 }
 0xcad   :  { %v2667_v5 = vpop.permute.xlu1 %2666 }
 0xcae   :  { %v5853_v47 = vmul.f32 %v2667_v5, %v2575_v30  ;;  %v2683_v24 = vpop.permute.xlu0 %2682 }
 0xcaf   :  { %v5872_v32 = vmul.f32 %v2683_v24, %v2607_v53  ;;  %v2619_v24 = vrot.slane %v2549_v38, %v5235_v19 }
 0xcb0   :  { %v2731_v22 = vsel %vm636_vm2, %v5853_v47, 0.0 }
 0xcb1   :  { %v2681_v41 = vpop.permute.xlu1 %2680  ;;  %2732 = vadd.xlane.f32.xlu1 %v2731_v22  ;;  %v2755_v30 = vsel %vm636_vm2, %v5872_v32, 0.0  ;;  %v2535_v22 = vcombine.high %v2533_v50, %v2533_v50  ;;  %v2518_v50 = vcombine.high %v2514_v56, %v2514_v56 }
 0xcb2   :  { %v5863_v39 = vmul.f32 %v2681_v41, %v2603_v7  ;;  %v2685_v9 = vpop.permute.xlu0 %2684  ;;  %v2591_v7 = vrot.slane %v2514_v56, %v5235_v19 }
 0xcb3   :  { %v5883_v17 = vmul.f32 %v2685_v9, %v2611_v26  ;;  %v2566_v9 = vcombine.high %v2556_v44, %v2556_v44  ;;  %v2563_v53 = vrot.slane %v2535_v22, %v6364_v61  ;;  %v2599_v61 = vrot.slane %v2518_v50, %v5235_v19 }
 0xcb4   :  { %v2752_v13 = vsel %vm636_vm2, %v5863_v39, 0.0 }
 0xcb5   :  { %v2671_v59 = vpop.permute.xlu1 %2670  ;;  %2753 = vadd.xlane.f32.xlu0 %v2752_v13  ;;  %v2758_v58 = vsel %vm636_vm2, %v5883_v17, 0.0 }
 0xcb6   :  { %v2687_v8 = vpop.permute.xlu0 %2686  ;;  %v5885_v49 = vmul.f32 %v2671_v59, %v2583_v12  ;;  %v2579_v59 = vrot.slane %v2515_v0, %v5235_v19  ;;  %v2623_v0 = vrot.slane %v2563_v53, %v5235_v19 }
 0xcb8   :  { %v2737_v11 = vsel %vm636_vm2, %v5885_v49, 0.0  ;;  %v5905_v3 = vmul.f32 %v5842_v15, %v2579_v59 }
 0xcb9   :  { %v2673_v4 = vpop.permute.xlu1 %2672  ;;  %2729 = vadd.xlane.f32.xlu0 %v2728_v51  ;;  %v2615_v51 = vrot.slane %v2566_v9, %v5235_v19 }
 0xcba   :  { %v5880_v31 = vmul.f32 %v2673_v4, %v2587_v52  ;;  %v2689_v5 = vpop.permute.xlu0 %2688  ;;  %v2567_v4 = vcombine.high %v2563_v53, %v2563_v53  ;;  %v2734_v56 = vsel %vm636_vm2, %v5905_v3, 0.0 }
 0xcbb   :  { %v5893_v41 = vmul.f32 %v2689_v5, %v2619_v24  ;;  %v5915_v12 = vmul.f32 %v2687_v8, %v2615_v51  ;;  %v2565_v5 = vcombine.high %v2549_v38, %v2549_v38 }
 0xcbc   :  { %v2740_v23 = vsel %vm636_vm2, %v5880_v31, 0.0 }
 0xcbd   :  { %v2675_v14 = vpop.permute.xlu1 %2674  ;;  %2756 = vadd.xlane.f32.xlu0 %v2755_v30  ;;  %2741 = vadd.xlane.f32.xlu1 %v2740_v23  ;;  %v2764_v1 = vsel %vm636_vm2, %v5893_v41, 0.0 }
 0xcbe   :  { %v5895_v34 = vmul.f32 %v2675_v14, %v2591_v7  ;;  %v2691_v26 = vpop.permute.xlu0 %2690  ;;  %v2631_v14 = vrot.slane %v2567_v4, %v5235_v19  ;;  %v2761_v7 = vsel %vm636_vm2, %v5915_v12, 0.0 }
 0xcbf   :  { %v5925_v24 = vmul.f32 %v2691_v26, %v2623_v0 }
 0xcc0   :  { %v2743_v44 = vsel %vm636_vm2, %v5895_v34, 0.0 }
 0xcc1   :  { %v2677_v13 = vpop.permute.xlu1 %2676  ;;  %2759 = vadd.xlane.f32.xlu0 %v2758_v58  ;;  %2738 = vadd.xlane.f32.xlu1 %v2737_v11  ;;  %v2627_v58 = vrot.slane %v2565_v5, %v5235_v19  ;;  %v2767_v38 = vsel %vm636_vm2, %v5925_v24, 0.0 }
 0xcc2   :  { %v5907_v25 = vmul.f32 %v2677_v13, %v2595_v54  ;;  %v2693_v57 = vpop.permute.xlu0 %2692 }
 0xcc3   :  { %v5934_v11 = vmul.f32 %v2693_v57, %v2627_v58 }
 0xcc4   :  { %v2746_v30 = vsel %vm636_vm2, %v5907_v25, 0.0 }
 0xcc5   :  { %v2679_v52 = vpop.permute.xlu1 %2678  ;;  %2765 = vadd.xlane.f32.xlu0 %v2764_v1  ;;  %2744 = vadd.xlane.f32.xlu1 %v2743_v44  ;;  %v2770_v13 = vsel %vm636_vm2, %v5934_v11, 0.0 }
 0xcc6   :  { %v5917_v15 = vmul.f32 %v2679_v52, %v2599_v61 }
 0xcc8   :  { %v2749_v22 = vsel %vm636_vm2, %v5917_v15, 0.0 }
 0xcc9   :  { %v2695_v23 = vpop.permute.xlu1 %2694  ;;  %2735 = vadd.xlane.f32.xlu0 %v2734_v56  ;;  %2747 = vadd.xlane.f32.xlu1 %v2746_v30  ;;  %v6365_v56 = vld [vmem:[#allocation21_spill] sm:$0xff] }
 0xcca   :  { %v5927_v8 = vmul.f32 %v2695_v23, %v2631_v14 }
 0xccc   :  { %v2773_v9 = vsel %vm636_vm2, %v5927_v8, 0.0 }
 0xccd   :  { %2762 = vadd.xlane.f32.xlu0 %v2761_v7  ;;  %2750 = vadd.xlane.f32.xlu1 %v2749_v22 }
 0xcd1   :  { %2768 = vadd.xlane.f32.xlu0 %v2767_v38  ;;  %2774 = vadd.xlane.f32.xlu1 %v2773_v9 }
 0xcd5   :  { %2771 = vadd.xlane.f32.xlu0 %v2770_v13 }
 0xd3e   :  { %v2733_v1 = vpop.xlane.xlu1 %2732 }
 0xd3f   :  { %v2793_v0 = vrot.slane %v2733_v1, %v6365_v56 }
 0xd42   :  { %v2754_v59 = vpop.xlane.xlu0 %2753 }
 0xd43   :  { %v2913_v9 = vrot.slane %v2754_v59, %v6365_v56 }
 0xd46   :  { %v2730_v53 = vpop.xlane.xlu0 %2729 }
 0xd47   :  { %v2789_v30 = vrot.slane %v2730_v53, %v6365_v56 }
 0xd49   :  { %v2818_v7 = vsel %vm729_vm3, %v2793_v0, %v2789_v30 }
 0xd4a   :  { %v2757_v54 = vpop.xlane.xlu0 %2756  ;;  %v2742_v44 = vpop.xlane.xlu1 %2741 }
 0xd4b   :  { %v2917_v22 = vrot.slane %v2757_v54, %v6365_v56  ;;  %v2805_v55 = vrot.slane %v2742_v44, %v6365_v56 }
 0xd4d   :  { %v2942_v1 = vsel %vm729_vm3, %v2917_v22, %v2913_v9 }
 0xd4e   :  { %v2760_v50 = vpop.xlane.xlu0 %2759  ;;  %v2739_v51 = vpop.xlane.xlu1 %2738 }
 0xd4f   :  { %v2921_v58 = vrot.slane %v2760_v50, %v6365_v56  ;;  %v2801_v38 = vrot.slane %v2739_v51, %v6365_v56 }
 0xd51   :  { %v2943_v54 = vsel %vm731_vm4, %v2921_v58, %v2942_v1 }
 0xd52   :  { %v2766_v52 = vpop.xlane.xlu0 %2765  ;;  %v2745_v4 = vpop.xlane.xlu1 %2744 }
 0xd53   :  { %v2929_v59 = vrot.slane %v2766_v52, %v6365_v56 }
 0xd56   :  { %v2736_v61 = vpop.xlane.xlu0 %2735  ;;  %v2748_v5 = vpop.xlane.xlu1 %2747 }
 0xd57   :  { %v2797_v23 = vrot.slane %v2736_v61, %v6365_v56 }
 0xd59   :  { %v2819_v57 = vsel %vm731_vm4, %v2797_v23, %v2818_v7 }
 0xd5a   :  { %v2763_v26 = vpop.xlane.xlu0 %2762  ;;  %v2820_v53 = vsel %vm733_vm5, %v2801_v38, %v2819_v57  ;;  %v2751_v61 = vpop.xlane.xlu1 %2750  ;;  %v2813_v57 = vrot.slane %v2748_v5, %v6365_v56 }
 0xd5b   :  { %v2925_v13 = vrot.slane %v2763_v26, %v6365_v56  ;;  %v2821_v51 = vsel %vm735_vm6, %v2805_v55, %v2820_v53  ;;  %v2809_v26 = vrot.slane %v2745_v4, %v6365_v56  ;;  %v2817_v38 = vrot.slane %v2751_v61, %v6365_v56 }
 0xd5d   :  { %v2944_v23 = vsel %vm733_vm5, %v2925_v13, %v2943_v54  ;;  %v2822_v44 = vsel %vm737_vm7, %v2809_v26, %v2821_v51 }
 0xd5e   :  { %v2769_v14 = vpop.xlane.xlu0 %2768  ;;  %v2945_v7 = vsel %vm735_vm6, %v2929_v59, %v2944_v23  ;;  %v2775_v22 = vpop.xlane.xlu1 %2774  ;;  %v2823_v52 = vsel %vm739_vm8, %v2813_v57, %v2822_v44 }
 0xd5f   :  { %v2933_v50 = vrot.slane %v2769_v14, %v6365_v56  ;;  %v2941_v55 = vrot.slane %v2775_v22, %v6365_v56  ;;  %v2824_v53 = vsel %vm741_vm9, %v2817_v38, %v2823_v52 }
 0xd61   :  { %v2946_v58 = vsel %vm737_vm7, %v2933_v50, %v2945_v7 }
 0xd62   :  { %v2772_v30 = vpop.xlane.xlu0 %2771 }
 0xd63   :  { %v2937_v0 = vrot.slane %v2772_v30, %v6365_v56 }
 0xd65   :  { %v2947_v14 = vsel %vm739_vm8, %v2937_v0, %v2946_v58 }
 0xd66   :  { %v2948_v4 = vsel %vm741_vm9, %v2941_v55, %v2947_v14 }
 0xd7c   :  { %v3020_v9 = vpop.f32.mrb[20].mxu0 }
 0xd7d   :  { %v3021_v13 = vadd.f32 %v3020_v9, %v2948_v4  ;;  %v2896_v1 = vpop.f32.mrb[18].mxu1  ;;  %v4703_v30 = vpop.f32.mrb[21].mxu0 }
 0xd7e   :  { %v2897_v54 = vadd.f32 %v2896_v1, %v2824_v53  ;;  %v4698_v5 = vpop.f32.mrb[19].mxu1 }
 0xd7f   :  { %v3027_v23 = vsel %vm942_vm10, %v3021_v13, -inf }
 0xd80   :  { %3028 = vmax.xlane.f32.xlu1 %v3027_v23  ;;  %v3024_v61 = vsel %vm942_vm10, %v2897_v54, -inf }
 0xd81   :  { %3025 = vmax.xlane.f32.xlu0 %v3024_v61 }
 0xd91   :  { %3122 = vrot.lane.b32.xlu1 %v5789_v48, %s5014_s5 }
 0xd95   :  { %3591 = vrot.lane.b32.xlu1 %v5791_v27, %s5015_s0 }
 0xd97   :  { %3046 = vrot.lane.b32.xlu0 %v5791_v27, %s5014_s5 }
 0xd99   :  { %3717 = vrot.lane.b32.xlu1 %v5789_v48, %s5015_s0 }
 0xe0d   :  { %v3029_v50 = vpop.xlane.xlu1 %3028 }
 0xe0e   :  { %v3031_v51 = vsub.f32 %v3021_v13, %v3029_v50  ;;  %v3026_v59 = vpop.xlane.xlu0 %3025 }
 0xe0f   :  { %v3030_v26 = vsub.f32 %v2897_v54, %v3026_v59 }
 0xe10   :  { %v3034_v0 = vmul.f32 1.442695, %v3031_v51 }
 0xe11   :  { %v3032_v7 = vmul.f32 1.442695, %v3030_v26  ;;  %v3123_v22 = vpop.permute.xlu1 %3122 }
 0xe12   :  { %4835 = vpow2.f32 %v3034_v0  ;;  %v3047_v44 = vpop.permute.xlu0 %3046  ;;  %4710 = vmatpush3.msra.mxu0 %v3123_v22 }
 0xe13   :  { %4837 = vpow2.f32 %v3032_v7  ;;  %4705 = vmatpush3.msra.mxu1 %v3047_v44  ;;  %4719 = vmatprep.subr.mxu0 %v6354_v36 }
 0xe14   :  { %4714 = vmatprep.subr.mxu1 %v6354_v36 }
 0xe1c   :  { %v4836_v57 = vpop.eup %4835 }
 0xe1d   :  { %v4838_v58 = vpop.eup %4837  ;;  %v3039_v38 = vsel %vm942_vm10, %v4836_v57, 0.0 }
 0xe1e   :  { %3040 = vadd.xlane.f32.xlu1 %v3039_v38  ;;  %v3036_v14 = vsel %vm942_vm10, %v4838_v58, 0.0 }
 0xe1f   :  { %3037 = vadd.xlane.f32.xlu0 %v3036_v14 }
 0xe2f   :  { %3715 = vrot.lane.b32.xlu1 %v5789_v48, %s5016_s12 }
 0xe33   :  { %3495 = vrot.lane.b32.xlu1 %v5853_v47, %s5016_s12  ;;  %v3592_v47 = vpop.permute.xlu1 %3591 }
 0xe35   :  { %3589 = vrot.lane.b32.xlu0 %v5791_v27, %s5016_s12 }
 0xe37   :  { %3509 = vrot.lane.b32.xlu1 %v5863_v39, %s5016_s12  ;;  %v3718_v39 = vpop.permute.xlu1 %3717 }
 0xe39   :  { %3493 = vrot.lane.b32.xlu0 %v5865_v16, %s5016_s12 }
 0xe3b   :  { %3499 = vrot.lane.b32.xlu1 %v5885_v49, %s5016_s12 }
 0xe3d   :  { %3497 = vrot.lane.b32.xlu0 %v5905_v3, %s5016_s12 }
 0xe3f   :  { %3501 = vrot.lane.b32.xlu1 %v5880_v31, %s5016_s12 }
 0xe41   :  { %3511 = vrot.lane.b32.xlu0 %v5872_v32, %s5016_s12 }
 0xe43   :  { %3503 = vrot.lane.b32.xlu1 %v5895_v34, %s5016_s12 }
 0xe45   :  { %3513 = vrot.lane.b32.xlu0 %v5883_v17, %s5016_s12 }
 0xe47   :  { %3505 = vrot.lane.b32.xlu1 %v5907_v25, %s5016_s12 }
 0xe49   :  { %3515 = vrot.lane.b32.xlu0 %v5915_v12, %s5016_s12 }
 0xe4b   :  { %3507 = vrot.lane.b32.xlu1 %v5917_v15, %s5016_s12 }
 0xe4d   :  { %3517 = vrot.lane.b32.xlu0 %v5893_v41, %s5016_s12 }
 0xe4f   :  { %3523 = vrot.lane.b32.xlu1 %v5927_v8, %s5016_s12 }
 0xe51   :  { %3519 = vrot.lane.b32.xlu0 %v5925_v24, %s5016_s12 }
 0xe55   :  { %3521 = vrot.lane.b32.xlu0 %v5934_v11, %s5016_s12 }
 0xeab   :  { %v3041_v16 = vpop.xlane.xlu1 %3040 }
 0xeac   :  { %4839 = vrcp.f32 %v3041_v16  ;;  %v3038_v32 = vpop.xlane.xlu0 %3037 }
 0xead   :  { %4841 = vrcp.f32 %v3038_v32 }
 0xeaf   :  { %v3716_v31 = vpop.permute.xlu1 %3715 }
 0xeb0   :  { %v3590_v17 = vpop.permute.xlu0 %3589 }
 0xeb3   :  { %v3496_v49 = vpop.permute.xlu1 %3495 }
 0xeb4   :  { %v3544_v41 = vsel %vm636_vm2, %v3496_v49, 0.0  ;;  %v3494_v34 = vpop.permute.xlu0 %3493 }
 0xeb5   :  { %v3541_v3 = vsel %vm636_vm2, %v3494_v34, 0.0  ;;  %3545 = vadd.xlane.f32.xlu1 %v3544_v41 }
 0xeb6   :  { %v4840_v25 = vpop.eup %4839  ;;  %3542 = vadd.xlane.f32.xlu0 %v3541_v3 }
 0xeb7   :  { %v4842_v12 = vpop.eup %4841  ;;  %v6024_v15 = vmul.f32 %v4840_v25, %v4836_v57  ;;  %v3510_v24 = vpop.permute.xlu1 %3509 }
 0xeb8   :  { %v6026_v8 = vmul.f32 %v4842_v12, %v4838_v58  ;;  %v3498_v11 = vpop.permute.xlu0 %3497  ;;  %v3565_v13 = vsel %vm636_vm2, %v3510_v24, 0.0 }
 0xeb9   :  { %v3547_v55 = vsel %vm636_vm2, %v3498_v11, 0.0  ;;  %4712 = vmatmul.mubr.msk.f32.vlgmr.msra.gmra.mrb[22].mxu0 %vm942_vm10, %v6024_v15 }
 0xeba   :  { %4720 = vmatpush3.xpose.msk.msra.mxu0 %vm636_vm2, %v3718_v39  ;;  %4707 = vmatmul.mubr.msk.f32.vlgmr.msra.gmra.mrb[20].mxu1 %vm942_vm10, %v6026_v8 }
 0xebb   :  { %3548 = vadd.xlane.f32.xlu0 %v3547_v55  ;;  %4715 = vmatpush3.xpose.msk.msra.mxu1 %vm636_vm2, %v3592_v47  ;;  %v3500_v52 = vpop.permute.xlu1 %3499 }
 0xebc   :  { %v3550_v4 = vsel %vm636_vm2, %v3500_v52, 0.0  ;;  %v3512_v9 = vpop.permute.xlu0 %3511  ;;  %4721 = vmatprep.mubr.msk.f32.mxu0 %vm5011_vm1, %v6354_v36  ;;  %4716 = vmatprep.mubr.msk.f32.mxu1 %vm5011_vm1, %v6354_v36 }
 0xebd   :  { %4722 = vmatmul.mubr.msk.f32.vlgmr.msra.gmra.mrb[24].mxu0 %vm636_vm2, %v3716_v31  ;;  %3551 = vadd.xlane.f32.xlu1 %v3550_v4  ;;  %v3568_v54 = vsel %vm636_vm2, %v3512_v9, 0.0 }
 0xebe   :  { %4717 = vmatmul.mubr.msk.f32.vlgmr.msra.gmra.mrb[22].mxu1 %vm636_vm2, %v3590_v17  ;;  %4729 = vmatprep.subr.mxu0 %v6354_v36 }
 0xebf   :  { %3566 = vadd.xlane.f32.xlu0 %v3565_v13  ;;  %v3502_v53 = vpop.permute.xlu1 %3501  ;;  %4724 = vmatprep.subr.mxu1 %v6354_v36 }
 0xec0   :  { %v3553_v1 = vsel %vm636_vm2, %v3502_v53, 0.0  ;;  %v3514_v30 = vpop.permute.xlu0 %3513  ;;  %4731 = vmatprep.mubr.msk.f32.mxu0 %vm5011_vm1, %v6354_v36  ;;  %4726 = vmatprep.mubr.msk.f32.mxu1 %vm5011_vm1, %v6354_v36 }
 0xec1   :  { %3554 = vadd.xlane.f32.xlu1 %v3553_v1  ;;  %v3571_v50 = vsel %vm636_vm2, %v3514_v30, 0.0 }
 0xec3   :  { %3569 = vadd.xlane.f32.xlu0 %v3568_v54  ;;  %v3504_v5 = vpop.permute.xlu1 %3503 }
 0xec4   :  { %v3556_v23 = vsel %vm636_vm2, %v3504_v5, 0.0  ;;  %v3516_v61 = vpop.permute.xlu0 %3515 }
 0xec5   :  { %3557 = vadd.xlane.f32.xlu1 %v3556_v23  ;;  %v3574_v0 = vsel %vm636_vm2, %v3516_v61, 0.0 }
 0xec7   :  { %3572 = vadd.xlane.f32.xlu0 %v3571_v50  ;;  %v3506_v51 = vpop.permute.xlu1 %3505 }
 0xec8   :  { %v3559_v59 = vsel %vm636_vm2, %v3506_v51, 0.0  ;;  %v3518_v26 = vpop.permute.xlu0 %3517 }
 0xec9   :  { %3560 = vadd.xlane.f32.xlu1 %v3559_v59  ;;  %v3577_v44 = vsel %vm636_vm2, %v3518_v26, 0.0 }
 0xecb   :  { %3575 = vadd.xlane.f32.xlu0 %v3574_v0  ;;  %v3508_v36 = vpop.permute.xlu1 %3507 }
 0xecc   :  { %v3562_v7 = vsel %vm636_vm2, %v3508_v36, 0.0  ;;  %v3520_v22 = vpop.permute.xlu0 %3519 }
 0xecd   :  { %3563 = vadd.xlane.f32.xlu1 %v3562_v7  ;;  %v3580_v38 = vsel %vm636_vm2, %v3520_v22, 0.0 }
 0xecf   :  { %3578 = vadd.xlane.f32.xlu0 %v3577_v44  ;;  %v3524_v57 = vpop.permute.xlu1 %3523 }
 0xed0   :  { %v3586_v58 = vsel %vm636_vm2, %v3524_v57, 0.0  ;;  %v3522_v14 = vpop.permute.xlu0 %3521 }
 0xed1   :  { %3587 = vadd.xlane.f32.xlu1 %v3586_v58  ;;  %v3583_v47 = vsel %vm636_vm2, %v3522_v14, 0.0 }
 0xed3   :  { %3581 = vadd.xlane.f32.xlu0 %v3580_v38 }
 0xed7   :  { %3584 = vadd.xlane.f32.xlu0 %v3583_v47 }
 0xf42   :  { %v3546_v17 = vpop.xlane.xlu1 %3545 }
 0xf43   :  { %v3543_v39 = vpop.xlane.xlu0 %3542  ;;  %v3608_v1 = vrot.slane %v3546_v17, %v6365_v56 }
 0xf44   :  { %v3604_v30 = vrot.slane %v3543_v39, %v6365_v56 }
 0xf46   :  { %v3633_v36 = vsel %vm729_vm3, %v3608_v1, %v3604_v30 }
 0xf48   :  { %v3549_v16 = vpop.xlane.xlu0 %3548 }
 0xf49   :  { %v3612_v5 = vrot.slane %v3549_v16, %v6365_v56 }
 0xf4a   :  { %v3552_v49 = vpop.xlane.xlu1 %3551 }
 0xf4b   :  { %v3616_v50 = vrot.slane %v3552_v49, %v6365_v56  ;;  %v3634_v57 = vsel %vm731_vm4, %v3612_v5, %v3633_v36 }
 0xf4c   :  { %v3567_v32 = vpop.xlane.xlu0 %3566 }
 0xf4d   :  { %v3730_v9 = vrot.slane %v3567_v32, %v6365_v56  ;;  %v3635_v47 = vsel %vm733_vm5, %v3616_v50, %v3634_v57 }
 0xf4e   :  { %v3555_v34 = vpop.xlane.xlu1 %3554 }
 0xf4f   :  { %v3620_v26 = vrot.slane %v3555_v34, %v6365_v56 }
 0xf50   :  { %v3570_v31 = vpop.xlane.xlu0 %3569 }
 0xf51   :  { %v3734_v55 = vrot.slane %v3570_v31, %v6365_v56  ;;  %v3636_v17 = vsel %vm735_vm6, %v3620_v26, %v3635_v47 }
 0xf52   :  { %v3558_v25 = vpop.xlane.xlu1 %3557 }
 0xf53   :  { %v3759_v23 = vsel %vm729_vm3, %v3734_v55, %v3730_v9  ;;  %v3624_v7 = vrot.slane %v3558_v25, %v6365_v56 }
 0xf54   :  { %v3573_v41 = vpop.xlane.xlu0 %3572 }
 0xf55   :  { %v3738_v52 = vrot.slane %v3573_v41, %v6365_v56  ;;  %v3637_v34 = vsel %vm737_vm7, %v3624_v7, %v3636_v17  ;;  %v6367_v17 = vld [vmem:[#allocation25_spill] sm:$0xff] }
 0xf56   :  { %v3561_v24 = vpop.xlane.xlu1 %3560 }
 0xf57   :  { %v3760_v51 = vsel %vm731_vm4, %v3738_v52, %v3759_v23  ;;  %v3628_v58 = vrot.slane %v3561_v24, %v6365_v56 }
 0xf58   :  { %v3576_v3 = vpop.xlane.xlu0 %3575 }
 0xf59   :  { %v3742_v13 = vrot.slane %v3576_v3, %v6365_v56 }
 0xf5a   :  { %v3564_v4 = vpop.xlane.xlu1 %3563 }
 0xf5b   :  { %v3761_v0 = vsel %vm733_vm5, %v3742_v13, %v3760_v51  ;;  %v3632_v39 = vrot.slane %v3564_v4, %v6365_v56 }
 0xf5c   :  { %v3579_v12 = vpop.xlane.xlu0 %3578 }
 0xf5d   :  { %v3746_v54 = vrot.slane %v3579_v12, %v6365_v56  ;;  %v3638_v12 = vsel %vm739_vm8, %v3628_v58, %v3637_v34 }
 0xf5e   :  { %v3588_v44 = vpop.xlane.xlu1 %3587 }
 0xf5f   :  { %v3762_v22 = vsel %vm735_vm6, %v3746_v54, %v3761_v0  ;;  %v3758_v49 = vrot.slane %v3588_v44, %v6365_v56 }
 0xf60   :  { %v3582_v11 = vpop.xlane.xlu0 %3581 }
 0xf61   :  { %v3750_v61 = vrot.slane %v3582_v11, %v6365_v56  ;;  %v3639_v11 = vsel %vm741_vm9, %v3632_v39, %v3638_v12  ;;  %v6366_v39 = vld [vmem:[#allocation24_spill] sm:$0xff] }
 0xf63   :  { %v3763_v38 = vsel %vm737_vm7, %v3750_v61, %v3762_v22 }
 0xf64   :  { %v3585_v53 = vpop.xlane.xlu0 %3584 }
 0xf65   :  { %v3754_v59 = vrot.slane %v3585_v53, %v6365_v56 }
 0xf67   :  { %v3764_v31 = vsel %vm739_vm8, %v3754_v59, %v3763_v38 }
 0xf68   :  { %v3765_v3 = vsel %vm741_vm9, %v3758_v49, %v3764_v31 }
 0xf8c   :  { %v6081_v14 = vpop.f32.mrb[22].mxu0 }
 0xf8d   :  { %v6085_v16 = vpop.f32.mrb[20].mxu1  ;;  %v4713_v32 = vpop.f32.mrb[23].mxu0 }
 0xf8e   :  { %v4708_v41 = vpop.f32.mrb[21].mxu1 }
 0xf90   :  { %v3837_v25 = vpop.f32.mrb[24].mxu0 }
 0xf91   :  { %v3838_v24 = vadd.f32 %v3837_v25, %v3765_v3  ;;  %v3711_v55 = vpop.f32.mrb[22].mxu1  ;;  %v4723_v52 = vpop.f32.mrb[25].mxu0  ;;  %v6368_v25 = vld [vmem:[#allocation26_spill] sm:$0xff] }
 0xf92   :  { %v3712_v4 = vadd.f32 %v3711_v55, %v3639_v11  ;;  %v4718_v9 = vpop.f32.mrb[23].mxu1  ;;  %v6369_v11 = vld [vmem:[#allocation27_spill] sm:$0xff] }
 0xf93   :  { %v3844_v13 = vsel %vm942_vm10, %v3838_v24, -inf  ;;  %v6370_v9 = vld [vmem:[#allocation28_spill] sm:$0xff] }
 0xf94   :  { %3845 = vmax.xlane.f32.xlu1 %v3844_v13  ;;  %v3841_v56 = vsel %vm942_vm10, %v3712_v4, -inf }
 0xf95   :  { %3842 = vmax.xlane.f32.xlu0 %v3841_v56  ;;  %v3215_v56 = vrot.slane %v6026_v8, %v5583_v42 }
0x1021   :  { %v3846_v53 = vpop.xlane.xlu1 %3845 }
0x1022   :  { %v3848_v1 = vsub.f32 %v3838_v24, %v3846_v53  ;;  %v3843_v30 = vpop.xlane.xlu0 %3842 }
0x1023   :  { %v3847_v54 = vsub.f32 %v3712_v4, %v3843_v30  ;;  %v3201_v4 = vrot.slane %v6026_v8, %v5235_v19  ;;  %v3208_v30 = vrot.slane %v6026_v8, %v5589_v60 }
0x1024   :  { %v3851_v5 = vmul.f32 1.442695, %v3848_v1  ;;  %v3264_v1 = vrot.slane %v6024_v15, %v5589_v60 }
0x1025   :  { %v3849_v23 = vmul.f32 1.442695, %v3847_v54  ;;  %v3271_v54 = vrot.slane %v6024_v15, %v5583_v42 }
0x1026   :  { %4843 = vpow2.f32 %v3851_v5  ;;  %v3257_v5 = vrot.slane %v6024_v15, %v5235_v19 }
0x1027   :  { %4845 = vpow2.f32 %v3849_v23  ;;  %v3278_v23 = vrot.slane %v6024_v15, %v6366_v39 }
0x1030   :  { %v4844_v61 = vpop.eup %4843 }
0x1031   :  { %v4846_v50 = vpop.eup %4845  ;;  %v3856_v51 = vsel %vm942_vm10, %v4844_v61, 0.0 }
0x1032   :  { %3857 = vadd.xlane.f32.xlu1 %v3856_v51  ;;  %v3853_v59 = vsel %vm942_vm10, %v4846_v50, 0.0  ;;  %v3229_v51 = vrot.slane %v6026_v8, %v6367_v17 }
0x1033   :  { %3854 = vadd.xlane.f32.xlu0 %v3853_v59  ;;  %v3292_v59 = vrot.slane %v6024_v15, %v6368_v25 }
0x1043   :  { %3939 = vrot.lane.b32.xlu1 %v5789_v48, %s5017_s13 }
0x1049   :  { %3863 = vrot.lane.b32.xlu0 %v5791_v27, %s5017_s13 }
0x10bf   :  { %v3858_v26 = vpop.xlane.xlu1 %3857 }
0x10c0   :  { %4847 = vrcp.f32 %v3858_v26  ;;  %v3855_v0 = vpop.xlane.xlu0 %3854  ;;  %v3236_v26 = vrot.slane %v6026_v8, %v6368_v25 }
0x10c1   :  { %4849 = vrcp.f32 %v3855_v0  ;;  %v3299_v0 = vrot.slane %v6024_v15, %v6369_v11 }
0x10c3   :  { %v3940_v36 = vpop.permute.xlu1 %3939 }
0x10c4   :  { %v3864_v7 = vpop.permute.xlu0 %3863  ;;  %4730 = vmatpush3.msra.mxu0 %v3940_v36  ;;  %v3243_v36 = vrot.slane %v6026_v8, %v6369_v11 }
0x10c5   :  { %4725 = vmatpush3.msra.mxu1 %v3864_v7  ;;  %v3250_v7 = vrot.slane %v6026_v8, %v6370_v9 }
0x10ca   :  { %v4848_v22 = vpop.eup %4847 }
0x10cb   :  { %v4850_v44 = vpop.eup %4849  ;;  %v3862_v57 = vmul.f32 %v4848_v22, %v4844_v61  ;;  %v3222_v61 = vrot.slane %v6026_v8, %v6366_v39  ;;  %v3306_v22 = vrot.slane %v6024_v15, %v6370_v9 }
0x10cc   :  { %v3860_v58 = vmul.f32 %v4850_v44, %v4846_v50  ;;  %v3285_v50 = vrot.slane %v6024_v15, %v6367_v17 }
0x10cd   :  { %4732 = vmatmul.mubr.msk.f32.vlgmr.msra.gmra.mrb[26].mxu0 %vm942_vm10, %v3862_v57  ;;  %v4081_v38 = vrot.slane %v3862_v57, %v5589_v60  ;;  %v4074_v48 = vrot.slane %v3862_v57, %v5235_v19  ;;  %v4088_v27 = vrot.slane %v3862_v57, %v5583_v42  ;;  %v4095_v32 = vrot.slane %v3862_v57, %v6366_v39 }
0x10ce   :  { %4727 = vmatmul.mubr.msk.f32.vlgmr.msra.gmra.mrb[24].mxu1 %vm942_vm10, %v3860_v58  ;;  %v4018_v47 = vrot.slane %v3860_v58, %v5235_v19  ;;  %v4025_v31 = vrot.slane %v3860_v58, %v5589_v60  ;;  %v4102_v49 = vrot.slane %v3862_v57, %v6367_v17  ;;  %v4039_v41 = vrot.slane %v3860_v58, %v6366_v39 }
0x10cf   :  { %4083 = vbcast.lane.b32.xlu0 %v4081_v38, 256  ;;  %4076 = vbcast.lane.b32.xlu1 %v4074_v48, 256  ;;  %v4032_v34 = vrot.slane %v3860_v58, %v5583_v42  ;;  %v4046_v3 = vrot.slane %v3860_v58, %v6367_v17  ;;  %v4109_v12 = vrot.slane %v3862_v57, %v6368_v25 }
0x10d0   :  { %v4053_v24 = vrot.slane %v3860_v58, %v6368_v25  ;;  %v4116_v55 = vrot.slane %v3862_v57, %v6369_v11  ;;  %v4060_v52 = vrot.slane %v3860_v58, %v6369_v11  ;;  %v4067_v13 = vrot.slane %v3860_v58, %v6370_v9 }
0x10d1   :  { %v4123_v53 = vrot.slane %v3862_v57, %v6370_v9 }
0x10d3   :  { %4090 = vbcast.lane.b32.xlu0 %v4088_v27, 256  ;;  %4020 = vbcast.lane.b32.xlu1 %v4018_v47, 256 }
0x10d7   :  { %4097 = vbcast.lane.b32.xlu0 %v4095_v32, 256  ;;  %4027 = vbcast.lane.b32.xlu1 %v4025_v31, 256 }
0x10db   :  { %4104 = vbcast.lane.b32.xlu0 %v4102_v49, 256  ;;  %4041 = vbcast.lane.b32.xlu1 %v4039_v41, 256 }
0x10df   :  { %4034 = vbcast.lane.b32.xlu0 %v4032_v34, 256  ;;  %4048 = vbcast.lane.b32.xlu1 %v4046_v3, 256 }
0x10e3   :  { %4111 = vbcast.lane.b32.xlu0 %v4109_v12, 256  ;;  %4055 = vbcast.lane.b32.xlu1 %v4053_v24, 256 }
0x10e7   :  { %4118 = vbcast.lane.b32.xlu0 %v4116_v55, 256  ;;  %4062 = vbcast.lane.b32.xlu1 %v4060_v52, 256 }
0x10eb   :  { %3203 = vbcast.lane.b32.xlu0 %v3201_v4, 256  ;;  %4069 = vbcast.lane.b32.xlu1 %v4067_v13, 256 }
0x10ef   :  { %3217 = vbcast.lane.b32.xlu0 %v3215_v56, 256  ;;  %4125 = vbcast.lane.b32.xlu1 %v4123_v53, 256 }
0x10f3   :  { %3266 = vbcast.lane.b32.xlu0 %v3264_v1, 256  ;;  %3210 = vbcast.lane.b32.xlu1 %v3208_v30, 256 }
0x10f7   :  { %3273 = vbcast.lane.b32.xlu0 %v3271_v54, 256  ;;  %3259 = vbcast.lane.b32.xlu1 %v3257_v5, 256 }
0x10fb   :  { %3280 = vbcast.lane.b32.xlu0 %v3278_v23, 256  ;;  %3224 = vbcast.lane.b32.xlu1 %v3222_v61, 256 }
0x10ff   :  { %3287 = vbcast.lane.b32.xlu0 %v3285_v50, 256  ;;  %3231 = vbcast.lane.b32.xlu1 %v3229_v51, 256 }
0x1103   :  { %3294 = vbcast.lane.b32.xlu0 %v3292_v59, 256  ;;  %3238 = vbcast.lane.b32.xlu1 %v3236_v26, 256 }
0x1107   :  { %3301 = vbcast.lane.b32.xlu0 %v3299_v0, 256  ;;  %3245 = vbcast.lane.b32.xlu1 %v3243_v36, 256 }
0x110b   :  { %3252 = vbcast.lane.b32.xlu1 %v3250_v7, 256 }
0x110f   :  { %3308 = vbcast.lane.b32.xlu1 %v3306_v22, 256 }
0x1141   :  { %v4084_v44 = vpop.permute.xlu0 %4083  ;;  %v4077_v57 = vpop.permute.xlu1 %4076 }
0x1142   :  { %v4136_v58 = vmul.f32 %v4084_v44, %v5264_v37  ;;  %v4135_v38 = vmul.f32 %v4077_v57, %v5240_v21 }
0x1144   :  { %v4207_v48 = vsel %vm4143_vm12, %v4136_v58, 0.0  ;;  %v4200_v27 = vsel %vm4143_vm12, %v4135_v38, 0.0 }
0x1145   :  { %v4208_v47 = vrot.slane %v4207_v48, 4  ;;  %v4201_v39 = vrot.slane %v4200_v27, 4  ;;  %v4091_v32 = vpop.permute.xlu0 %4090  ;;  %v4021_v8 = vpop.permute.xlu1 %4020 }
0x1146   :  { %v4137_v31 = vmul.f32 %v4091_v32, %v5250_v29  ;;  %v4127_v15 = vmul.f32 %v4021_v8, %v5247_v28 }
0x1147   :  { %v4209_v17 = vadd.f32 %v4208_v47, %v4207_v48  ;;  %v4202_v49 = vadd.f32 %v4201_v39, %v4200_v27 }
0x1148   :  { %v4214_v41 = vsel %vm4143_vm12, %v4137_v31, 0.0  ;;  %v4144_v34 = vsel %vm4143_vm12, %v4127_v15, 0.0 }
0x1149   :  { %v4210_v3 = vrot.slane %v4209_v17, 2  ;;  %v4203_v25 = vrot.slane %v4202_v49, 2  ;;  %v4215_v12 = vrot.slane %v4214_v41, 4  ;;  %v4145_v24 = vrot.slane %v4144_v34, 4  ;;  %v4098_v11 = vpop.permute.xlu0 %4097  ;;  %v4028_v55 = vpop.permute.xlu1 %4027 }
0x114a   :  { %v4138_v52 = vmul.f32 %v4098_v11, %v5281_v46  ;;  %v4128_v4 = vmul.f32 %v4028_v55, %v5260_v35 }
0x114b   :  { %v4216_v9 = vadd.f32 %v4215_v12, %v4214_v41  ;;  %v4146_v13 = vadd.f32 %v4145_v24, %v4144_v34  ;;  %v4211_v1 = vadd.f32 %v4210_v3, %v4209_v17  ;;  %v4204_v30 = vadd.f32 %v4203_v25, %v4202_v49 }
0x114c   :  { %v4221_v56 = vsel %vm4143_vm12, %v4138_v52, 0.0  ;;  %v4151_v53 = vsel %vm4143_vm12, %v4128_v4, 0.0 }
0x114d   :  { %v4217_v54 = vrot.slane %v4216_v9, 2  ;;  %v4105_v5 = vpop.permute.xlu0 %4104  ;;  %v4042_v23 = vpop.permute.xlu1 %4041  ;;  %v4222_v61 = vrot.slane %v4221_v56, 4  ;;  %v4152_v50 = vrot.slane %v4151_v53, 4  ;;  %v4147_v26 = vrot.slane %v4146_v13, 2 }
0x114e   :  { %v4139_v51 = vmul.f32 %v4105_v5, %v5347_v33  ;;  %v4130_v59 = vmul.f32 %v4042_v23, %v5300_v62  ;;  %v4212_v44 = vrot.slane %v4211_v1, 1  ;;  %v4205_v57 = vrot.slane %v4204_v30, 1 }
0x114f   :  { %v4223_v0 = vadd.f32 %v4222_v61, %v4221_v56  ;;  %v4153_v36 = vadd.f32 %v4152_v50, %v4151_v53  ;;  %v4218_v27 = vadd.f32 %v4217_v54, %v4216_v9  ;;  %v4148_v15 = vadd.f32 %v4147_v26, %v4146_v13 }
0x1150   :  { %v4228_v7 = vsel %vm4143_vm12, %v4139_v51, 0.0  ;;  %v4165_v22 = vsel %vm4143_vm12, %v4130_v59, 0.0  ;;  %v4213_v41 = vadd.f32 %v4212_v44, %v4211_v1  ;;  %v4206_v11 = vadd.f32 %v4205_v57, %v4204_v30 }
0x1151   :  { %v4229_v58 = vrot.slane %v4228_v7, 4  ;;  %v4035_v38 = vpop.permute.xlu0 %4034  ;;  %v4049_v48 = vpop.permute.xlu1 %4048  ;;  %v4224_v47 = vrot.slane %v4223_v0, 2  ;;  %v4154_v39 = vrot.slane %v4153_v36, 2  ;;  %v4166_v8 = vrot.slane %v4165_v22, 4 }
0x1152   :  { %v4129_v32 = vmul.f32 %v4035_v38, %v5278_v45  ;;  %v4131_v31 = vmul.f32 %v4049_v48, %v5304_v63  ;;  %v4219_v55 = vrot.slane %v4218_v27, 1  ;;  %v4149_v54 = vrot.slane %v4148_v15, 1 }
0x1153   :  { %v4230_v17 = vadd.f32 %v4229_v58, %v4228_v7  ;;  %v4225_v34 = vadd.f32 %v4224_v47, %v4223_v0  ;;  %v4155_v52 = vadd.f32 %v4154_v39, %v4153_v36  ;;  %v4167_v9 = vadd.f32 %v4166_v8, %v4165_v22 }
0x1154   :  { %v4158_v49 = vsel %vm4143_vm12, %v4129_v32, 0.0  ;;  %v4172_v25 = vsel %vm4143_vm12, %v4131_v31, 0.0  ;;  %v4279_v30 = vsel %vm729_vm3, %v4213_v41, %v4206_v11  ;;  %v4220_v26 = vadd.f32 %v4219_v55, %v4218_v27 }
0x1155   :  { %v4159_v3 = vrot.slane %v4158_v49, 4  ;;  %v4112_v12 = vpop.permute.xlu0 %4111  ;;  %v4056_v24 = vpop.permute.xlu1 %4055  ;;  %v4173_v4 = vrot.slane %v4172_v25, 4  ;;  %v4231_v5 = vrot.slane %v4230_v17, 2  ;;  %v4226_v23 = vrot.slane %v4225_v34, 1 }
0x1156   :  { %v4140_v53 = vmul.f32 %v4112_v12, %v6355_v6  ;;  %v4132_v13 = vmul.f32 %v4056_v24, %v5322_v18  ;;  %v4156_v36 = vrot.slane %v4155_v52, 1  ;;  %v4168_v7 = vrot.slane %v4167_v9, 2 }
0x1157   :  { %v4160_v56 = vadd.f32 %v4159_v3, %v4158_v49  ;;  %v4174_v1 = vadd.f32 %v4173_v4, %v4172_v25  ;;  %v4150_v57 = vadd.f32 %v4149_v54, %v4148_v15  ;;  %v4232_v58 = vadd.f32 %v4231_v5, %v4230_v17 }
0x1158   :  { %v4235_v61 = vsel %vm4143_vm12, %v4140_v53, 0.0  ;;  %v4179_v50 = vsel %vm4143_vm12, %v4132_v13, 0.0  ;;  %v4227_v47 = vadd.f32 %v4226_v23, %v4225_v34  ;;  %v4157_v12 = vadd.f32 %v4156_v36, %v4155_v52 }
0x1159   :  { %v4119_v51 = vpop.permute.xlu0 %4118  ;;  %v4063_v59 = vpop.permute.xlu1 %4062  ;;  %v4161_v0 = vrot.slane %v4160_v56, 2  ;;  %v4236_v22 = vrot.slane %v4235_v61, 4  ;;  %v4180_v44 = vrot.slane %v4179_v50, 4  ;;  %v4175_v39 = vrot.slane %v4174_v1, 2 }
0x115a   :  { %v4141_v38 = vmul.f32 %v4119_v51, %v6361_v10  ;;  %v4133_v48 = vmul.f32 %v4063_v59, %v5326_v20  ;;  %v4169_v15 = vadd.f32 %v4168_v7, %v4167_v9  ;;  %v4280_v53 = vsel %vm731_vm4, %v4220_v26, %v4279_v30 }
0x115b   :  { %v4237_v32 = vadd.f32 %v4236_v22, %v4235_v61  ;;  %v4181_v8 = vadd.f32 %v4180_v44, %v4179_v50  ;;  %v4162_v41 = vadd.f32 %v4161_v0, %v4160_v56  ;;  %v4233_v13 = vrot.slane %v4232_v58, 1 }
0x115c   :  { %v4242_v27 = vsel %vm4143_vm12, %v4141_v38, 0.0  ;;  %v4186_v3 = vsel %vm4143_vm12, %v4133_v48, 0.0  ;;  %v4176_v56 = vadd.f32 %v4175_v39, %v4174_v1  ;;  %v6187_v9 = vsel %vm733_vm5, %v4227_v47, %v4280_v53 }
0x115d   :  { %v3204_v31 = vpop.permute.xlu0 %3203  ;;  %v4070_v49 = vpop.permute.xlu1 %4069  ;;  %v4238_v17 = vrot.slane %v4237_v32, 2  ;;  %v4243_v24 = vrot.slane %v4242_v27, 4  ;;  %v4182_v11 = vrot.slane %v4181_v8, 2  ;;  %v4187_v55 = vrot.slane %v4186_v3, 4 }
0x115e   :  { %v3310_v25 = vmul.f32 %v3204_v31, %v5247_v28  ;;  %v4134_v4 = vmul.f32 %v4070_v49, %v6362_v40  ;;  %v4163_v61 = vrot.slane %v4162_v41, 1  ;;  %v4170_v51 = vrot.slane %v4169_v15, 1 }
0x115f   :  { %v4244_v54 = vadd.f32 %v4243_v24, %v4242_v27  ;;  %v4188_v50 = vadd.f32 %v4187_v55, %v4186_v3  ;;  %v4239_v59 = vadd.f32 %v4238_v17, %v4237_v32  ;;  %v4272_v36 = vsel %vm729_vm3, %v4157_v12, %v4150_v57 }
0x1160   :  { %v3327_v34 = vsel %vm3326_vm13, %v3310_v25, 0.0  ;;  %v4193_v52 = vsel %vm4143_vm12, %v4134_v4, 0.0  ;;  %v4183_v7 = vadd.f32 %v4182_v11, %v4181_v8  ;;  %v6192_v26 = vadd.f32 %v4233_v13, %v4232_v58 }
0x1161   :  { %v3218_v5 = vpop.permute.xlu0 %3217  ;;  %v4126_v23 = vpop.permute.xlu1 %4125  ;;  %v3328_v28 = vrot.slane %v3327_v34, 4  ;;  %v4194_v0 = vrot.slane %v4193_v52, 4  ;;  %v4177_v22 = vrot.slane %v4176_v56, 1  ;;  %v4245_v44 = vrot.slane %v4244_v54, 2 }
0x1162   :  { %v3312_v30 = vmul.f32 %v3218_v5, %v5278_v45  ;;  %v4142_v1 = vmul.f32 %v4126_v23, %v6363_v43  ;;  %v4164_v31 = vadd.f32 %v4163_v61, %v4162_v41  ;;  %v4189_v47 = vrot.slane %v4188_v50, 2 }
0x1163   :  { %v4195_v38 = vadd.f32 %v4194_v0, %v4193_v52  ;;  %v3329_v49 = vadd.f32 %v3328_v28, %v3327_v34  ;;  %v4171_v27 = vadd.f32 %v4170_v51, %v4169_v15  ;;  %v4240_v3 = vrot.slane %v4239_v59, 1 }
0x1164   :  { %v4249_v32 = vsel %vm4143_vm12, %v4142_v1, 0.0  ;;  %v4184_v45 = vrot.slane %v4183_v7, 1  ;;  %v3341_v58 = vsel %vm3326_vm13, %v3312_v30, 0.0  ;;  %v4178_v17 = vadd.f32 %v4177_v22, %v4176_v56 }
0x1165   :  { %v3267_v48 = vpop.permute.xlu0 %3266  ;;  %v3211_v39 = vpop.permute.xlu1 %3210  ;;  %v4250_v57 = vrot.slane %v4249_v32, 4  ;;  %v4196_v25 = vrot.slane %v4195_v38, 2  ;;  %v4246_v24 = vadd.f32 %v4245_v44, %v4244_v54  ;;  %v4273_v4 = vsel %vm731_vm4, %v4164_v31, %v4272_v36 }
0x1166   :  { %v3319_v8 = vmul.f32 %v3267_v48, %v5264_v37  ;;  %v3311_v12 = vmul.f32 %v3211_v39, %v5260_v35  ;;  %v4190_v15 = vadd.f32 %v4189_v47, %v4188_v50  ;;  %v3330_v53 = vrot.slane %v3329_v49, 2 }
0x1167   :  { %v4251_v11 = vadd.f32 %v4250_v57, %v4249_v32  ;;  %v6200_v5 = vadd.f32 %v4240_v3, %v4239_v59  ;;  %v3342_v37 = vrot.slane %v3341_v58, 4  ;;  %v4185_v35 = vadd.f32 %v4184_v45, %v4183_v7 }
0x1168   :  { %v3390_v41 = vsel %vm3326_vm13, %v3319_v8, 0.0  ;;  %v3334_v23 = vsel %vm3326_vm13, %v3311_v12, 0.0  ;;  %v4197_v56 = vadd.f32 %v4196_v25, %v4195_v38  ;;  %v4247_v52 = vrot.slane %v4246_v24, 1 }
0x1169   :  { %v3274_v55 = vpop.permute.xlu0 %3273  ;;  %v3260_v34 = vpop.permute.xlu1 %3259  ;;  %v3391_v13 = vrot.slane %v3390_v41, 4  ;;  %v4252_v54 = vrot.slane %v4251_v11, 2  ;;  %v3335_v28 = vrot.slane %v3334_v23, 4  ;;  %v4191_v1 = vrot.slane %v4190_v15, 1 }
0x116a   :  { %v3320_v61 = vmul.f32 %v3274_v55, %v5250_v29  ;;  %v3318_v36 = vmul.f32 %v3260_v34, %v5240_v21  ;;  %v3331_v59 = vadd.f32 %v3330_v53, %v3329_v49  ;;  %v3343_v48 = vadd.f32 %v3342_v37, %v3341_v58 }
0x116b   :  { %v3392_v51 = vadd.f32 %v3391_v13, %v3390_v41  ;;  %v3336_v22 = vadd.f32 %v3335_v28, %v3334_v23  ;;  %v4198_v38 = vrot.slane %v4197_v56, 1  ;;  %v4253_v31 = vadd.f32 %v4252_v54, %v4251_v11 }
0x116c   :  { %v3397_v0 = vsel %vm3326_vm13, %v3320_v61, 0.0  ;;  %v3383_v39 = vsel %vm3326_vm13, %v3318_v36, 0.0  ;;  %v4192_v25 = vadd.f32 %v4191_v1, %v4190_v15  ;;  %v3332_v34 = vrot.slane %v3331_v59, 1 }
0x116d   :  { %v3281_v50 = vpop.permute.xlu0 %3280  ;;  %v3225_v30 = vpop.permute.xlu1 %3224  ;;  %v3398_v44 = vrot.slane %v3397_v0, 4  ;;  %v3337_v47 = vrot.slane %v3336_v22, 2  ;;  %v3393_v3 = vrot.slane %v3392_v51, 2  ;;  %v3384_v57 = vrot.slane %v3383_v39, 4 }
0x116e   :  { %v3321_v29 = vmul.f32 %v3281_v50, %v5281_v46  ;;  %v3313_v7 = vmul.f32 %v3225_v30, %v5300_v62  ;;  %v4274_v62 = vsel %vm733_vm5, %v4171_v27, %v4273_v4  ;;  %v4199_v53 = vadd.f32 %v4198_v38, %v4197_v56 }
0x116f   :  { %v3399_v32 = vadd.f32 %v3398_v44, %v3397_v0  ;;  %v3338_v58 = vadd.f32 %v3337_v47, %v3336_v22  ;;  %v3385_v55 = vadd.f32 %v3384_v57, %v3383_v39  ;;  %v3344_v13 = vrot.slane %v3343_v48, 2 }
0x1170   :  { %v3404_v21 = vsel %vm3326_vm13, %v3321_v29, 0.0  ;;  %v3348_v8 = vsel %vm3326_vm13, %v3313_v7, 0.0  ;;  %v4254_v37 = vrot.slane %v4253_v31, 1  ;;  %v3394_v23 = vadd.f32 %v3393_v3, %v3392_v51 }
0x1171   :  { %v3288_v49 = vpop.permute.xlu0 %3287  ;;  %v3232_v45 = vpop.permute.xlu1 %3231  ;;  %v3400_v12 = vrot.slane %v3399_v32, 2  ;;  %v3405_v41 = vrot.slane %v3404_v21, 4  ;;  %v3349_v46 = vrot.slane %v3348_v8, 4  ;;  %v3339_v61 = vrot.slane %v3338_v58, 1 }
0x1172   :  { %v3322_v11 = vmul.f32 %v3288_v49, %v5347_v33  ;;  %v4275_v54 = vsel %vm735_vm6, %v4178_v17, %v4274_v62  ;;  %v4248_v36 = vadd.f32 %v4247_v52, %v4246_v24  ;;  %v3386_v27 = vrot.slane %v3385_v55, 2 }
0x1173   :  { %v3401_v50 = vadd.f32 %v3400_v12, %v3399_v32  ;;  %v3406_v30 = vadd.f32 %v3405_v41, %v3404_v21  ;;  %v4276_v1 = vsel %vm737_vm7, %v4185_v35, %v4275_v54  ;;  %v3350_v4 = vadd.f32 %v3349_v46, %v3348_v8 }
0x1174   :  { %v3411_v28 = vsel %vm3326_vm13, %v3322_v11, 0.0  ;;  %v4277_v33 = vsel %vm739_vm8, %v4192_v25, %v4276_v1  ;;  %v6217_v22 = vadd.f32 %v3344_v13, %v3343_v48  ;;  %v4255_v51 = vadd.f32 %v4254_v37, %v4253_v31 }
0x1175   :  { %v3295_v15 = vpop.permute.xlu0 %3294  ;;  %v3239_v0 = vpop.permute.xlu1 %3238  ;;  %v3412_v56 = vrot.slane %v3411_v28, 4  ;;  %v4278_v44 = vsel %vm741_vm9, %v4199_v53, %v4277_v33  ;;  %v4282_v17 = vsel %vm735_vm6, %v6192_v26, %v6187_v9  ;;  %v3333_v39 = vadd.f32 %v3332_v34, %v3331_v59 }
0x1176   :  { %v3395_v24 = vrot.slane %v3394_v23, 1  ;;  %v3340_v52 = vadd.f32 %v3339_v61, %v3338_v58  ;;  %4286 = vrot.lane.b32.xlu0 %v4278_v44, %s5015_s0  ;;  %v3402_v7 = vrot.slane %v3401_v50, 1  ;;  %v3314_v38 = vmul.f32 %v3232_v45, %v5304_v63 }
0x1177   :  { %v3413_v35 = vadd.f32 %v3412_v56, %v3411_v28  ;;  %v4283_v48 = vsel %vm737_vm7, %v6200_v5, %v4282_v17  ;;  %v3323_v31 = vmul.f32 %v3295_v15, %v6355_v6  ;;  %v3387_v47 = vadd.f32 %v3386_v27, %v3385_v55 }
0x1178   :  { %v3407_v32 = vrot.slane %v3406_v30, 2  ;;  %v3351_v3 = vrot.slane %v3350_v4, 2  ;;  %v4284_v9 = vsel %vm739_vm8, %v4248_v36, %v4283_v48  ;;  %v3346_v59 = vrot.slane %v6217_v22, 1 }
0x1179   :  { %v3246_v29 = vpop.permute.xlu1 %3245  ;;  %v3302_v26 = vpop.permute.xlu0 %3301  ;;  %v3355_v57 = vsel %vm3326_vm13, %v3314_v38, 0.0  ;;  %v4285_v21 = vsel %vm741_vm9, %v4255_v51, %v4284_v9  ;;  %v3418_v8 = vsel %vm3326_vm13, %v3323_v31, 0.0  ;;  %v3396_v63 = vadd.f32 %v3395_v24, %v3394_v23 }
0x117a   :  { %v6234_v49 = vsel %vm729_vm3, %v3340_v52, %v3333_v39  ;;  %v3414_v5 = vrot.slane %v3413_v35, 2  ;;  %v3356_v6 = vrot.slane %v3355_v57, 4  ;;  %4288 = vrot.lane.b32.xlu1 %v4285_v21, %s5015_s0  ;;  %v6237_v25 = vadd.f32 %v3402_v7, %v3401_v50 }
0x117b   :  { %v3419_v58 = vrot.slane %v3418_v8, 4  ;;  %v3315_v12 = vmul.f32 %v3239_v0, %v5322_v18  ;;  %v3324_v41 = vmul.f32 %v3302_v26, %v6361_v10  ;;  %v3388_v55 = vrot.slane %v3387_v47, 1 }
0x117c   :  { %v3408_v46 = vadd.f32 %v3407_v32, %v3406_v30  ;;  %v3352_v62 = vadd.f32 %v3351_v3, %v3350_v4  ;;  %v3357_v11 = vadd.f32 %v3356_v6, %v3355_v57  ;;  %v3316_v37 = vmul.f32 %v3246_v29, %v5326_v20  ;;  %v4307_v29 = vld [vmem:[#allocation10 + $0x20] sm:$0xff] }
0x117d   :  { %v3253_v45 = vpop.permute.xlu1 %3252  ;;  %v3420_v34 = vadd.f32 %v3419_v58, %v3418_v8  ;;  %v3362_v53 = vsel %vm3326_vm13, %v3315_v12, 0.0  ;;  %v3425_v13 = vsel %vm3326_vm13, %v3324_v41, 0.0  ;;  %v3415_v23 = vadd.f32 %v3414_v5, %v3413_v35 }
0x117e   :  { %v3358_v61 = vrot.slane %v3357_v11, 2  ;;  %v3363_v54 = vrot.slane %v3362_v53, 4  ;;  %v3426_v28 = vrot.slane %v3425_v13, 4  ;;  %v3369_v18 = vsel %vm3326_vm13, %v3316_v37, 0.0 }
0x117f   :  { %v3421_v36 = vrot.slane %v3420_v34, 2  ;;  %v3317_v10 = vmul.f32 %v3253_v45, %v6362_v40  ;;  %v3370_v27 = vrot.slane %v3369_v18, 4  ;;  %v3409_v4 = vrot.slane %v3408_v46, 1 }
0x1180   :  { %v3359_v50 = vadd.f32 %v3358_v61, %v3357_v11  ;;  %v3364_v30 = vadd.f32 %v3363_v54, %v3362_v53  ;;  %v3427_v1 = vadd.f32 %v3426_v28, %v3425_v13  ;;  %v3389_v51 = vadd.f32 %v3388_v55, %v3387_v47 }
0x1181   :  { %v3309_v15 = vpop.permute.xlu1 %3308  ;;  %v3422_v33 = vadd.f32 %v3421_v36, %v3420_v34  ;;  %v3376_v20 = vsel %vm3326_vm13, %v3317_v10, 0.0  ;;  %v3371_v39 = vadd.f32 %v3370_v27, %v3369_v18  ;;  %v3353_v24 = vrot.slane %v3352_v62, 1 }
0x1182   :  { %v3325_v0 = vmul.f32 %v3309_v15, %v6363_v43  ;;  %v3365_v44 = vrot.slane %v3364_v30, 2  ;;  %v3428_v17 = vrot.slane %v3427_v1, 2  ;;  %v3416_v52 = vrot.slane %v3415_v23, 1  ;;  %v4308_v43 = vld [vmem:[#allocation10 + $0x28] sm:$0xff] }
0x1183   :  { %v3377_v35 = vrot.slane %v3376_v20, 4  ;;  %v3360_v7 = vrot.slane %v3359_v50, 1  ;;  %v3372_v31 = vrot.slane %v3371_v39, 2  ;;  %v3423_v32 = vrot.slane %v3422_v33, 1 }
0x1184   :  { %v3432_v56 = vsel %vm3326_vm13, %v3325_v0, 0.0  ;;  %v3366_v38 = vadd.f32 %v3365_v44, %v3364_v30  ;;  %v3429_v48 = vadd.f32 %v3428_v17, %v3427_v1  ;;  %v4777_v26 = vpack.c.bf16 %v4308_v43, %v4307_v29 }
0x1185   :  { %v3433_v40 = vrot.slane %v3432_v56, 4  ;;  %v3378_v3 = vadd.f32 %v3377_v35, %v3376_v20  ;;  %v3410_v57 = vadd.f32 %v3409_v4, %v3408_v46  ;;  %v3373_v8 = vadd.f32 %v3372_v31, %v3371_v39  ;;  %v4309_v20 = vld [vmem:[#allocation10 + $0x30] sm:$0xff] }
0x1186   :  { %v3367_v21 = vrot.slane %v3366_v38, 1  ;;  %v3430_v47 = vrot.slane %v3429_v48, 1  ;;  %v3462_v5 = vsel %vm729_vm3, %v3396_v63, %v3389_v51  ;;  %v3354_v6 = vadd.f32 %v3353_v24, %v3352_v62  ;;  %4778 = vmatprep.subr.bf16.mxu1 %v4777_v26  ;;  %v4508_v31 = vld [vmem:[%s6313_s7 + $0x4] sm:$0x7]  ;;  %s5018_s7 = smov [#allocation11]  }
0x1187   :  { %v3434_v9 = vadd.f32 %v3433_v40, %v3432_v56  ;;  %v3379_v45 = vrot.slane %v3378_v3, 2  ;;  %v3347_v12 = vadd.f32 %v3346_v59, %v6217_v22  ;;  %v3417_v41 = vadd.f32 %v3416_v52, %v3415_v23  ;;  %4780 = vmatpush3.bf16.msra.mxu1 %v4777_v26  ;;  %v4310_v56 = vld [vmem:[#allocation10 + $0x38] sm:$0xff] }
0x1188   :  { %v3361_v55 = vadd.f32 %v3360_v7, %v3359_v50  ;;  %v3374_v11 = vrot.slane %v3373_v8, 1  ;;  %v3424_v34 = vadd.f32 %v3423_v32, %v3422_v33  ;;  %v3368_v53 = vadd.f32 %v3367_v21, %v3366_v38 }
0x1189   :  { %v3435_v58 = vrot.slane %v3434_v9, 2  ;;  %v3380_v46 = vadd.f32 %v3379_v45, %v3378_v3  ;;  %v3463_v37 = vsel %vm731_vm4, %v6237_v25, %v3462_v5  ;;  %v3456_v63 = vsel %vm731_vm4, %v3347_v12, %v6234_v49  ;;  %v6371_v5 = vld [vmem:[#allocation18_spill] sm:$0xff] }
0x118a   :  { %v3431_v62 = vadd.f32 %v3430_v47, %v3429_v48  ;;  %v3375_v61 = vadd.f32 %v3374_v11, %v3373_v8  ;;  %v3464_v54 = vsel %vm733_vm5, %v3410_v57, %v3463_v37  ;;  %v3457_v22 = vsel %vm733_vm5, %v3354_v6, %v3456_v63 }
0x118b   :  { %v3436_v13 = vadd.f32 %v3435_v58, %v3434_v9  ;;  %v3381_v59 = vrot.slane %v3380_v46, 1  ;;  %v3458_v28 = vsel %vm735_vm6, %v3361_v55, %v3457_v22  ;;  %v3465_v15 = vsel %vm735_vm6, %v3417_v41, %v3464_v54 }
0x118c   :  { %v3459_v10 = vsel %vm737_vm7, %v3368_v53, %v3458_v28  ;;  %v3466_v25 = vsel %vm737_vm7, %v3424_v34, %v3465_v15  ;;  %v4781_v51 = vpack.c.bf16 %v4310_v56, %v4309_v20  ;;  %v4314_v32 = vrot.slane %v4508_v31, %v5235_v19 }
0x118d   :  { %v3437_v23 = vrot.slane %v3436_v13, 1  ;;  %v3382_v36 = vadd.f32 %v3381_v59, %v3380_v46  ;;  %v3460_v49 = vsel %vm739_vm8, %v3375_v61, %v3459_v10  ;;  %v3467_v0 = vsel %vm739_vm8, %v3431_v62, %v3466_v25 }
0x118e   :  { %4782 = vmatprep.subr.bf16.mxu1 %v4781_v51  ;;  %v4405_v3 = vrot.slane %v4508_v31, %v5583_v42 }
0x118f   :  { %v3438_v18 = vadd.f32 %v3437_v23, %v3436_v13  ;;  %v3461_v50 = vsel %vm741_vm9, %v3382_v36, %v3460_v49  ;;  %4784 = vmatpush3.bf16.msra.mxu1 %v4781_v51 }
0x1190   :  { %3469 = vrot.lane.b32.xlu0 %v3461_v50, %s5012_s4  ;;  %v4407_v47 = vmul.f32 %v4405_v3, %v5776_v2  ;;  %v4406_v6 = vmul.f32 %v4405_v3, %v6371_v5 }
0x1191   :  { %v3468_v30 = vsel %vm741_vm9, %v3438_v18, %v3467_v0 }
0x1192   :  { %3471 = vrot.lane.b32.xlu1 %v3468_v30, %s5012_s4 }
0x11a0   :  { %v4011_v1 = vpop.f32.mrb[26].mxu0 }
0x11a1   :  { %v3935_v27 = vpop.f32.mrb[24].mxu1  ;;  %v4733_v4 = vpop.f32.mrb[27].mxu0 }
0x11a2   :  { %v4728_v33 = vpop.f32.mrb[25].mxu1 }
0x11e8   :  { %v4287_v44 = vpop.permute.xlu0 %4286 }
0x11e9   :  { %v4292_v17 = vadd.f32 %v4287_v44, %v3935_v27 }
0x11eb   :  { %4296 = vrot.lane.b32.xlu0 %v4292_v17, %s5005_s1 }
0x11ec   :  { %v4289_v39 = vpop.permute.xlu1 %4288 }
0x11ed   :  { %v4293_v24 = vadd.f32 %v4289_v39, %v4011_v1 }
0x11ef   :  { %4298 = vrot.lane.b32.xlu1 %v4293_v24, %s5005_s1  ;;  %s4443_s1 = sshll.u32 %s5018_s7, 4  ;;  %s4444_s1 = int_to_ptr.vmem [resolvable:$true] %s4443_s1 }
0x11f0   :  { %s4971_s21 = scalar_lea.vmem %s4444_s1, 256  ;;  %p4976_p13 = scmp.lt.s32.totalorder %s4444_s1, %s4444_s1 }
0x11f1   :  { %p4972_p12 = scmp.ne.s32.totalorder %s4444_s1, %s4971_s21  ;;  %p4977_p0 = scmp.lt.s32.totalorder %s4971_s21, %s4971_s21 }
0x11f3   :  { %p4978_p1 = por %p4977_p0, %p4976_p13 }
0x11f5   :  { %p4979_p2 = pnand %p4978_p1, %p4972_p12 }
0x1202   :  { %v3470_v52 = vpop.permute.xlu0 %3469 }
0x1203   :  { %v3475_v35 = vadd.f32 %v3470_v52, %v6085_v16  ;;  %v4399_v16 = vrot.slane %v4508_v31, %v5589_v60 }
0x1204   :  { %v3472_v40 = vpop.permute.xlu1 %3471 }
0x1205   :  { %v3476_v7 = vadd.f32 %v3472_v40, %v6081_v14 }
0x125d   :  { %v4297_v29 = vpop.permute.xlu0 %4296 }
0x125e   :  { %v4302_v43 = vsel %vm636_vm2, %v3475_v35, %v4297_v29 }
0x125f   :  { %4742 = vmatprep.mubr.msk.f32.mxu1 %vm127_vm0, %v4302_v43 }
0x1261   :  { %v4299_v38 = vpop.permute.xlu1 %4298 }
0x1262   :  { %v4303_v48 = vsel %vm636_vm2, %v3476_v7, %v4299_v38 }
0x1263   :  { %4743 = vmatmul.mubr.msk.f32.vlgmr.msra.gmra.mrb[26].mxu1 %vm127_vm0, %v4303_v48 }
0x1336   :  { %v4744_v9 = vpop.f32.mrb[26].mxu1 }
0x1337   :  { %v4393_v26 = vadd.f32 %v4744_v9, %v4314_v32  ;;  %v4387_v57 = vpop.f32.mrb[27].mxu1 }
0x1338   :  { %v4388_v21 = vadd.f32 %v4387_v57, %v4314_v32 }
0x1339   :  { %v4401_v14 = vmul.f32 %v4399_v16, %v4393_v26 }
0x133a   :  { %v4400_v8 = vmul.f32 %v4399_v16, %v4388_v21 }
0x133b   :  { %v4409_v45 = vadd.f32 %v4407_v47, %v4401_v14 }
0x133c   :  { %v4408_v58 = vadd.f32 %v4406_v6, %v4400_v8 }
0x133d   :  { %v4413_v12 = vsel %vm127_vm0, %v4409_v45, 0.0 }
0x133e   :  { %4414 = vadd.xlane.f32.xlu1 %v4413_v12  ;;  %v4410_v19 = vsel %vm127_vm0, %v4408_v58, 0.0 }
0x133f   :  { %4411 = vadd.xlane.f32.xlu0 %v4410_v19 }
0x13cb   :  { %v4415_v60 = vpop.xlane.xlu1 %4414 }
0x13cc   :  { %v4512_v42 = vmul.f32 -1.442695, %v4415_v60  ;;  %v4412_v41 = vpop.xlane.xlu0 %4411 }
0x13cd   :  { %v4511_v55 = vmul.f32 -1.442695, %v4412_v41 }
0x13ce   :  { %4851 = vpow2.f32 %v4512_v42 }
0x13cf   :  { %4853 = vpow2.f32 %v4511_v55 }
0x13d8   :  { %v4852_v11 = vpop.eup %4851 }
0x13d9   :  { %v4854_v34 = vpop.eup %4853  ;;  %v4423_v53 = vadd.f32 1.0, %v4852_v11 }
0x13da   :  { %v4422_v46 = vadd.f32 1.0, %v4854_v34 }
0x13db   :  { %4855 = vrcp.f32 %v4423_v53 }
0x13dc   :  { %4857 = vrcp.f32 %v4422_v46 }
0x13e5   :  { %v4856_v13 = vpop.eup %4855 }
0x13e6   :  { %v4858_v37 = vpop.eup %4857  ;;  %v4431_v63 = vsub.f32 1.0, %v4856_v13  ;;  %v4429_v61 = vmul.f32 %v4856_v13, %v4393_v26 }
0x13e7   :  { %v4430_v62 = vsub.f32 1.0, %v4858_v37  ;;  %v4428_v22 = vmul.f32 %v4858_v37, %v4388_v21 }
0x13e8   :  { %v4433_v54 = vmul.f32 %v4431_v63, %v5776_v2 }
0x13e9   :  { %v4432_v59 = vmul.f32 %v4430_v62, %v6371_v5 }
0x13ea   :  { %v4435_v23 = vadd.f32 %v4433_v54, %v4429_v61 }
0x13eb   :  { %v4434_v28 = vadd.f32 %v4432_v59, %v4428_v22 }
0x13ec   :  { %4437 = vst.msk [vmem:[#allocation11 + $0x8] sm:$0xff] %vm127_vm0, %v4435_v23 }
0x13ed   :  { %4436 = vst.msk [vmem:[#allocation11] sm:$0xff] %vm127_vm0, %v4434_v28 }
0x13ee   :  { %4982 = shalt.err (!%p4979_p2)
}
0x13ef   :  { %s4983_s3 = scalar_lea.hbm %s6314_s8, 256 }
0x13f0   :  { %p4984_p3 = scmp.ne.s32.totalorder %s6314_s8, %s4983_s3  ;;  %p4987_p4 = scmp.lt.u32.totalorder %s4983_s3, %s6314_s8 }
0x13f2   :  { %p4989_p5 = pnand %p4987_p4, %p4984_p3 }
0x13f4   :  { %4992 = shalt.err (!%p4989_p5)
}
0x13f5   :  { %4449 = dma.vmem_to_hbm [thread:$0]  %s4444_s1, 256, %s6314_s8, [#allocation4], %s5003_s17, %s5003_s17, %s5004_s18  }
0x13f6   :  { %4999 = dma.done.wait [#allocation4], 256  }
0x13f7   :  { %5000 = vsyncadd [#allocation4], 4294967040 }
0x13f8   :  { %4453 = vsyncpa [#allocation3], 1 }
0x13f9   :  { %4454 = vsyncpa [#allocation6], 1 }
0x13fa   :  { %4455 = vsyncpa [#allocation9], 1 }
0x13fb   :  { %4456 = vsyncpa [#allocation4], 1 }

</bundles_post_ra>
